<compile_context>
chip_gen: v7x
topology: tpu7x:2x2x1
jax: 0.10.0
libtpu: 0.0.40
codegen_flags: <defaults>
</compile_context>

<pallas_src>
import jax
import jax.numpy as jnp
from jax.experimental import pallas as pl
from jax.experimental.pallas import tpu as pltpu

CLASSES = 10
CHANNELS = 1
IMG_SIZE = 28
IMG_FEATS = CHANNELS * IMG_SIZE * IMG_SIZE      # 784 (Mosaic masks the K remainder)
CLASSES_PAD = 128                               # one-hot lane width
HIDDENS = (1024, 512, 256, 128)
OUT_PAD = 128                                   # sublane rows of transposed head weight
MAX_TILE_B = 512                                # batch rows per grid step


def _round_up(x, m):
    return (x + m - 1) // m * m


def _leaky(h):
    return jnp.where(h >= 0.0, h, 0.2 * h)


def _mlp_math(x_f32, labels_i32, w1i, w1l, w2, w3, w45t, bias):
    """Shared kernel / reference math.

    x_f32: (n, 784) f32, labels: (n, 1) int32, weights bf16, bias f32.
    Returns (1, n) f32 sigmoid probabilities (lane-dense row).
    """
    f32, bf16 = jnp.float32, jnp.bfloat16
    x = x_f32.astype(bf16)                                          # cast in-kernel (no wrapper pass)
    class_ids = jax.lax.broadcasted_iota(
        jnp.int32, (labels_i32.shape[0], CLASSES_PAD), 1)
    onehot = (labels_i32 == class_ids).astype(bf16)                 # fused nn.Embedding gather
    # Layer 1: Linear(794 -> 1024) + LeakyReLU(0.2)
    #   cat([img, emb(labels)]) @ w1 == img @ w1[:784] + onehot @ (emb @ w1[784:])
    h = (jnp.dot(x, w1i, preferred_element_type=f32)
         + jnp.dot(onehot, w1l, preferred_element_type=f32)
         + bias[0:1, :HIDDENS[0]])
    h = _leaky(h)
    # Layer 2: Linear(1024 -> 512) + Dropout(0.4)[identity, eval] + LeakyReLU(0.2)
    h = _leaky(jnp.dot(h.astype(bf16), w2, preferred_element_type=f32)
               + bias[1:2, :HIDDENS[1]])
    # Layer 3: Linear(512 -> 256) + Dropout(0.4)[identity, eval] + LeakyReLU(0.2)
    h = _leaky(jnp.dot(h.astype(bf16), w3, preferred_element_type=f32)
               + bias[2:3, :HIDDENS[2]])
    # Layers 4+5 pre-composed (layer 4 has no activation -> exact).  Computed
    # attention-style (A contracted with B on dim 1) so the result is already
    # lane-dense: (128, n) with row 0 the real logits.
    logits = jax.lax.dot_general(
        w45t, h.astype(bf16),
        dimension_numbers=(((1,), (1,)), ((), ())),
        preferred_element_type=f32)
    return jax.nn.sigmoid(logits[0:1, :] + bias[3:4, 0:1])          # (1, n)


def _disc_kernel(x_ref, lab_ref, w1i_ref, w1l_ref, w2_ref, w3_ref, w45t_ref,
                 bias_ref, out_ref):
    """One batch tile of the full 5-layer MLP; weights stay VMEM-resident."""
    out_ref[...] = _mlp_math(x_ref[...], lab_ref[...],
                             w1i_ref[...], w1l_ref[...], w2_ref[...],
                             w3_ref[...], w45t_ref[...], bias_ref[...])


@jax.jit
def discriminator_forward(image, labels, kparams):
    """image: (B, 1, 28, 28) f32, labels: (B,) int -> (B, 1) f32 in [0, 1]."""
    B = image.shape[0]
    if B <= 128:
        tile_b = _round_up(max(B, 1), 16)          # single tile, bf16-sublane aligned
    else:
        # >=2 tiles keeps both v7x TensorCores busy; each tile is MXU/lane aligned.
        tile_b = min(MAX_TILE_B, _round_up(pl.cdiv(B, 2), 128))
    n_tiles = pl.cdiv(B, tile_b)
    b_pad = n_tiles * tile_b

    x = image.reshape(B, IMG_FEATS)                # stays f32; bf16 cast happens in-kernel
    lab = labels.astype(jnp.int32).reshape(B, 1)
    if b_pad != B:                                 # batch-only pad; no-op when B divides tile
        x = jnp.pad(x, ((0, b_pad - B), (0, 0)))
        lab = jnp.pad(lab, ((0, b_pad - B), (0, 0)))

    def batch_spec(width):                         # streamed per batch tile
        return pl.BlockSpec((tile_b, width), lambda i: (i, 0))

    def resident(shape):                           # VMEM-resident across tiles
        return pl.BlockSpec(shape, lambda i: (0, 0))

    flops = 2 * b_pad * (IMG_FEATS * HIDDENS[0] + CLASSES_PAD * HIDDENS[0]
                         + HIDDENS[0] * HIDDENS[1] + HIDDENS[1] * HIDDENS[2]
                         + HIDDENS[2] * OUT_PAD)
    weight_bytes = sum(int(v.size) * v.dtype.itemsize for v in kparams.values())
    cost = pl.CostEstimate(
        flops=int(flops),
        transcendentals=int(b_pad),                                   # one sigmoid per row
        bytes_accessed=int(x.size) * 4 + int(lab.size) * 4 + int(b_pad) * 4 + weight_bytes)

    out_row = pl.pallas_call(
        _disc_kernel,
        out_shape=jax.ShapeDtypeStruct((1, b_pad), jnp.float32),      # lane-dense output row
        grid=(n_tiles,),
        in_specs=[
            batch_spec(IMG_FEATS),                   # x (f32, streamed)
            batch_spec(1),                           # labels (int32)
            resident((IMG_FEATS, HIDDENS[0])),       # w1 image rows (bf16)
            resident((CLASSES_PAD, HIDDENS[0])),     # w1 label rows (embedding folded in)
            resident((HIDDENS[0], HIDDENS[1])),      # w2
            resident((HIDDENS[1], HIDDENS[2])),      # w3
            resident((OUT_PAD, HIDDENS[2])),         # (w4 @ w5)^T composed head
            resident((8, HIDDENS[0])),               # packed biases (f32)
        ],
        out_specs=pl.BlockSpec((1, tile_b), lambda i: (0, i)),
        compiler_params=pltpu.CompilerParams(
            dimension_semantics=("parallel",),       # megacore batch sharding (v7x)
            vmem_limit_bytes=32 << 20),
        cost_estimate=cost,
    )(x, lab, kparams["w1i"], kparams["w1l"], kparams["w2"], kparams["w3"],
      kparams["w45t"], kparams["bias"])

    return out_row[0, :B, None]                      # (B, 1)


def _reference_forward(image, labels, kparams):
    """Pure-JAX mirror of the kernel math (correctness check)."""
    B = image.shape[0]
    x = image.reshape(B, IMG_FEATS)
    lab = labels.astype(jnp.int32).reshape(B, 1)
    row = _mlp_math(x, lab, kparams["w1i"], kparams["w1l"], kparams["w2"],
                    kparams["w3"], kparams["w45t"], kparams["bias"])
    return row[0, :, None]                           # (B, 1)


def init_params(seed=0):
    """PyTorch-style init, then pre-compose / pad / cast for the kernel."""
    key = jax.random.PRNGKey(seed)
    keys = jax.random.split(key, 11)

    emb = jax.random.normal(keys[0], (CLASSES, CLASSES), jnp.float32)  # nn.Embedding

    dims = [(CLASSES + IMG_FEATS, HIDDENS[0]),
            (HIDDENS[0], HIDDENS[1]),
            (HIDDENS[1], HIDDENS[2]),
            (HIDDENS[2], HIDDENS[3]),
            (HIDDENS[3], 1)]
    raw_w, raw_b = [], []
    for li, (din, dout) in enumerate(dims):
        bound = 1.0 / (din ** 0.5)                   # nn.Linear default init
        raw_w.append(jax.random.uniform(keys[2 * li + 1], (din, dout),
                                        jnp.float32, minval=-bound, maxval=bound))
        raw_b.append(jax.random.uniform(keys[2 * li + 2], (1, dout),
                                        jnp.float32, minval=-bound, maxval=bound))
    w1, w2, w3, w4, w5 = raw_w
    b1, b2, b3, b4, b5 = raw_b

    # Layer-1 split: image rows kept at 784 (kernel consumes the unpadded image);
    # label rows pre-composed with the embedding table so the per-sample gather
    # becomes a one-hot matmul.
    w1_img = w1[:IMG_FEATS]                                          # (784, 1024)
    w1_lab = jnp.zeros((CLASSES_PAD, HIDDENS[0]), jnp.float32
                       ).at[:CLASSES].set(emb @ w1[IMG_FEATS:])

    # Layers 4+5 pre-composed (layer 4 has no activation -> exact), stored
    # TRANSPOSED so the final matmul emits a lane-dense (1, tile_b) row.
    w45 = w4 @ w5                                                    # (256, 1)
    w45t = jnp.zeros((OUT_PAD, HIDDENS[2]), jnp.float32).at[0, :].set(w45[:, 0])
    b45 = (b4 @ w5 + b5)[0, 0]                                       # scalar

    # Pack all biases into one (8, 1024) f32 slab -> single DMA.
    bias = jnp.zeros((8, HIDDENS[0]), jnp.float32)
    bias = bias.at[0, :HIDDENS[0]].set(b1[0])
    bias = bias.at[1, :HIDDENS[1]].set(b2[0])
    bias = bias.at[2, :HIDDENS[2]].set(b3[0])
    bias = bias.at[3, 0].set(b45)

    bf16 = jnp.bfloat16
    return {
        "w1i": w1_img.astype(bf16),
        "w1l": w1_lab.astype(bf16),
        "w2": w2.astype(bf16),
        "w3": w3.astype(bf16),
        "w45t": w45t.astype(bf16),
        "bias": bias,                        # f32 (tiny)
    }


if __name__ == "__main__":
    key = jax.random.PRNGKey(0)
    k_img, k_lab = jax.random.split(key)
    B = 4
    image = jax.random.normal(k_img, (B, CHANNELS, IMG_SIZE, IMG_SIZE), jnp.float32)
    labels = jax.random.randint(k_lab, (B,), 0, CLASSES, jnp.int32)

    params = init_params(seed=0)
    out = jax.block_until_ready(discriminator_forward(image, labels, params))

    assert out.shape == (B, 1), out.shape
    assert bool(jnp.all((out >= 0.0) & (out <= 1.0)))

    ref = jax.block_until_ready(_reference_forward(image, labels, params))
    assert bool(jnp.allclose(out, ref, atol=5e-3, rtol=0.0)), (out, ref)
    print("KERNEL_OK")
</pallas_src>

<mosaic_0001>
module attributes {stable_mosaic.version = 11 : i64} {
  func.func @_disc_kernel(%arg0: i32, %arg1: memref<16x784xf32, #tpu.memory_space<vmem>>, %arg2: memref<16x1xi32, #tpu.memory_space<vmem>>, %arg3: memref<784x1024xbf16, #tpu.memory_space<vmem>>, %arg4: memref<128x1024xbf16, #tpu.memory_space<vmem>>, %arg5: memref<1024x512xbf16, #tpu.memory_space<vmem>>, %arg6: memref<512x256xbf16, #tpu.memory_space<vmem>>, %arg7: memref<128x256xbf16, #tpu.memory_space<vmem>>, %arg8: memref<8x1024xf32, #tpu.memory_space<vmem>>, %arg9: memref<1x16xf32, #tpu.memory_space<vmem>>) attributes {dimension_semantics = [#tpu.dimension_semantics<parallel>], iteration_bounds = array<i64: 1>, scalar_prefetch = 0 : i64, scratch_operands = 0 : i64, tpu.core_type = #tpu.core_type<tc>, window_params = [{transform_indices = @transform_0, window_bounds = array<i64: 16, 784>}, {transform_indices = @transform_1, window_bounds = array<i64: 16, 1>}, {pipeline_mode = #tpu.pipeline_mode<synchronous>, transform_indices = @transform_2, window_bounds = array<i64: 784, 1024>}, {pipeline_mode = #tpu.pipeline_mode<synchronous>, transform_indices = @transform_3, window_bounds = array<i64: 128, 1024>}, {pipeline_mode = #tpu.pipeline_mode<synchronous>, transform_indices = @transform_4, window_bounds = array<i64: 1024, 512>}, {pipeline_mode = #tpu.pipeline_mode<synchronous>, transform_indices = @transform_5, window_bounds = array<i64: 512, 256>}, {pipeline_mode = #tpu.pipeline_mode<synchronous>, transform_indices = @transform_6, window_bounds = array<i64: 128, 256>}, {pipeline_mode = #tpu.pipeline_mode<synchronous>, transform_indices = @transform_7, window_bounds = array<i64: 8, 1024>}, {transform_indices = @transform_8, window_bounds = array<i64: 1, 16>}]} {
    %c0 = arith.constant 0 : index
    %c0_0 = arith.constant 0 : index
    %0 = vector.load %arg1[%c0, %c0_0] : memref<16x784xf32, #tpu.memory_space<vmem>>, vector<16x784xf32>
    %c0_1 = arith.constant 0 : index
    %c0_2 = arith.constant 0 : index
    %1 = vector.load %arg2[%c0_1, %c0_2] : memref<16x1xi32, #tpu.memory_space<vmem>>, vector<16x1xi32>
    %c0_3 = arith.constant 0 : index
    %c0_4 = arith.constant 0 : index
    %2 = vector.load %arg3[%c0_3, %c0_4] : memref<784x1024xbf16, #tpu.memory_space<vmem>>, vector<784x1024xbf16>
    %c0_5 = arith.constant 0 : index
    %c0_6 = arith.constant 0 : index
    %3 = vector.load %arg4[%c0_5, %c0_6] : memref<128x1024xbf16, #tpu.memory_space<vmem>>, vector<128x1024xbf16>
    %c0_7 = arith.constant 0 : index
    %c0_8 = arith.constant 0 : index
    %4 = vector.load %arg5[%c0_7, %c0_8] : memref<1024x512xbf16, #tpu.memory_space<vmem>>, vector<1024x512xbf16>
    %c0_9 = arith.constant 0 : index
    %c0_10 = arith.constant 0 : index
    %5 = vector.load %arg6[%c0_9, %c0_10] : memref<512x256xbf16, #tpu.memory_space<vmem>>, vector<512x256xbf16>
    %c0_11 = arith.constant 0 : index
    %c0_12 = arith.constant 0 : index
    %6 = vector.load %arg7[%c0_11, %c0_12] : memref<128x256xbf16, #tpu.memory_space<vmem>>, vector<128x256xbf16>
    %c0_13 = arith.constant 0 : index
    %c0_14 = arith.constant 0 : index
    %7 = vector.load %arg8[%c0_13, %c0_14] : memref<8x1024xf32, #tpu.memory_space<vmem>>, vector<8x1024xf32>
    %8 = arith.truncf %0 : vector<16x784xf32> to vector<16x784xbf16>
    %9 = tpu.iota {dimensions = array<i32: 1>} : vector<16x128xi32>
    %10 = vector.broadcast %1 : vector<16x1xi32> to vector<16x128xi32>
    %11 = arith.cmpi eq, %10, %9 : vector<16x128xi32>
    %12 = arith.extui %11 : vector<16x128xi1> to vector<16x128xi32>
    %13 = arith.sitofp %12 : vector<16x128xi32> to vector<16x128xf32>
    %14 = arith.truncf %13 : vector<16x128xf32> to vector<16x128xbf16>
    %cst = arith.constant dense<0.000000e+00> : vector<16x1024xf32>
    %15 = tpu.matmul %8, %2, %cst {dimension_numbers = #tpu.dot_dimension_numbers<[1], [0], [0], [1], [0, 0, 1, 1], [], []>} : vector<16x784xbf16>, vector<784x1024xbf16>, vector<16x1024xf32> -> vector<16x1024xf32>
    %cst_15 = arith.constant dense<0.000000e+00> : vector<16x1024xf32>
    %16 = tpu.matmul %14, %3, %cst_15 {dimension_numbers = #tpu.dot_dimension_numbers<[1], [0], [0], [1], [0, 0, 1, 1], [], []>} : vector<16x128xbf16>, vector<128x1024xbf16>, vector<16x1024xf32> -> vector<16x1024xf32>
    %17 = arith.addf %15, %16 : vector<16x1024xf32>
    %18 = vector.extract_strided_slice %7 {offsets = [0, 0], sizes = [1, 1024], strides = [1, 1]} : vector<8x1024xf32> to vector<1x1024xf32>
    %19 = vector.broadcast %18 : vector<1x1024xf32> to vector<16x1024xf32>
    %20 = arith.addf %17, %19 : vector<16x1024xf32>
    %cst_16 = arith.constant 0.000000e+00 : f32
    %21 = vector.broadcast %cst_16 : f32 to vector<16x1024xf32>
    %22 = arith.cmpf oge, %20, %21 : vector<16x1024xf32>
    %cst_17 = arith.constant 2.000000e-01 : f32
    %23 = vector.broadcast %cst_17 : f32 to vector<16x1024xf32>
    %24 = arith.mulf %23, %20 : vector<16x1024xf32>
    %25 = arith.select %22, %20, %24 : vector<16x1024xi1>, vector<16x1024xf32>
    %26 = arith.truncf %25 : vector<16x1024xf32> to vector<16x1024xbf16>
    %cst_18 = arith.constant dense<0.000000e+00> : vector<16x512xf32>
    %27 = tpu.matmul %26, %4, %cst_18 {dimension_numbers = #tpu.dot_dimension_numbers<[1], [0], [0], [1], [0, 0, 1, 1], [], []>} : vector<16x1024xbf16>, vector<1024x512xbf16>, vector<16x512xf32> -> vector<16x512xf32>
    %28 = vector.extract_strided_slice %7 {offsets = [1, 0], sizes = [1, 512], strides = [1, 1]} : vector<8x1024xf32> to vector<1x512xf32>
    %29 = vector.broadcast %28 : vector<1x512xf32> to vector<16x512xf32>
    %30 = arith.addf %27, %29 : vector<16x512xf32>
    %cst_19 = arith.constant 0.000000e+00 : f32
    %31 = vector.broadcast %cst_19 : f32 to vector<16x512xf32>
    %32 = arith.cmpf oge, %30, %31 : vector<16x512xf32>
    %cst_20 = arith.constant 2.000000e-01 : f32
    %33 = vector.broadcast %cst_20 : f32 to vector<16x512xf32>
    %34 = arith.mulf %33, %30 : vector<16x512xf32>
    %35 = arith.select %32, %30, %34 : vector<16x512xi1>, vector<16x512xf32>
    %36 = arith.truncf %35 : vector<16x512xf32> to vector<16x512xbf16>
    %cst_21 = arith.constant dense<0.000000e+00> : vector<16x256xf32>
    %37 = tpu.matmul %36, %5, %cst_21 {dimension_numbers = #tpu.dot_dimension_numbers<[1], [0], [0], [1], [0, 0, 1, 1], [], []>} : vector<16x512xbf16>, vector<512x256xbf16>, vector<16x256xf32> -> vector<16x256xf32>
    %38 = vector.extract_strided_slice %7 {offsets = [2, 0], sizes = [1, 256], strides = [1, 1]} : vector<8x1024xf32> to vector<1x256xf32>
    %39 = vector.broadcast %38 : vector<1x256xf32> to vector<16x256xf32>
    %40 = arith.addf %37, %39 : vector<16x256xf32>
    %cst_22 = arith.constant 0.000000e+00 : f32
    %41 = vector.broadcast %cst_22 : f32 to vector<16x256xf32>
    %42 = arith.cmpf oge, %40, %41 : vector<16x256xf32>
    %cst_23 = arith.constant 2.000000e-01 : f32
    %43 = vector.broadcast %cst_23 : f32 to vector<16x256xf32>
    %44 = arith.mulf %43, %40 : vector<16x256xf32>
    %45 = arith.select %42, %40, %44 : vector<16x256xi1>, vector<16x256xf32>
    %46 = arith.truncf %45 : vector<16x256xf32> to vector<16x256xbf16>
    %cst_24 = arith.constant dense<0.000000e+00> : vector<128x16xf32>
    %47 = tpu.matmul %6, %46, %cst_24 {dimension_numbers = #tpu.dot_dimension_numbers<[1], [1], [0], [0], [0, 0, 1, 0], [], []>} : vector<128x256xbf16>, vector<16x256xbf16>, vector<128x16xf32> -> vector<128x16xf32>
    %48 = vector.extract_strided_slice %47 {offsets = [0, 0], sizes = [1, 16], strides = [1, 1]} : vector<128x16xf32> to vector<1x16xf32>
    %49 = vector.extract_strided_slice %7 {offsets = [3, 0], sizes = [1, 1], strides = [1, 1]} : vector<8x1024xf32> to vector<1x1xf32>
    %50 = vector.broadcast %49 : vector<1x1xf32> to vector<1x16xf32>
    %51 = arith.addf %48, %50 : vector<1x16xf32>
    %52 = arith.negf %51 : vector<1x16xf32>
    %53 = math.exp %52 : vector<1x16xf32>
    %cst_25 = arith.constant 1.000000e+00 : f32
    %54 = vector.broadcast %cst_25 : f32 to vector<1x16xf32>
    %55 = arith.addf %54, %53 : vector<1x16xf32>
    %56 = arith.divf %54, %55 : vector<1x16xf32>
    %c0_26 = arith.constant 0 : index
    %c0_27 = arith.constant 0 : index
    %57 = vector.load %arg9[%c0_26, %c0_27] : memref<1x16xf32, #tpu.memory_space<vmem>>, vector<1x16xf32>
    tpu.vector_store %arg9[%c0_26, %c0_27], %56 {strides = array<i32>} : memref<1x16xf32, #tpu.memory_space<vmem>>, vector<1x16xf32>,
    return
  }
  func.func @transform_0(%arg0: i32) -> (i32, i32) {
    %c0_i32 = arith.constant 0 : i32
    %c0_i32_0 = arith.constant 0 : i32
    return %arg0, %c0_i32 : i32, i32
  }
  func.func @transform_1(%arg0: i32) -> (i32, i32) {
    %c0_i32 = arith.constant 0 : i32
    %c0_i32_0 = arith.constant 0 : i32
    return %arg0, %c0_i32 : i32, i32
  }
  func.func @transform_2(%arg0: i32) -> (i32, i32) {
    %c0_i32 = arith.constant 0 : i32
    %c0_i32_0 = arith.constant 0 : i32
    %c0_i32_1 = arith.constant 0 : i32
    return %c0_i32, %c0_i32_0 : i32, i32
  }
  func.func @transform_3(%arg0: i32) -> (i32, i32) {
    %c0_i32 = arith.constant 0 : i32
    %c0_i32_0 = arith.constant 0 : i32
    %c0_i32_1 = arith.constant 0 : i32
    return %c0_i32, %c0_i32_0 : i32, i32
  }
  func.func @transform_4(%arg0: i32) -> (i32, i32) {
    %c0_i32 = arith.constant 0 : i32
    %c0_i32_0 = arith.constant 0 : i32
    %c0_i32_1 = arith.constant 0 : i32
    return %c0_i32, %c0_i32_0 : i32, i32
  }
  func.func @transform_5(%arg0: i32) -> (i32, i32) {
    %c0_i32 = arith.constant 0 : i32
    %c0_i32_0 = arith.constant 0 : i32
    %c0_i32_1 = arith.constant 0 : i32
    return %c0_i32, %c0_i32_0 : i32, i32
  }
  func.func @transform_6(%arg0: i32) -> (i32, i32) {
    %c0_i32 = arith.constant 0 : i32
    %c0_i32_0 = arith.constant 0 : i32
    %c0_i32_1 = arith.constant 0 : i32
    return %c0_i32, %c0_i32_0 : i32, i32
  }
  func.func @transform_7(%arg0: i32) -> (i32, i32) {
    %c0_i32 = arith.constant 0 : i32
    %c0_i32_0 = arith.constant 0 : i32
    %c0_i32_1 = arith.constant 0 : i32
    return %c0_i32, %c0_i32_0 : i32, i32
  }
  func.func @transform_8(%arg0: i32) -> (i32, i32) {
    %c0_i32 = arith.constant 0 : i32
    %c0_i32_0 = arith.constant 0 : i32
    return %c0_i32, %arg0 : i32, i32
  }
}

</mosaic_0001>

<bundles_post_ra>
// kernel: discriminator_forward.1
= control target key start
LH: loop header
LB: loop body
LE: loop exit
PB: predicated region body
PF: predicated region fallthrough
CT: control target
= control target key end

     0   :  { %13 = vsyncpa [#allocation3], 0  ;;  %s8425_s0 = inlined_call_operand.vmem [shape: f32[16,784], index: 0, kind: input, shape index: {}]   ;;  %s8426_s1 = inlined_call_operand.vmem [shape: s32[16,1], index: 1, kind: input, shape index: {}]   ;;  %s8427_s2 = inlined_call_operand.hbm [shape: bf16[784,1024], index: 2, kind: input, shape index: {}]   ;;  %s8428_s3 = inlined_call_operand.hbm [shape: bf16[128,1024], index: 3, kind: input, shape index: {}]   ;;  %s8429_s4 = inlined_call_operand.hbm [shape: bf16[1024,512], index: 4, kind: input, shape index: {}]   ;;  %s8430_s5 = inlined_call_operand.hbm [shape: bf16[512,256], index: 5, kind: input, shape index: {}]   ;;  %s8431_s6 = inlined_call_operand.hbm [shape: bf16[128,256], index: 6, kind: input, shape index: {}]   ;;  %s8432_s7 = inlined_call_operand.hbm [shape: f32[8,1024], index: 7, kind: input, shape index: {}]   ;;  %s8433_s8 = inlined_call_operand.vmem [shape: f32[1,16], index: 8, kind: output, shape index: {}]  }
   0x1   :  { %14 = vsyncpa [#allocation5], 0 }
   0x2   :  { %15 = vsyncpa [#allocation8], 0 }
   0x3   :  { %16 = vsyncpa [#allocation11], 0  ;;  %s8056_s27 = smov [#allocation4]   ;;  %s8057_s29 = smov [#allocation7]  }
   0x4   :  { %s38_s28 = sshll.u32 %s8056_s27, 4  ;;  %s62_s30 = sshll.u32 %s8057_s29, 4  ;;  %s39_s28 = int_to_ptr.vmem [resolvable:$true] %s38_s28  ;;  %s8115_s30 = int_to_ptr.vmem [resolvable:$true] %s62_s30 }
   0x5   :  { %s7916_s11 = scalar_lea.hbm %s8428_s3, 8192 }
   0x6   :  { %p7917_p0 = scmp.ne.s32.totalorder %s8428_s3, %s7916_s11  ;;  %p7920_p1 = scmp.lt.u32.totalorder %s7916_s11, %s8428_s3 }
   0x8   :  { %p7922_p2 = pnand %p7920_p1, %p7917_p0 }
   0xa   :  { %7925 = shalt.err (!%p7922_p2)
}
   0xb   :  { %s7926_s16 = scalar_lea.vmem %s39_s28, 8192  ;;  %p7931_p4 = scmp.lt.s32.totalorder %s39_s28, %s39_s28 }
   0xc   :  { %p7927_p3 = scmp.ne.s32.totalorder %s39_s28, %s7926_s16  ;;  %p7932_p5 = scmp.lt.s32.totalorder %s7926_s16, %s7926_s16 }
   0xe   :  { %p7933_p6 = por %p7932_p5, %p7931_p4 }
  0x10   :  { %p7934_p7 = pnand %p7933_p6, %p7927_p3 }
  0x12   :  { %7937 = shalt.err (!%p7934_p7)
}
  0x13   :  { %s8058_s17 = smov 512   ;;  %s8059_s18 = smov 32  }
  0x14   :  { %44 = dma.hbm_to_vmem [thread:$0]  %s8428_s3, 8192, %s39_s28, [#allocation5], %s8058_s17, %s8058_s17, %s8059_s18  }
  0x15   :  { %s7938_s23 = scalar_lea.hbm %s8430_s5, 8192 }
  0x16   :  { %p7939_p8 = scmp.ne.s32.totalorder %s8430_s5, %s7938_s23  ;;  %p7942_p9 = scmp.lt.u32.totalorder %s7938_s23, %s8430_s5 }
  0x18   :  { %p7944_p10 = pnand %p7942_p9, %p7939_p8 }
  0x1a   :  { %7947 = shalt.err (!%p7944_p10)
}
  0x1b   :  { %s7948_s29 = scalar_lea.vmem %s8115_s30, 8192  ;;  %p7953_p12 = scmp.lt.s32.totalorder %s8115_s30, %s8115_s30 }
  0x1c   :  { %p7949_p11 = scmp.ne.s32.totalorder %s8115_s30, %s7948_s29  ;;  %p7954_p13 = scmp.lt.s32.totalorder %s7948_s29, %s7948_s29 }
  0x1e   :  { %p7955_p0 = por %p7954_p13, %p7953_p12 }
  0x20   :  { %p7956_p1 = pnand %p7955_p0, %p7949_p11 }
  0x22   :  { %7959 = shalt.err (!%p7956_p1)
}
  0x23   :  { %s8060_s3 = smov 128   ;;  %s8061_s28 = smov 8  }
  0x24   :  { %68 = dma.hbm_to_vmem [thread:$0]  %s8430_s5, 8192, %s8115_s30, [#allocation8], %s8060_s3, %s8060_s3, %s8061_s28  }
  0x25   :  { %s8062_s11 = smov [#allocation2]   ;;  %s8063_s13 = smov [#allocation6]  }
  0x26   :  { %s26_s12 = sshll.u32 %s8062_s11, 4  ;;  %s50_s14 = sshll.u32 %s8063_s13, 4  ;;  %s27_s12 = int_to_ptr.vmem [resolvable:$true] %s26_s12  ;;  %s8152_s14 = int_to_ptr.vmem [resolvable:$true] %s50_s14 }
  0x27   :  { %s7960_s19 = scalar_lea.hbm %s8427_s2, 50176 }
  0x28   :  { %p7961_p2 = scmp.ne.s32.totalorder %s8427_s2, %s7960_s19  ;;  %p7964_p3 = scmp.lt.u32.totalorder %s7960_s19, %s8427_s2 }
  0x2a   :  { %p7966_p4 = pnand %p7964_p3, %p7961_p2 }
  0x2c   :  { %7969 = shalt.err (!%p7966_p4)
}
  0x2d   :  { %s7970_s5 = scalar_lea.vmem %s27_s12, 50176  ;;  %p7975_p6 = scmp.lt.s32.totalorder %s27_s12, %s27_s12 }
  0x2e   :  { %p7971_p5 = scmp.ne.s32.totalorder %s27_s12, %s7970_s5  ;;  %p7976_p7 = scmp.lt.s32.totalorder %s7970_s5, %s7970_s5 }
  0x30   :  { %p7977_p8 = por %p7976_p7, %p7975_p6 }
  0x32   :  { %p7978_p9 = pnand %p7977_p8, %p7971_p5 }
  0x34   :  { %7981 = shalt.err (!%p7978_p9)
}
  0x35   :  { %32 = dma.hbm_to_vmem [thread:$0]  %s8427_s2, 50176, %s27_s12, [#allocation3], %s8058_s17, %s8058_s17, %s8059_s18  }
  0x36   :  { %s7982_s27 = scalar_lea.hbm %s8429_s4, 32768 }
  0x37   :  { %p7983_p10 = scmp.ne.s32.totalorder %s8429_s4, %s7982_s27  ;;  %p7986_p11 = scmp.lt.u32.totalorder %s7982_s27, %s8429_s4 }
  0x39   :  { %p7988_p12 = pnand %p7986_p11, %p7983_p10 }
  0x3b   :  { %7991 = shalt.err (!%p7988_p12)
}
  0x3c   :  { %s7992_s13 = scalar_lea.vmem %s8152_s14, 32768  ;;  %p7997_p0 = scmp.lt.s32.totalorder %s8152_s14, %s8152_s14 }
  0x3d   :  { %p7993_p13 = scmp.ne.s32.totalorder %s8152_s14, %s7992_s13  ;;  %p7998_p1 = scmp.lt.s32.totalorder %s7992_s13, %s7992_s13 }
  0x3f   :  { %p7999_p2 = por %p7998_p1, %p7997_p0 }
  0x41   :  { %p8000_p3 = pnand %p7999_p2, %p7993_p13 }
  0x43   :  { %8003 = shalt.err (!%p8000_p3)
}
  0x44   :  { %s8064_s2 = smov 256   ;;  %s8065_s17 = smov 16  }
  0x45   :  { %56 = dma.hbm_to_vmem [thread:$0]  %s8429_s4, 32768, %s8152_s14, [#allocation5], %s8064_s2, %s8064_s2, %s8065_s17  }
  0x46   :  { %s8066_s15 = smov [#allocation9]   ;;  %s8067_s19 = smov [#allocation10]  }
  0x47   :  { %s74_s16 = sshll.u32 %s8066_s15, 4  ;;  %s87_s20 = sshll.u32 %s8067_s19, 4  ;;  %s75_s16 = int_to_ptr.vmem [resolvable:$true] %s74_s16  ;;  %s88_s20 = int_to_ptr.vmem [resolvable:$true] %s87_s20 }
  0x48   :  { %s8004_s23 = scalar_lea.hbm %s8431_s6, 2048 }
  0x49   :  { %p8005_p4 = scmp.ne.s32.totalorder %s8431_s6, %s8004_s23  ;;  %p8008_p5 = scmp.lt.u32.totalorder %s8004_s23, %s8431_s6 }
  0x4b   :  { %p8010_p6 = pnand %p8008_p5, %p8005_p4 }
  0x4d   :  { %8013 = shalt.err (!%p8010_p6)
}
  0x4e   :  { %s8014_s4 = scalar_lea.vmem %s75_s16, 2048  ;;  %p8019_p8 = scmp.lt.s32.totalorder %s75_s16, %s75_s16 }
  0x4f   :  { %p8015_p7 = scmp.ne.s32.totalorder %s75_s16, %s8014_s4  ;;  %p8020_p9 = scmp.lt.s32.totalorder %s8014_s4, %s8014_s4 }
  0x51   :  { %p8021_p10 = por %p8020_p9, %p8019_p8 }
  0x53   :  { %p8022_p11 = pnand %p8021_p10, %p8015_p7 }
  0x55   :  { %8025 = shalt.err (!%p8022_p11)
}
  0x56   :  { %80 = dma.hbm_to_vmem [thread:$0]  %s8431_s6, 2048, %s75_s16, [#allocation8], %s8060_s3, %s8060_s3, %s8061_s28  }
  0x57   :  { %s8026_s9 = scalar_lea.hbm %s8432_s7, 1024 }
  0x58   :  { %p8027_p12 = scmp.ne.s32.totalorder %s8432_s7, %s8026_s9  ;;  %p8030_p13 = scmp.lt.u32.totalorder %s8026_s9, %s8432_s7 }
  0x5a   :  { %p8032_p0 = pnand %p8030_p13, %p8027_p12 }
  0x5c   :  { %8035 = shalt.err (!%p8032_p0)
}
  0x5d   :  { %s8036_s17 = scalar_lea.vmem %s88_s20, 1024  ;;  %p8041_p2 = scmp.lt.s32.totalorder %s88_s20, %s88_s20 }
  0x5e   :  { %p8037_p1 = scmp.ne.s32.totalorder %s88_s20, %s8036_s17  ;;  %p8042_p3 = scmp.lt.s32.totalorder %s8036_s17, %s8036_s17 }
  0x60   :  { %p8043_p4 = por %p8042_p3, %p8041_p2 }
  0x62   :  { %p8044_p5 = pnand %p8043_p4, %p8037_p1 }
  0x64   :  { %8047 = shalt.err (!%p8044_p5)
}
  0x65   :  { %90 = dma.hbm_to_vmem [thread:$0]  %s8432_s7, 1024, %s88_s20, [#allocation11]  }
  0x66   :  { %8048 = dma.done.wait [#allocation3], 50176  }
  0x67   :  { %8049 = vsyncadd [#allocation3], 4294917120 }
  0x68   :  { %8050 = dma.done.wait [#allocation5], 40960  }
  0x69   :  { %8051 = vsyncadd [#allocation5], 4294926336 }
  0x6a   :  { %8052 = dma.done.wait [#allocation8], 10240  }
  0x6b   :  { %8053 = vsyncadd [#allocation8], 4294957056 }
  0x6c   :  { %8054 = dma.done.wait [#allocation11], 1024  }
  0x6d   :  { %8055 = vsyncadd [#allocation11], 4294966272  ;;  %v8068_v0 = vmov 0   ;;  %v124_v1 = vld [vmem:[%s8426_s1] sm:$0xff]  ;;  %v125_v2 = vld [vmem:[%s8426_s1 + $0x8] sm:$0xff]  ;;  %vm3400_vm3 = vcmask 130048  }
  0x6e   :  { %7402 = vset.pattern.permute.xlu0 %v8068_v0  ;;  %1300 = vmatprep.mubr.bf16.mxu1 %v8068_v0  ;;  %v518_v3 = vld [vmem:[#allocation4] sm:$0xff]  ;;  %v520_v5 = vld [vmem:[#allocation4 + $0x10] sm:$0xff]  ;;  %v8223_v36 = vld [vmem:[#allocation4 + $0x8] sm:$0xff] }
  0x6f   :  { %1386 = vmatprep.mubr.bf16.mxu0 %v8068_v0  ;;  %7403 = vset.pattern.permute.xlu1 %v8068_v0  ;;  %v522_v4 = vld [vmem:[#allocation4 + $0x20] sm:$0xff]  ;;  %v524_v6 = vld [vmem:[#allocation4 + $0x30] sm:$0xff]  ;;  %v8225_v37 = vld [vmem:[#allocation4 + $0x28] sm:$0xff] }
  0x70   :  { %936 = vperm.xlu0 %7402, %v124_v1   ;;  %v6480_v7 = vcombine.high %v518_v3, %v522_v4  ;;  %v6484_v8 = vcombine.high %v520_v5, %v524_v6  ;;  %v6479_v9 = vcombine.low %v518_v3, %v522_v4  ;;  %v6483_v10 = vcombine.low %v520_v5, %v524_v6  ;;  %v526_v11 = vld [vmem:[#allocation4 + $0x40] sm:$0xff]  ;;  %v528_v13 = vld [vmem:[#allocation4 + $0x50] sm:$0xff] }
  0x71   :  { %v530_v12 = vld [vmem:[#allocation4 + $0x60] sm:$0xff]  ;;  %v532_v15 = vld [vmem:[#allocation4 + $0x70] sm:$0xff]  ;;  %v6481_v39 = vcombine.low %v8223_v36, %v8225_v37 }
  0x72   :  { %v6488_v14 = vcombine.high %v526_v11, %v530_v12  ;;  %v534_v16 = vld [vmem:[#allocation4 + $0x80] sm:$0xff]  ;;  %1268 = vmatprep.subr.bf16.mxu1 %v6480_v7  ;;  %1354 = vmatprep.subr.bf16.mxu0 %v6484_v8  ;;  %v6492_v18 = vcombine.high %v528_v13, %v532_v15  ;;  %v536_v19 = vld [vmem:[#allocation4 + $0x90] sm:$0xff]  ;;  %v6487_v21 = vcombine.low %v526_v11, %v530_v12  ;;  %v933_v12 = vlaneseq }
  0x73   :  { %v538_v17 = vld [vmem:[#allocation4 + $0xa0] sm:$0xff]  ;;  %v540_v20 = vld [vmem:[#allocation4 + $0xb0] sm:$0xff]  ;;  %1269 = vmatpush1.bf16.msra.mxu1 %v6479_v9  ;;  %1355 = vmatpush1.bf16.msra.mxu0 %v6483_v10  ;;  %v6491_v22 = vcombine.low %v528_v13, %v532_v15  ;;  %v6482_v10 = vcombine.high %v8223_v36, %v8225_v37  ;;  %v531_v15 = vld [vmem:[#allocation4 + $0x68] sm:$0xff] }
  0x74   :  { %939 = vperm.xlu0 %7402, %v125_v2   ;;  %1270 = vmatprep.subr.bf16.mxu1 %v6488_v14  ;;  %v6496_v23 = vcombine.high %v534_v16, %v538_v17  ;;  %v6500_v24 = vcombine.high %v536_v19, %v540_v20  ;;  %v542_v25 = vld [vmem:[#allocation4 + $0xc0] sm:$0xff]  ;;  %v544_v27 = vld [vmem:[#allocation4 + $0xd0] sm:$0xff]  ;;  %v6495_v29 = vcombine.low %v534_v16, %v538_v17  ;;  %v527_v14 = vld [vmem:[#allocation4 + $0x48] sm:$0xff] }
  0x75   :  { %1356 = vmatprep.subr.bf16.mxu0 %v6492_v18  ;;  %v546_v26 = vld [vmem:[#allocation4 + $0xe0] sm:$0xff]  ;;  %v548_v28 = vld [vmem:[#allocation4 + $0xf0] sm:$0xff]  ;;  %v6499_v30 = vcombine.low %v536_v19, %v540_v20  ;;  %v934_v18 = vand.u32 127, %v933_v12  ;;  %v111_v19 = vld [vmem:[%s8425_s0 + $0x8] sm:$0xff] }
  0x76   :  { %v6504_v31 = vcombine.high %v542_v25, %v546_v26  ;;  %v550_v32 = vld [vmem:[#allocation4 + $0x100] sm:$0xff]  ;;  %v6508_v34 = vcombine.high %v544_v27, %v548_v28  ;;  %v552_v35 = vld [vmem:[#allocation4 + $0x110] sm:$0xff]  ;;  %v6503_v42 = vcombine.low %v542_v25, %v546_v26  ;;  %v6507_v44 = vcombine.low %v544_v27, %v548_v28  ;;  %v539_v25 = vld [vmem:[#allocation4 + $0xa8] sm:$0xff] }
  0x77   :  { %1271 = vmatpush1.bf16.msra.mxu1 %v6487_v21  ;;  %1357 = vmatpush1.bf16.msra.mxu0 %v6491_v22  ;;  %v554_v33 = vld [vmem:[#allocation4 + $0x120] sm:$0xff]  ;;  %v556_v38 = vld [vmem:[#allocation4 + $0x130] sm:$0xff]  ;;  %v6490_v22 = vcombine.high %v527_v14, %v531_v15 }
  0x78   :  { %1272 = vmatprep.subr.bf16.mxu1 %v6496_v23  ;;  %1358 = vmatprep.subr.bf16.mxu0 %v6500_v24  ;;  %v8229_v40 = vld [vmem:[#allocation2] sm:$0xff]  ;;  %v6512_v45 = vcombine.high %v550_v32, %v554_v33  ;;  %v6516_v47 = vcombine.high %v552_v35, %v556_v38  ;;  %v560_v49 = vld [vmem:[#allocation4 + $0x150] sm:$0xff]  ;;  %v6511_v51 = vcombine.low %v550_v32, %v554_v33  ;;  %v535_v24 = vld [vmem:[#allocation4 + $0x88] sm:$0xff] }
  0x79   :  { %v8231_v41 = vld [vmem:[#allocation2 + $0x20] sm:$0xff]  ;;  %v564_v50 = vld [vmem:[#allocation4 + $0x170] sm:$0xff]  ;;  %v6515_v54 = vcombine.low %v552_v35, %v556_v38  ;;  %v543_v33 = vld [vmem:[#allocation4 + $0xc8] sm:$0xff]  ;;  %v6498_v38 = vcombine.high %v535_v24, %v539_v25  ;;  %v6497_v36 = vcombine.low %v535_v24, %v539_v25 }
  0x7a   :  { %v6551_v43 = vcombine.low %v8229_v40, %v8231_v41  ;;  %v558_v46 = vld [vmem:[#allocation4 + $0x140] sm:$0xff]  ;;  %v6524_v56 = vcombine.high %v560_v49, %v564_v50  ;;  %v568_v57 = vld [vmem:[#allocation4 + $0x190] sm:$0xff]  ;;  %v6523_v62 = vcombine.low %v560_v49, %v564_v50  ;;  %v6552_v11 = vcombine.high %v8229_v40, %v8231_v41  ;;  %v555_v40 = vld [vmem:[#allocation4 + $0x128] sm:$0xff] }
  0x7b   :  { %1273 = vmatpush1.bf16.msra.mxu1 %v6495_v29  ;;  %1359 = vmatpush1.bf16.msra.mxu0 %v6499_v30  ;;  %v562_v48 = vld [vmem:[#allocation4 + $0x160] sm:$0xff]  ;;  %v572_v58 = vld [vmem:[#allocation4 + $0x1b0] sm:$0xff]  ;;  %v8069_v30 = vmov 1.0|1.0   ;;  %v559_v49 = vld [vmem:[#allocation4 + $0x148] sm:$0xff] }
  0x7c   :  { %1274 = vmatprep.subr.bf16.mxu1 %v6504_v31  ;;  %1360 = vmatprep.subr.bf16.mxu0 %v6508_v34  ;;  %v566_v52 = vld [vmem:[#allocation4 + $0x180] sm:$0xff]  ;;  %v6520_v55 = vcombine.high %v558_v46, %v562_v48  ;;  %v6519_v59 = vcombine.low %v558_v46, %v562_v48  ;;  %v6532_v1 = vcombine.high %v568_v57, %v572_v58  ;;  %v576_v2 = vld [vmem:[#allocation4 + $0x1d0] sm:$0xff]  ;;  %v547_v34 = vld [vmem:[#allocation4 + $0xe8] sm:$0xff] }
  0x7d   :  { %v570_v53 = vld [vmem:[#allocation4 + $0x1a0] sm:$0xff]  ;;  %v580_v3 = vld [vmem:[#allocation4 + $0x1f0] sm:$0xff]  ;;  %v6531_v5 = vcombine.low %v568_v57, %v572_v58  ;;  %v6489_v31 = vcombine.low %v527_v14, %v531_v15  ;;  %v563_v50 = vld [vmem:[#allocation4 + $0x168] sm:$0xff] }
  0x7e   :  { %v574_v60 = vld [vmem:[#allocation4 + $0x1c0] sm:$0xff]  ;;  %v6528_v63 = vcombine.high %v566_v52, %v570_v53  ;;  %v6527_v4 = vcombine.low %v566_v52, %v570_v53  ;;  %v6540_v7 = vcombine.high %v576_v2, %v580_v3  ;;  %v6539_v9 = vcombine.low %v576_v2, %v580_v3  ;;  %v567_v57 = vld [vmem:[#allocation4 + $0x188] sm:$0xff] }
  0x7f   :  { %1275 = vmatpush1.bf16.msra.mxu1 %v6503_v42  ;;  %1361 = vmatpush1.bf16.msra.mxu0 %v6507_v44  ;;  %v578_v61 = vld [vmem:[#allocation4 + $0x1e0] sm:$0xff]  ;;  %v571_v58 = vld [vmem:[#allocation4 + $0x1a8] sm:$0xff] }
  0x80   :  { %1276 = vmatprep.subr.bf16.mxu1 %v6512_v45  ;;  %1362 = vmatprep.subr.bf16.mxu0 %v6516_v47  ;;  %v6536_v6 = vcombine.high %v574_v60, %v578_v61  ;;  %v6535_v8 = vcombine.low %v574_v60, %v578_v61  ;;  %v134_v16 = vld [vmem:[#allocation2 + $0x40] sm:$0xff]  ;;  %v6505_v47 = vcombine.low %v543_v33, %v547_v34  ;;  %v575_v2 = vld [vmem:[#allocation4 + $0x1c8] sm:$0xff] }
  0x81   :  { %v138_v17 = vld [vmem:[#allocation2 + $0x60] sm:$0xff]  ;;  %v6522_v60 = vcombine.high %v559_v49, %v563_v50  ;;  %v579_v3 = vld [vmem:[#allocation4 + $0x1e8] sm:$0xff] }
  0x82   :  { %v118_v20 = vld [vmem:[%s8425_s0 + $0x40] sm:$0xff]  ;;  %v6560_v23 = vcombine.high %v134_v16, %v138_v17  ;;  %v6559_v32 = vcombine.low %v134_v16, %v138_v17  ;;  %v6538_v14 = vcombine.high %v575_v2, %v579_v3  ;;  %v6537_v17 = vcombine.low %v575_v2, %v579_v3 }
  0x83   :  { %1277 = vmatpush1.bf16.msra.mxu1 %v6511_v51  ;;  %1363 = vmatpush1.bf16.msra.mxu0 %v6515_v54  ;;  %v142_v27 = vld [vmem:[#allocation2 + $0x80] sm:$0xff]  ;;  %v8250_v29 = vpack.c.bf16 %v118_v20, %v111_v19  ;;  %v529_v19 = vld [vmem:[#allocation4 + $0x58] sm:$0xff] }
  0x84   :  { %1278 = vmatprep.subr.bf16.mxu1 %v6520_v55  ;;  %1364 = vmatprep.subr.bf16.mxu0 %v6524_v56  ;;  %v146_v28 = vld [vmem:[#allocation2 + $0xa0] sm:$0xff]  ;;  %v533_v20 = vld [vmem:[#allocation4 + $0x78] sm:$0xff] }
  0x85   :  { %v150_v35 = vld [vmem:[#allocation2 + $0xc0] sm:$0xff]  ;;  %v6568_v42 = vcombine.high %v142_v27, %v146_v28  ;;  %v6567_v37 = vcombine.low %v142_v27, %v146_v28  ;;  %v537_v28 = vld [vmem:[#allocation4 + $0x98] sm:$0xff] }
  0x86   :  { %v154_v44 = vld [vmem:[#allocation2 + $0xe0] sm:$0xff] }
  0x87   :  { %1279 = vmatpush1.bf16.msra.mxu1 %v6519_v59  ;;  %1365 = vmatpush1.bf16.msra.mxu0 %v6523_v62  ;;  %v158_v41 = vld [vmem:[#allocation2 + $0x100] sm:$0xff]  ;;  %v6576_v45 = vcombine.high %v150_v35, %v154_v44  ;;  %v6575_v48 = vcombine.low %v150_v35, %v154_v44  ;;  %v545_v44 = vld [vmem:[#allocation4 + $0xd8] sm:$0xff] }
  0x88   :  { %1280 = vmatprep.subr.bf16.mxu1 %v6528_v63  ;;  %1366 = vmatprep.subr.bf16.mxu0 %v6532_v1  ;;  %v162_v46 = vld [vmem:[#allocation2 + $0x120] sm:$0xff]  ;;  %v6521_v63 = vcombine.low %v559_v49, %v563_v50 }
  0x89   :  { %v166_v51 = vld [vmem:[#allocation2 + $0x140] sm:$0xff]  ;;  %v6584_v53 = vcombine.high %v158_v41, %v162_v46  ;;  %v6583_v56 = vcombine.low %v158_v41, %v162_v46  ;;  %v553_v46 = vld [vmem:[#allocation4 + $0x118] sm:$0xff] }
  0x8a   :  { %v170_v54 = vld [vmem:[#allocation2 + $0x160] sm:$0xff] }
  0x8b   :  { %1281 = vmatpush1.bf16.msra.mxu1 %v6527_v4  ;;  %1367 = vmatpush1.bf16.msra.mxu0 %v6531_v5  ;;  %v174_v59 = vld [vmem:[#allocation2 + $0x180] sm:$0xff]  ;;  %v6592_v61 = vcombine.high %v166_v51, %v170_v54  ;;  %v6591_v1 = vcombine.low %v166_v51, %v170_v54  ;;  %v6530_v5 = vcombine.high %v567_v57, %v571_v58  ;;  %v561_v54 = vld [vmem:[#allocation4 + $0x158] sm:$0xff] }
  0x8c   :  { %1282 = vmatprep.subr.bf16.mxu1 %v6536_v6  ;;  %1368 = vmatprep.subr.bf16.mxu0 %v6540_v7  ;;  %v178_v62 = vld [vmem:[#allocation2 + $0x1a0] sm:$0xff] }
  0x8d   :  { %v182_v4 = vld [vmem:[#allocation2 + $0x1c0] sm:$0xff]  ;;  %v6600_v6 = vcombine.high %v174_v59, %v178_v62 }
  0x8e   :  { %v186_v7 = vld [vmem:[#allocation2 + $0x1e0] sm:$0xff] }
  0x8f   :  { %1283 = vmatpush1.bf16.msra.mxu1 %v6535_v8  ;;  %1369 = vmatpush1.bf16.msra.mxu0 %v6539_v9  ;;  %v6529_v8 = vcombine.low %v567_v57, %v571_v58  ;;  %v6599_v9 = vcombine.low %v174_v59, %v178_v62  ;;  %v6608_v15 = vcombine.high %v182_v4, %v186_v7  ;;  %v194_v16 = vld [vmem:[#allocation2 + $0x220] sm:$0xff]  ;;  %v569_v62 = vld [vmem:[#allocation4 + $0x198] sm:$0xff] }
  0x90   :  { %1311 = vmatprep.subr.bf16.mxu1 %v6482_v10  ;;  %3404 = vmatprep.subr.bf16.mxu0 %v6552_v11  ;;  %v521_v10 = vld [vmem:[#allocation4 + $0x18] sm:$0xff]  ;;  %v202_v24 = vld [vmem:[#allocation2 + $0x260] sm:$0xff] }
  0x91   :  { %v525_v11 = vld [vmem:[#allocation4 + $0x38] sm:$0xff]  ;;  %v210_v35 = vld [vmem:[#allocation2 + $0x2a0] sm:$0xff] }
  0x92   :  { %v6485_v25 = vcombine.low %v521_v10, %v525_v11  ;;  %v218_v41 = vld [vmem:[#allocation2 + $0x2e0] sm:$0xff] }
  0x93   :  { %v226_v51 = vld [vmem:[#allocation2 + $0x320] sm:$0xff] }
  0x94   :  { %v234_v59 = vld [vmem:[#allocation2 + $0x360] sm:$0xff] }
  0xef   :  { %v937_v13 = vpop.permute.xlu0 %936 }
  0xf0   :  { %vm941_vm0 = vcmp.eq.s32.totalorder %v937_v13, %v934_v18  ;;  %v190_v13 = vld [vmem:[#allocation2 + $0x200] sm:$0xff] }
  0xf1   :  { %v6615_v27 = vcombine.low %v190_v13, %v194_v16 }
  0xf3   :  { %v940_v21 = vpop.permute.xlu0 %939 }
  0xf4   :  { %vm942_vm1 = vcmp.eq.s32.totalorder %v940_v21, %v934_v18  ;;  %v6607_v18 = vcombine.low %v182_v4, %v186_v7  ;;  %v198_v21 = vld [vmem:[#allocation2 + $0x240] sm:$0xff]  ;;  %v577_v7 = vld [vmem:[#allocation4 + $0x1d8] sm:$0xff] }
  0xf5   :  { %vm8246_vm2 = vmpackc.low %vm942_vm1, %vm941_vm0  ;;  %v242_v4 = vld [vmem:[#allocation2 + $0x3a0] sm:$0xff] }
  0xf6   :  { %6544 = vmatmul.mubr.msk.bf16.vlgmr.msra.gmra.mrb[0].mxu1 %vm8246_vm2, %v8069_v30  ;;  %6548 = vmatmul.mubr.msk.bf16.vlgmr.msra.gmra.mrb[0].mxu0 %vm8246_vm2, %v8069_v30 }
  0xf7   :  { %1312 = vmatpush1.bf16.msra.mxu1 %v6481_v39  ;;  %3405 = vmatpush1.bf16.msra.mxu0 %v6551_v43  ;;  %v551_v39 = vld [vmem:[#allocation4 + $0x108] sm:$0xff]  ;;  %v6506_v43 = vcombine.high %v543_v33, %v547_v34  ;;  %v6494_v33 = vcombine.high %v529_v19, %v533_v20  ;;  %v6624_v34 = vcombine.high %v198_v21, %v202_v24 }
  0xf8   :  { %1313 = vmatprep.subr.bf16.mxu1 %v6490_v22  ;;  %3406 = vmatprep.subr.bf16.mxu0 %v6560_v23  ;;  %v6514_v52 = vcombine.high %v551_v39, %v555_v40  ;;  %v6513_v55 = vcombine.low %v551_v39, %v555_v40  ;;  %v6486_v22 = vcombine.high %v521_v10, %v525_v11 }
  0xf9   :  { %1343 = vmatprep.mubr.bf16.mxu1 %v8068_v0  ;;  %3436 = vmatprep.mubr.bf16.mxu0 %v8250_v29  ;;  %v6616_v23 = vcombine.high %v190_v13, %v194_v16  ;;  %v250_v13 = vld [vmem:[#allocation2 + $0x3e0] sm:$0xff] }
  0xfb   :  { %1314 = vmatpush1.bf16.msra.mxu1 %v6489_v31  ;;  %3407 = vmatpush1.bf16.msra.mxu0 %v6559_v32  ;;  %v541_v31 = vld [vmem:[#allocation4 + $0xb8] sm:$0xff]  ;;  %v206_v32 = vld [vmem:[#allocation2 + $0x280] sm:$0xff] }
  0xfc   :  { %1315 = vmatprep.subr.bf16.mxu1 %v6498_v38  ;;  %3408 = vmatprep.subr.bf16.mxu0 %v6568_v42  ;;  %v6493_v38 = vcombine.low %v529_v19, %v533_v20  ;;  %v6623_v42 = vcombine.low %v198_v21, %v202_v24  ;;  %v6502_v39 = vcombine.high %v537_v28, %v541_v31  ;;  %v258_v19 = vld [vmem:[#allocation2 + $0x420] sm:$0xff]  ;;  %v127_v20 = vld [vmem:[#allocation2 + $0x8] sm:$0xff] }
  0xfd   :  { %v6632_v40 = vcombine.high %v206_v32, %v210_v35  ;;  %v131_v21 = vld [vmem:[#allocation2 + $0x28] sm:$0xff]  ;;  %v110_v24 = vld [vmem:[%s8425_s0] sm:$0xff] }
  0xff   :  { %1316 = vmatpush1.bf16.msra.mxu1 %v6497_v36  ;;  %3409 = vmatpush1.bf16.msra.mxu0 %v6567_v37  ;;  %v549_v36 = vld [vmem:[#allocation4 + $0xf8] sm:$0xff]  ;;  %v214_v37 = vld [vmem:[#allocation2 + $0x2c0] sm:$0xff] }
 0x100   :  { %1317 = vmatprep.subr.bf16.mxu1 %v6506_v43  ;;  %3410 = vmatprep.subr.bf16.mxu0 %v6576_v45  ;;  %v6501_v43 = vcombine.low %v537_v28, %v541_v31  ;;  %v6631_v45 = vcombine.low %v206_v32, %v210_v35  ;;  %v6510_v49 = vcombine.high %v545_v44, %v549_v36  ;;  %v262_v31 = vld [vmem:[#allocation2 + $0x440] sm:$0xff] }
 0x101   :  { %v6640_v50 = vcombine.high %v214_v37, %v218_v41  ;;  %v6554_v28 = vcombine.high %v127_v20, %v131_v21  ;;  %v266_v32 = vld [vmem:[#allocation2 + $0x460] sm:$0xff] }
 0x103   :  { %1318 = vmatpush1.bf16.msra.mxu1 %v6505_v47  ;;  %3411 = vmatpush1.bf16.msra.mxu0 %v6575_v48  ;;  %v557_v47 = vld [vmem:[#allocation4 + $0x138] sm:$0xff]  ;;  %v222_v48 = vld [vmem:[#allocation2 + $0x300] sm:$0xff] }
 0x104   :  { %1319 = vmatprep.subr.bf16.mxu1 %v6514_v52  ;;  %3412 = vmatprep.subr.bf16.mxu0 %v6584_v53  ;;  %v6509_v52 = vcombine.low %v545_v44, %v549_v36  ;;  %v6639_v53 = vcombine.low %v214_v37, %v218_v41  ;;  %v6518_v57 = vcombine.high %v553_v46, %v557_v47  ;;  %v274_v41 = vld [vmem:[#allocation2 + $0x4a0] sm:$0xff] }
 0x105   :  { %v6648_v58 = vcombine.high %v222_v48, %v226_v51  ;;  %v6553_v36 = vcombine.low %v127_v20, %v131_v21  ;;  %v6688_v37 = vcombine.high %v262_v31, %v266_v32  ;;  %v314_v20 = vld [vmem:[#allocation2 + $0x5e0] sm:$0xff]  ;;  %v183_v21 = vld [vmem:[#allocation2 + $0x1c8] sm:$0xff] }
 0x107   :  { %1320 = vmatpush1.bf16.msra.mxu1 %v6513_v55  ;;  %3413 = vmatpush1.bf16.msra.mxu0 %v6583_v56  ;;  %v565_v55 = vld [vmem:[#allocation4 + $0x178] sm:$0xff]  ;;  %v230_v56 = vld [vmem:[#allocation2 + $0x340] sm:$0xff] }
 0x108   :  { %1321 = vmatprep.subr.bf16.mxu1 %v6522_v60  ;;  %3414 = vmatprep.subr.bf16.mxu0 %v6592_v61  ;;  %v6517_v60 = vcombine.low %v553_v46, %v557_v47  ;;  %v6647_v61 = vcombine.low %v222_v48, %v226_v51  ;;  %v6526_v2 = vcombine.high %v561_v54, %v565_v55  ;;  %v278_v51 = vld [vmem:[#allocation2 + $0x4c0] sm:$0xff] }
 0x109   :  { %v6656_v3 = vcombine.high %v230_v56, %v234_v59  ;;  %v6687_v47 = vcombine.low %v262_v31, %v266_v32  ;;  %v322_v31 = vld [vmem:[#allocation2 + $0x620] sm:$0xff]  ;;  %v191_v32 = vld [vmem:[#allocation2 + $0x208] sm:$0xff] }
 0x10b   :  { %1322 = vmatpush1.bf16.msra.mxu1 %v6521_v63  ;;  %3415 = vmatpush1.bf16.msra.mxu0 %v6591_v1  ;;  %v573_v63 = vld [vmem:[#allocation4 + $0x1b8] sm:$0xff]  ;;  %v238_v1 = vld [vmem:[#allocation2 + $0x380] sm:$0xff] }
 0x10c   :  { %1323 = vmatprep.subr.bf16.mxu1 %v6530_v5  ;;  %3416 = vmatprep.subr.bf16.mxu0 %v6600_v6  ;;  %v6525_v5 = vcombine.low %v561_v54, %v565_v55  ;;  %v6655_v6 = vcombine.low %v230_v56, %v234_v59  ;;  %v6534_v10 = vcombine.high %v569_v62, %v573_v63  ;;  %v155_v54 = vld [vmem:[#allocation2 + $0xe8] sm:$0xff] }
 0x10d   :  { %v6664_v11 = vcombine.high %v238_v1, %v242_v4  ;;  %v159_v59 = vld [vmem:[#allocation2 + $0x108] sm:$0xff] }
 0x10f   :  { %1324 = vmatpush1.bf16.msra.mxu1 %v6529_v8  ;;  %3417 = vmatpush1.bf16.msra.mxu0 %v6599_v9  ;;  %v581_v8 = vld [vmem:[#allocation4 + $0x1f8] sm:$0xff]  ;;  %v246_v9 = vld [vmem:[#allocation2 + $0x3c0] sm:$0xff] }
 0x110   :  { %1325 = vmatprep.subr.bf16.mxu1 %v6538_v14  ;;  %3418 = vmatprep.subr.bf16.mxu0 %v6608_v15  ;;  %v6533_v14 = vcombine.low %v569_v62, %v573_v63  ;;  %v6663_v15 = vcombine.low %v238_v1, %v242_v4  ;;  %v6542_v16 = vcombine.high %v577_v7, %v581_v8  ;;  %v167_v4 = vld [vmem:[#allocation2 + $0x148] sm:$0xff] }
 0x113   :  { %1326 = vmatpush1.bf16.msra.mxu1 %v6537_v17  ;;  %3419 = vmatpush1.bf16.msra.mxu0 %v6607_v18  ;;  %v6672_v17 = vcombine.high %v246_v9, %v250_v13  ;;  %v254_v18 = vld [vmem:[#allocation2 + $0x400] sm:$0xff] }
 0x114   :  { %1397 = vmatprep.subr.bf16.mxu1 %v6486_v22  ;;  %3420 = vmatprep.subr.bf16.mxu0 %v6616_v23  ;;  %v6541_v22 = vcombine.low %v577_v7, %v581_v8  ;;  %v6671_v23 = vcombine.low %v246_v9, %v250_v13  ;;  %v6679_v44 = vcombine.low %v254_v18, %v258_v19  ;;  %v175_v13 = vld [vmem:[#allocation2 + $0x188] sm:$0xff] }
 0x116   :  { %6546 = vmatmul.mubr.msk.bf16.vlgmr.msra.gmra.mrb[4].mxu1 %vm8246_vm2, %v8069_v30 }
 0x117   :  { %1398 = vmatpush1.bf16.msra.mxu1 %v6485_v25  ;;  %3421 = vmatpush1.bf16.msra.mxu0 %v6615_v27  ;;  %v117_v25 = vld [vmem:[%s8425_s0 + $0x38] sm:$0xff]  ;;  %v6680_v27 = vcombine.high %v254_v18, %v258_v19  ;;  %v310_v19 = vld [vmem:[#allocation2 + $0x5c0] sm:$0xff] }
 0x118   :  { %1399 = vmatprep.subr.bf16.mxu1 %v6494_v33  ;;  %3422 = vmatprep.subr.bf16.mxu0 %v6624_v34  ;;  %v135_v33 = vld [vmem:[#allocation2 + $0x48] sm:$0xff]  ;;  %v8276_v35 = vpack.c.bf16 %v117_v25, %v110_v24  ;;  %v6736_v25 = vcombine.high %v310_v19, %v314_v20 }
 0x119   :  { %1429 = vmatprep.mubr.bf16.mxu1 %v8068_v0  ;;  %v139_v34 = vld [vmem:[#allocation2 + $0x68] sm:$0xff] }
 0x11a   :  { %v6561_v48 = vcombine.low %v135_v33, %v139_v34 }
 0x11b   :  { %1400 = vmatpush1.bf16.msra.mxu1 %v6493_v38  ;;  %3423 = vmatpush1.bf16.msra.mxu0 %v6623_v42  ;;  %v113_v38 = vld [vmem:[%s8425_s0 + $0x18] sm:$0xff]  ;;  %v120_v42 = vld [vmem:[%s8425_s0 + $0x50] sm:$0xff] }
 0x11c   :  { %1401 = vmatprep.subr.bf16.mxu1 %v6502_v39  ;;  %3424 = vmatprep.subr.bf16.mxu0 %v6632_v40  ;;  %v6562_v39 = vcombine.high %v135_v33, %v139_v34  ;;  %v270_v40 = vld [vmem:[#allocation2 + $0x480] sm:$0xff]  ;;  %v8284_v46 = vpack.c.bf16 %v120_v42, %v113_v38  ;;  %v195_v33 = vld [vmem:[#allocation2 + $0x228] sm:$0xff]  ;;  %v6735_v34 = vcombine.low %v310_v19, %v314_v20 }
 0x11d   :  { %v6695_v26 = vcombine.low %v270_v40, %v274_v41  ;;  %v243_v19 = vld [vmem:[#allocation2 + $0x3a8] sm:$0xff] }
 0x11f   :  { %1402 = vmatpush1.bf16.msra.mxu1 %v6501_v43  ;;  %3425 = vmatpush1.bf16.msra.mxu0 %v6631_v45  ;;  %v143_v43 = vld [vmem:[#allocation2 + $0x88] sm:$0xff] }
 0x120   :  { %1403 = vmatprep.subr.bf16.mxu1 %v6510_v49  ;;  %3426 = vmatprep.subr.bf16.mxu0 %v6640_v50  ;;  %v147_v45 = vld [vmem:[#allocation2 + $0xa8] sm:$0xff]  ;;  %v6696_v49 = vcombine.high %v270_v40, %v274_v41 }
 0x121   :  { %v6570_v50 = vcombine.high %v143_v43, %v147_v45  ;;  %v203_v40 = vld [vmem:[#allocation2 + $0x268] sm:$0xff] }
 0x123   :  { %1404 = vmatpush1.bf16.msra.mxu1 %v6509_v52  ;;  %3427 = vmatpush1.bf16.msra.mxu0 %v6639_v53  ;;  %v282_v52 = vld [vmem:[#allocation2 + $0x4e0] sm:$0xff]  ;;  %v151_v53 = vld [vmem:[#allocation2 + $0xc8] sm:$0xff] }
 0x124   :  { %1405 = vmatprep.subr.bf16.mxu1 %v6518_v57  ;;  %3428 = vmatprep.subr.bf16.mxu0 %v6648_v58  ;;  %v6704_v55 = vcombine.high %v278_v51, %v282_v52  ;;  %v6578_v56 = vcombine.high %v151_v53, %v155_v54  ;;  %v286_v57 = vld [vmem:[#allocation2 + $0x500] sm:$0xff]  ;;  %v6577_v62 = vcombine.low %v151_v53, %v155_v54 }
 0x125   :  { %v290_v58 = vld [vmem:[#allocation2 + $0x520] sm:$0xff] }
 0x126   :  { %v6712_v63 = vcombine.high %v286_v57, %v290_v58 }
 0x127   :  { %1406 = vmatpush1.bf16.msra.mxu1 %v6517_v60  ;;  %3429 = vmatpush1.bf16.msra.mxu0 %v6647_v61  ;;  %v163_v60 = vld [vmem:[#allocation2 + $0x128] sm:$0xff]  ;;  %v6703_v61 = vcombine.low %v278_v51, %v282_v52 }
 0x128   :  { %1407 = vmatprep.subr.bf16.mxu1 %v6526_v2  ;;  %3430 = vmatprep.subr.bf16.mxu0 %v6656_v3  ;;  %v6586_v1 = vcombine.high %v159_v59, %v163_v60  ;;  %v294_v2 = vld [vmem:[#allocation2 + $0x540] sm:$0xff]  ;;  %v6585_v7 = vcombine.low %v159_v59, %v163_v60  ;;  %v211_v51 = vld [vmem:[#allocation2 + $0x2a8] sm:$0xff] }
 0x129   :  { %v298_v3 = vld [vmem:[#allocation2 + $0x560] sm:$0xff] }
 0x12a   :  { %v6720_v8 = vcombine.high %v294_v2, %v298_v3 }
 0x12b   :  { %1408 = vmatpush1.bf16.msra.mxu1 %v6525_v5  ;;  %3431 = vmatpush1.bf16.msra.mxu0 %v6655_v6  ;;  %v171_v5 = vld [vmem:[#allocation2 + $0x168] sm:$0xff]  ;;  %v6711_v6 = vcombine.low %v286_v57, %v290_v58 }
 0x12c   :  { %1409 = vmatprep.subr.bf16.mxu1 %v6534_v10  ;;  %3432 = vmatprep.subr.bf16.mxu0 %v6664_v11  ;;  %v6594_v9 = vcombine.high %v167_v4, %v171_v5  ;;  %v302_v10 = vld [vmem:[#allocation2 + $0x580] sm:$0xff]  ;;  %v219_v57 = vld [vmem:[#allocation2 + $0x2e8] sm:$0xff] }
 0x12d   :  { %v306_v11 = vld [vmem:[#allocation2 + $0x5a0] sm:$0xff] }
 0x12f   :  { %1410 = vmatpush1.bf16.msra.mxu1 %v6533_v14  ;;  %3433 = vmatpush1.bf16.msra.mxu0 %v6663_v15  ;;  %v179_v14 = vld [vmem:[#allocation2 + $0x1a8] sm:$0xff]  ;;  %v6719_v15 = vcombine.low %v294_v2, %v298_v3 }
 0x130   :  { %1411 = vmatprep.subr.bf16.mxu1 %v6542_v16  ;;  %3434 = vmatprep.subr.bf16.mxu0 %v6672_v17  ;;  %v6593_v16 = vcombine.low %v167_v4, %v171_v5  ;;  %v6728_v17 = vcombine.high %v302_v10, %v306_v11  ;;  %v6602_v18 = vcombine.high %v175_v13, %v179_v14  ;;  %v227_v2 = vld [vmem:[#allocation2 + $0x328] sm:$0xff] }
 0x131   :  { %v6601_v24 = vcombine.low %v175_v13, %v179_v14 }
 0x133   :  { %1412 = vmatpush1.bf16.msra.mxu1 %v6541_v22  ;;  %3435 = vmatpush1.bf16.msra.mxu0 %v6671_v23  ;;  %v187_v22 = vld [vmem:[#allocation2 + $0x1e8] sm:$0xff]  ;;  %v6727_v23 = vcombine.low %v302_v10, %v306_v11 }
 0x134   :  { %3447 = vmatprep.subr.bf16.mxu0 %v6680_v27  ;;  %3576 = vmatprep.subr.bf16.mxu1 %v6554_v28  ;;  %v6610_v27 = vcombine.high %v183_v21, %v187_v22  ;;  %v318_v28 = vld [vmem:[#allocation2 + $0x600] sm:$0xff]  ;;  %v6609_v38 = vcombine.low %v183_v21, %v187_v22  ;;  %v235_v10 = vld [vmem:[#allocation2 + $0x368] sm:$0xff] }
 0x135   :  { %v6744_v42 = vcombine.high %v318_v28, %v322_v31  ;;  %v6743_v41 = vcombine.low %v318_v28, %v322_v31  ;;  %v251_v28 = vld [vmem:[#allocation2 + $0x3e8] sm:$0xff] }
 0x136   :  { %6550 = vmatmul.mubr.msk.bf16.vlgmr.msra.gmra.mrb[8].mxu1 %vm8246_vm2, %v8069_v30  ;;  %3437 = vmatmul.mubr.bf16.vlgmr.msra.gmra.mrb[4].mxu0 %v8276_v35  ;;  %v6569_v30 = vcombine.low %v143_v43, %v147_v45  ;;  %v6617_v43 = vcombine.low %v191_v32, %v195_v33 }
 0x137   :  { %3448 = vmatpush1.bf16.msra.mxu0 %v6679_v44  ;;  %3577 = vmatpush1.bf16.msra.mxu1 %v6553_v36  ;;  %v6618_v44 = vcombine.high %v191_v32, %v195_v33  ;;  %v326_v36 = vld [vmem:[#allocation2 + $0x640] sm:$0xff] }
 0x138   :  { %3449 = vmatprep.subr.bf16.mxu0 %v6688_v37  ;;  %3578 = vmatprep.subr.bf16.mxu1 %v6562_v39  ;;  %v330_v37 = vld [vmem:[#allocation2 + $0x660] sm:$0xff]  ;;  %v199_v39 = vld [vmem:[#allocation2 + $0x248] sm:$0xff] }
 0x139   :  { %3479 = vmatprep.mubr.bf16.mxu0 %v8284_v46  ;;  %3608 = vmatprep.mubr.bf16.mxu1 %v8250_v29  ;;  %v6752_v45 = vcombine.high %v326_v36, %v330_v37  ;;  %v6751_v52 = vcombine.low %v326_v36, %v330_v37  ;;  %v6625_v53 = vcombine.low %v199_v39, %v203_v40  ;;  %v259_v36 = vld [vmem:[#allocation2 + $0x428] sm:$0xff] }
 0x13b   :  { %3450 = vmatpush1.bf16.msra.mxu0 %v6687_v47  ;;  %3579 = vmatpush1.bf16.msra.mxu1 %v6561_v48  ;;  %v6626_v47 = vcombine.high %v199_v39, %v203_v40  ;;  %v334_v48 = vld [vmem:[#allocation2 + $0x680] sm:$0xff]  ;;  %v112_v40 = vld [vmem:[%s8425_s0 + $0x10] sm:$0xff] }
 0x13c   :  { %3451 = vmatprep.subr.bf16.mxu0 %v6696_v49  ;;  %3580 = vmatprep.subr.bf16.mxu1 %v6570_v50  ;;  %v338_v49 = vld [vmem:[#allocation2 + $0x6a0] sm:$0xff]  ;;  %v207_v50 = vld [vmem:[#allocation2 + $0x288] sm:$0xff] }
 0x13d   :  { %v6760_v54 = vcombine.high %v334_v48, %v338_v49  ;;  %v6759_v58 = vcombine.low %v334_v48, %v338_v49  ;;  %v6633_v59 = vcombine.low %v207_v50, %v211_v51  ;;  %v394_v48 = vld [vmem:[#allocation2 + $0x860] sm:$0xff]  ;;  %v263_v49 = vld [vmem:[#allocation2 + $0x448] sm:$0xff] }
 0x13f   :  { %3452 = vmatpush1.bf16.msra.mxu0 %v6695_v26  ;;  %3581 = vmatpush1.bf16.msra.mxu1 %v6569_v30  ;;  %v6634_v26 = vcombine.high %v207_v50, %v211_v51  ;;  %v342_v30 = vld [vmem:[#allocation2 + $0x6c0] sm:$0xff]  ;;  %v267_v50 = vld [vmem:[#allocation2 + $0x468] sm:$0xff] }
 0x140   :  { %3453 = vmatprep.subr.bf16.mxu0 %v6704_v55  ;;  %3582 = vmatprep.subr.bf16.mxu1 %v6578_v56  ;;  %v346_v55 = vld [vmem:[#allocation2 + $0x6e0] sm:$0xff]  ;;  %v215_v56 = vld [vmem:[#allocation2 + $0x2c8] sm:$0xff] }
 0x141   :  { %v6768_v60 = vcombine.high %v342_v30, %v346_v55  ;;  %v6767_v3 = vcombine.low %v342_v30, %v346_v55  ;;  %v6641_v4 = vcombine.low %v215_v56, %v219_v57  ;;  %v6690_v55 = vcombine.high %v263_v49, %v267_v50 }
 0x143   :  { %3454 = vmatpush1.bf16.msra.mxu0 %v6703_v61  ;;  %3583 = vmatpush1.bf16.msra.mxu1 %v6577_v62  ;;  %v6642_v61 = vcombine.high %v215_v56, %v219_v57  ;;  %v350_v62 = vld [vmem:[#allocation2 + $0x700] sm:$0xff] }
 0x144   :  { %3455 = vmatprep.subr.bf16.mxu0 %v6712_v63  ;;  %3584 = vmatprep.subr.bf16.mxu1 %v6586_v1  ;;  %v354_v63 = vld [vmem:[#allocation2 + $0x720] sm:$0xff]  ;;  %v223_v1 = vld [vmem:[#allocation2 + $0x308] sm:$0xff] }
 0x145   :  { %v6776_v5 = vcombine.high %v350_v62, %v354_v63  ;;  %v6775_v11 = vcombine.low %v350_v62, %v354_v63  ;;  %v6649_v13 = vcombine.low %v223_v1, %v227_v2  ;;  %v398_v56 = vld [vmem:[#allocation2 + $0x880] sm:$0xff]  ;;  %v6689_v62 = vcombine.low %v263_v49, %v267_v50  ;;  %v319_v50 = vld [vmem:[#allocation2 + $0x608] sm:$0xff] }
 0x146   :  { %v402_v57 = vld [vmem:[#allocation2 + $0x8a0] sm:$0xff] }
 0x147   :  { %3456 = vmatpush1.bf16.msra.mxu0 %v6711_v6  ;;  %3585 = vmatpush1.bf16.msra.mxu1 %v6585_v7  ;;  %v6650_v6 = vcombine.high %v223_v1, %v227_v2  ;;  %v358_v7 = vld [vmem:[#allocation2 + $0x740] sm:$0xff]  ;;  %v6824_v63 = vcombine.high %v398_v56, %v402_v57 }
 0x148   :  { %3457 = vmatprep.subr.bf16.mxu0 %v6720_v8  ;;  %3586 = vmatprep.subr.bf16.mxu1 %v6594_v9  ;;  %v362_v8 = vld [vmem:[#allocation2 + $0x760] sm:$0xff]  ;;  %v231_v9 = vld [vmem:[#allocation2 + $0x348] sm:$0xff] }
 0x149   :  { %v6784_v14 = vcombine.high %v358_v7, %v362_v8  ;;  %v6783_v20 = vcombine.low %v358_v7, %v362_v8  ;;  %v6657_v21 = vcombine.low %v231_v9, %v235_v10  ;;  %v406_v2 = vld [vmem:[#allocation2 + $0x8c0] sm:$0xff] }
 0x14a   :  { %v450_v49 = vld [vmem:[#allocation2 + $0xa20] sm:$0xff] }
 0x14b   :  { %3458 = vmatpush1.bf16.msra.mxu0 %v6719_v15  ;;  %3587 = vmatpush1.bf16.msra.mxu1 %v6593_v16  ;;  %v6658_v15 = vcombine.high %v231_v9, %v235_v10  ;;  %v366_v16 = vld [vmem:[#allocation2 + $0x780] sm:$0xff] }
 0x14c   :  { %3459 = vmatprep.subr.bf16.mxu0 %v6728_v17  ;;  %3588 = vmatprep.subr.bf16.mxu1 %v6602_v18  ;;  %v370_v17 = vld [vmem:[#allocation2 + $0x7a0] sm:$0xff]  ;;  %v239_v18 = vld [vmem:[#allocation2 + $0x388] sm:$0xff] }
 0x14d   :  { %v6792_v22 = vcombine.high %v366_v16, %v370_v17  ;;  %v6791_v31 = vcombine.low %v366_v16, %v370_v17  ;;  %v6665_v32 = vcombine.low %v239_v18, %v243_v19  ;;  %v414_v10 = vld [vmem:[#allocation2 + $0x900] sm:$0xff] }
 0x14f   :  { %3460 = vmatpush1.bf16.msra.mxu0 %v6727_v23  ;;  %3589 = vmatpush1.bf16.msra.mxu1 %v6601_v24  ;;  %v6666_v23 = vcombine.high %v239_v18, %v243_v19  ;;  %v374_v24 = vld [vmem:[#allocation2 + $0x7c0] sm:$0xff] }
 0x150   :  { %3461 = vmatprep.subr.bf16.mxu0 %v6736_v25  ;;  %3590 = vmatprep.subr.bf16.mxu1 %v6610_v27  ;;  %v378_v25 = vld [vmem:[#allocation2 + $0x7e0] sm:$0xff]  ;;  %v247_v27 = vld [vmem:[#allocation2 + $0x3c8] sm:$0xff] }
 0x151   :  { %v6800_v33 = vcombine.high %v374_v24, %v378_v25  ;;  %v6799_v37 = vcombine.low %v374_v24, %v378_v25  ;;  %v6673_v39 = vcombine.low %v247_v27, %v251_v28  ;;  %v422_v19 = vld [vmem:[#allocation2 + $0x940] sm:$0xff] }
 0x153   :  { %3462 = vmatpush1.bf16.msra.mxu0 %v6735_v34  ;;  %3591 = vmatpush1.bf16.msra.mxu1 %v6609_v38  ;;  %v6674_v34 = vcombine.high %v247_v27, %v251_v28  ;;  %v382_v38 = vld [vmem:[#allocation2 + $0x800] sm:$0xff] }
 0x154   :  { %3463 = vmatprep.subr.bf16.mxu0 %v6744_v42  ;;  %3592 = vmatprep.subr.bf16.mxu1 %v6618_v44  ;;  %v386_v42 = vld [vmem:[#allocation2 + $0x820] sm:$0xff]  ;;  %v255_v44 = vld [vmem:[#allocation2 + $0x408] sm:$0xff] }
 0x155   :  { %v430_v28 = vld [vmem:[#allocation2 + $0x980] sm:$0xff] }
 0x157   :  { %3464 = vmatpush1.bf16.msra.mxu0 %v6743_v41  ;;  %3593 = vmatpush1.bf16.msra.mxu1 %v6617_v43  ;;  %v119_v41 = vld [vmem:[%s8425_s0 + $0x48] sm:$0xff]  ;;  %v6808_v43 = vcombine.high %v382_v38, %v386_v42 }
 0x158   :  { %3465 = vmatprep.subr.bf16.mxu0 %v6752_v45  ;;  %3594 = vmatprep.subr.bf16.mxu1 %v6626_v47  ;;  %v6682_v45 = vcombine.high %v255_v44, %v259_v36  ;;  %v390_v47 = vld [vmem:[#allocation2 + $0x840] sm:$0xff]  ;;  %v8298_v51 = vpack.c.bf16 %v119_v41, %v112_v40  ;;  %v315_v40 = vld [vmem:[#allocation2 + $0x5e8] sm:$0xff] }
 0x159   :  { %v6816_v30 = vcombine.high %v390_v47, %v394_v48 }
 0x15b   :  { %3466 = vmatpush1.bf16.msra.mxu0 %v6751_v52  ;;  %3595 = vmatpush1.bf16.msra.mxu1 %v6625_v53  ;;  %v115_v52 = vld [vmem:[%s8425_s0 + $0x28] sm:$0xff]  ;;  %v122_v53 = vld [vmem:[%s8425_s0 + $0x60] sm:$0xff] }
 0x15c   :  { %3467 = vmatprep.subr.bf16.mxu0 %v6760_v54  ;;  %3596 = vmatprep.subr.bf16.mxu1 %v6634_v26  ;;  %v6807_v54 = vcombine.low %v382_v38, %v386_v42  ;;  %v6681_v26 = vcombine.low %v255_v44, %v259_v36  ;;  %v438_v36 = vld [vmem:[#allocation2 + $0x9c0] sm:$0xff] }
 0x15f   :  { %3468 = vmatpush1.bf16.msra.mxu0 %v6759_v58  ;;  %3597 = vmatpush1.bf16.msra.mxu1 %v6633_v59  ;;  %v271_v58 = vld [vmem:[#allocation2 + $0x488] sm:$0xff] }
 0x160   :  { %3469 = vmatprep.subr.bf16.mxu0 %v6768_v60  ;;  %3598 = vmatprep.subr.bf16.mxu1 %v6642_v61  ;;  %v275_v59 = vld [vmem:[#allocation2 + $0x4a8] sm:$0xff]  ;;  %v8306_v60 = vpack.c.bf16 %v122_v53, %v115_v52  ;;  %v6815_v61 = vcombine.low %v390_v47, %v394_v48  ;;  %v446_v48 = vld [vmem:[#allocation2 + $0xa00] sm:$0xff] }
 0x161   :  { %v6698_v1 = vcombine.high %v271_v58, %v275_v59  ;;  %v6697_v7 = vcombine.low %v271_v58, %v275_v59  ;;  %v323_v52 = vld [vmem:[#allocation2 + $0x628] sm:$0xff]  ;;  %v6871_v59 = vcombine.low %v446_v48, %v450_v49 }
 0x162   :  { %v331_v58 = vld [vmem:[#allocation2 + $0x668] sm:$0xff] }
 0x163   :  { %3470 = vmatpush1.bf16.msra.mxu0 %v6767_v3  ;;  %3599 = vmatpush1.bf16.msra.mxu1 %v6641_v4  ;;  %v410_v3 = vld [vmem:[#allocation2 + $0x8e0] sm:$0xff]  ;;  %v279_v4 = vld [vmem:[#allocation2 + $0x4c8] sm:$0xff] }
 0x164   :  { %3471 = vmatprep.subr.bf16.mxu0 %v6776_v5  ;;  %3600 = vmatprep.subr.bf16.mxu1 %v6650_v6  ;;  %v283_v5 = vld [vmem:[#allocation2 + $0x4e8] sm:$0xff]  ;;  %v6823_v6 = vcombine.low %v398_v56, %v402_v57  ;;  %v6832_v8 = vcombine.high %v406_v2, %v410_v3  ;;  %v458_v56 = vld [vmem:[#allocation2 + $0xa60] sm:$0xff] }
 0x165   :  { %v6706_v9 = vcombine.high %v279_v4, %v283_v5  ;;  %v6705_v16 = vcombine.low %v279_v4, %v283_v5  ;;  %v327_v57 = vld [vmem:[#allocation2 + $0x648] sm:$0xff] }
 0x166   :  { %v339_v4 = vld [vmem:[#allocation2 + $0x6a8] sm:$0xff] }
 0x167   :  { %3472 = vmatpush1.bf16.msra.mxu0 %v6775_v11  ;;  %3601 = vmatpush1.bf16.msra.mxu1 %v6649_v13  ;;  %v418_v11 = vld [vmem:[#allocation2 + $0x920] sm:$0xff]  ;;  %v287_v13 = vld [vmem:[#allocation2 + $0x508] sm:$0xff] }
 0x168   :  { %3473 = vmatprep.subr.bf16.mxu0 %v6784_v14  ;;  %3602 = vmatprep.subr.bf16.mxu1 %v6658_v15  ;;  %v291_v14 = vld [vmem:[#allocation2 + $0x528] sm:$0xff]  ;;  %v6831_v15 = vcombine.low %v406_v2, %v410_v3  ;;  %v6840_v17 = vcombine.high %v414_v10, %v418_v11  ;;  %v466_v2 = vld [vmem:[#allocation2 + $0xaa0] sm:$0xff] }
 0x169   :  { %v6714_v18 = vcombine.high %v287_v13, %v291_v14  ;;  %v6713_v24 = vcombine.low %v287_v13, %v291_v14  ;;  %v335_v3 = vld [vmem:[#allocation2 + $0x688] sm:$0xff] }
 0x16a   :  { %v347_v13 = vld [vmem:[#allocation2 + $0x6e8] sm:$0xff] }
 0x16b   :  { %3474 = vmatpush1.bf16.msra.mxu0 %v6783_v20  ;;  %3603 = vmatpush1.bf16.msra.mxu1 %v6657_v21  ;;  %v426_v20 = vld [vmem:[#allocation2 + $0x960] sm:$0xff]  ;;  %v295_v21 = vld [vmem:[#allocation2 + $0x548] sm:$0xff] }
 0x16c   :  { %3475 = vmatprep.subr.bf16.mxu0 %v6792_v22  ;;  %3604 = vmatprep.subr.bf16.mxu1 %v6666_v23  ;;  %v299_v22 = vld [vmem:[#allocation2 + $0x568] sm:$0xff]  ;;  %v6839_v23 = vcombine.low %v414_v10, %v418_v11  ;;  %v6848_v25 = vcombine.high %v422_v19, %v426_v20  ;;  %v474_v10 = vld [vmem:[#allocation2 + $0xae0] sm:$0xff] }
 0x16d   :  { %v6722_v27 = vcombine.high %v295_v21, %v299_v22  ;;  %v6721_v38 = vcombine.low %v295_v21, %v299_v22  ;;  %v343_v11 = vld [vmem:[#allocation2 + $0x6c8] sm:$0xff] }
 0x16e   :  { %v355_v21 = vld [vmem:[#allocation2 + $0x728] sm:$0xff] }
 0x16f   :  { %3476 = vmatpush1.bf16.msra.mxu0 %v6791_v31  ;;  %3605 = vmatpush1.bf16.msra.mxu1 %v6665_v32  ;;  %v434_v31 = vld [vmem:[#allocation2 + $0x9a0] sm:$0xff]  ;;  %v303_v32 = vld [vmem:[#allocation2 + $0x588] sm:$0xff] }
 0x170   :  { %3477 = vmatprep.subr.bf16.mxu0 %v6800_v33  ;;  %3606 = vmatprep.subr.bf16.mxu1 %v6674_v34  ;;  %v307_v33 = vld [vmem:[#allocation2 + $0x5a8] sm:$0xff]  ;;  %v6847_v34 = vcombine.low %v422_v19, %v426_v20  ;;  %v6856_v42 = vcombine.high %v430_v28, %v434_v31  ;;  %v6855_v41 = vcombine.low %v430_v28, %v434_v31  ;;  %v482_v19 = vld [vmem:[#allocation2 + $0xb20] sm:$0xff] }
 0x171   :  { %v6730_v44 = vcombine.high %v303_v32, %v307_v33  ;;  %v351_v20 = vld [vmem:[#allocation2 + $0x708] sm:$0xff]  ;;  %v490_v28 = vld [vmem:[#allocation2 + $0xb60] sm:$0xff] }
 0x172   :  { %v359_v31 = vld [vmem:[#allocation2 + $0x748] sm:$0xff] }
 0x173   :  { %3478 = vmatpush1.bf16.msra.mxu0 %v6799_v37  ;;  %3607 = vmatpush1.bf16.msra.mxu1 %v6673_v39  ;;  %v442_v37 = vld [vmem:[#allocation2 + $0x9e0] sm:$0xff]  ;;  %v311_v39 = vld [vmem:[#allocation2 + $0x5c8] sm:$0xff] }
 0x174   :  { %3490 = vmatprep.subr.bf16.mxu0 %v6808_v43  ;;  %3619 = vmatprep.subr.bf16.mxu1 %v6682_v45  ;;  %v6729_v43 = vcombine.low %v303_v32, %v307_v33  ;;  %v6864_v45 = vcombine.high %v438_v36, %v442_v37  ;;  %v6738_v47 = vcombine.high %v311_v39, %v315_v40  ;;  %v363_v32 = vld [vmem:[#allocation2 + $0x768] sm:$0xff] }
 0x175   :  { %v6863_v53 = vcombine.low %v438_v36, %v442_v37  ;;  %v498_v36 = vld [vmem:[#allocation2 + $0xba0] sm:$0xff]  ;;  %v367_v37 = vld [vmem:[#allocation2 + $0x788] sm:$0xff] }
 0x176   :  { %3480 = vmatmul.mubr.bf16.vlgmr.msra.gmra.mrb[4].mxu0 %v8298_v51  ;;  %3609 = vmatmul.mubr.bf16.vlgmr.msra.gmra.mrb[4].mxu1 %v8276_v35 }
 0x177   :  { %3491 = vmatpush1.bf16.msra.mxu0 %v6807_v54  ;;  %3620 = vmatpush1.bf16.msra.mxu1 %v6681_v26  ;;  %v6737_v54 = vcombine.low %v311_v39, %v315_v40  ;;  %v6872_v26 = vcombine.high %v446_v48, %v450_v49  ;;  %v371_v39 = vld [vmem:[#allocation2 + $0x7a8] sm:$0xff]  ;;  %v506_v48 = vld [vmem:[#allocation2 + $0xbe0] sm:$0xff] }
 0x178   :  { %3492 = vmatprep.subr.bf16.mxu0 %v6816_v30  ;;  %3621 = vmatprep.subr.bf16.mxu1 %v6690_v55  ;;  %v6746_v30 = vcombine.high %v319_v50, %v323_v52  ;;  %v454_v55 = vld [vmem:[#allocation2 + $0xa40] sm:$0xff]  ;;  %v375_v49 = vld [vmem:[#allocation2 + $0x7c8] sm:$0xff] }
 0x179   :  { %3522 = vmatprep.mubr.bf16.mxu0 %v8306_v60  ;;  %3651 = vmatprep.mubr.bf16.mxu1 %v8284_v46  ;;  %v6879_v5 = vcombine.low %v454_v55, %v458_v56 }
 0x17b   :  { %3493 = vmatpush1.bf16.msra.mxu0 %v6815_v61  ;;  %3622 = vmatpush1.bf16.msra.mxu1 %v6689_v62  ;;  %v6745_v61 = vcombine.low %v319_v50, %v323_v52  ;;  %v6880_v62 = vcombine.high %v454_v55, %v458_v56  ;;  %v379_v50 = vld [vmem:[#allocation2 + $0x7e8] sm:$0xff]  ;;  %v510_v56 = vld [vmem:[#allocation2 + $0xc00] sm:$0xff] }
 0x17c   :  { %3494 = vmatprep.subr.bf16.mxu0 %v6824_v63  ;;  %3623 = vmatprep.subr.bf16.mxu1 %v6698_v1  ;;  %v6754_v63 = vcombine.high %v327_v57, %v331_v58  ;;  %v462_v1 = vld [vmem:[#allocation2 + $0xa80] sm:$0xff]  ;;  %v387_v55 = vld [vmem:[#allocation2 + $0x828] sm:$0xff] }
 0x17d   :  { %v6887_v14 = vcombine.low %v462_v1, %v466_v2 }
 0x17f   :  { %3495 = vmatpush1.bf16.msra.mxu0 %v6823_v6  ;;  %3624 = vmatpush1.bf16.msra.mxu1 %v6697_v7  ;;  %v6753_v6 = vcombine.low %v327_v57, %v331_v58  ;;  %v6888_v7 = vcombine.high %v462_v1, %v466_v2  ;;  %v514_v57 = vld [vmem:[#allocation2 + $0xc20] sm:$0xff]  ;;  %v391_v2 = vld [vmem:[#allocation2 + $0x848] sm:$0xff] }
 0x180   :  { %3496 = vmatprep.subr.bf16.mxu0 %v6832_v8  ;;  %3625 = vmatprep.subr.bf16.mxu1 %v6706_v9  ;;  %v6762_v8 = vcombine.high %v335_v3, %v339_v4  ;;  %v470_v9 = vld [vmem:[#allocation2 + $0xac0] sm:$0xff]  ;;  %v6936_v1 = vcombine.high %v510_v56, %v514_v57 }
 0x181   :  { %v6895_v22 = vcombine.low %v470_v9, %v474_v10 }
 0x183   :  { %3497 = vmatpush1.bf16.msra.mxu0 %v6831_v15  ;;  %3626 = vmatpush1.bf16.msra.mxu1 %v6705_v16  ;;  %v6761_v15 = vcombine.low %v335_v3, %v339_v4  ;;  %v6896_v16 = vcombine.high %v470_v9, %v474_v10  ;;  %v395_v3 = vld [vmem:[#allocation2 + $0x868] sm:$0xff] }
 0x184   :  { %3498 = vmatprep.subr.bf16.mxu0 %v6840_v17  ;;  %3627 = vmatprep.subr.bf16.mxu1 %v6714_v18  ;;  %v6770_v17 = vcombine.high %v343_v11, %v347_v13  ;;  %v478_v18 = vld [vmem:[#allocation2 + $0xb00] sm:$0xff]  ;;  %v6818_v9 = vcombine.high %v391_v2, %v395_v3  ;;  %v399_v10 = vld [vmem:[#allocation2 + $0x888] sm:$0xff] }
 0x185   :  { %v6903_v33 = vcombine.low %v478_v18, %v482_v19 }
 0x187   :  { %3499 = vmatpush1.bf16.msra.mxu0 %v6839_v23  ;;  %3628 = vmatpush1.bf16.msra.mxu1 %v6713_v24  ;;  %v6769_v23 = vcombine.low %v343_v11, %v347_v13  ;;  %v6904_v24 = vcombine.high %v478_v18, %v482_v19  ;;  %v403_v11 = vld [vmem:[#allocation2 + $0x8a8] sm:$0xff]  ;;  %v116_v19 = vld [vmem:[%s8425_s0 + $0x30] sm:$0xff] }
 0x188   :  { %3500 = vmatprep.subr.bf16.mxu0 %v6848_v25  ;;  %3629 = vmatprep.subr.bf16.mxu1 %v6722_v27  ;;  %v6778_v25 = vcombine.high %v351_v20, %v355_v21  ;;  %v486_v27 = vld [vmem:[#allocation2 + $0xb40] sm:$0xff]  ;;  %v6825_v18 = vcombine.low %v399_v10, %v403_v11 }
 0x189   :  { %v6911_v40 = vcombine.low %v486_v27, %v490_v28 }
 0x18b   :  { %3501 = vmatpush1.bf16.msra.mxu0 %v6847_v34  ;;  %3630 = vmatpush1.bf16.msra.mxu1 %v6721_v38  ;;  %v6777_v34 = vcombine.low %v351_v20, %v355_v21  ;;  %v6912_v38 = vcombine.high %v486_v27, %v490_v28  ;;  %v123_v20 = vld [vmem:[%s8425_s0 + $0x68] sm:$0xff] }
 0x18c   :  { %3502 = vmatprep.subr.bf16.mxu0 %v6856_v42  ;;  %3631 = vmatprep.subr.bf16.mxu1 %v6730_v44  ;;  %v6786_v42 = vcombine.high %v359_v31, %v363_v32  ;;  %v494_v44 = vld [vmem:[#allocation2 + $0xb80] sm:$0xff]  ;;  %v8330_v27 = vpack.c.bf16 %v123_v20, %v116_v19  ;;  %v184_v19 = vld [vmem:[#allocation2 + $0x1d0] sm:$0xff] }
 0x18d   :  { %v6919_v52 = vcombine.low %v494_v44, %v498_v36  ;;  %v188_v20 = vld [vmem:[#allocation2 + $0x1f0] sm:$0xff] }
 0x18f   :  { %3503 = vmatpush1.bf16.msra.mxu0 %v6855_v41  ;;  %3632 = vmatpush1.bf16.msra.mxu1 %v6729_v43  ;;  %v6785_v41 = vcombine.low %v359_v31, %v363_v32  ;;  %v6920_v43 = vcombine.high %v494_v44, %v498_v36  ;;  %v427_v44 = vld [vmem:[#allocation2 + $0x968] sm:$0xff] }
 0x190   :  { %3504 = vmatprep.subr.bf16.mxu0 %v6864_v45  ;;  %3633 = vmatprep.subr.bf16.mxu1 %v6738_v47  ;;  %v6794_v45 = vcombine.high %v367_v37, %v371_v39  ;;  %v502_v47 = vld [vmem:[#allocation2 + $0xbc0] sm:$0xff] }
 0x191   :  { %v6927_v58 = vcombine.low %v502_v47, %v506_v48 }
 0x193   :  { %3505 = vmatpush1.bf16.msra.mxu0 %v6863_v53  ;;  %3634 = vmatpush1.bf16.msra.mxu1 %v6737_v54  ;;  %v6793_v53 = vcombine.low %v367_v37, %v371_v39  ;;  %v6928_v54 = vcombine.high %v502_v47, %v506_v48  ;;  %v435_v47 = vld [vmem:[#allocation2 + $0x9a8] sm:$0xff] }
 0x194   :  { %3506 = vmatprep.subr.bf16.mxu0 %v6872_v26  ;;  %3635 = vmatprep.subr.bf16.mxu1 %v6746_v30  ;;  %v6802_v26 = vcombine.high %v375_v49, %v379_v50  ;;  %v383_v30 = vld [vmem:[#allocation2 + $0x808] sm:$0xff] }
 0x197   :  { %3507 = vmatpush1.bf16.msra.mxu0 %v6871_v59  ;;  %3636 = vmatpush1.bf16.msra.mxu1 %v6745_v61  ;;  %v6801_v59 = vcombine.low %v375_v49, %v379_v50  ;;  %v114_v61 = vld [vmem:[%s8425_s0 + $0x20] sm:$0xff] }
 0x198   :  { %3508 = vmatprep.subr.bf16.mxu0 %v6880_v62  ;;  %3637 = vmatprep.subr.bf16.mxu1 %v6754_v63  ;;  %v121_v62 = vld [vmem:[%s8425_s0 + $0x58] sm:$0xff]  ;;  %v6810_v63 = vcombine.high %v383_v30, %v387_v55 }
 0x199   :  { %v8318_v4 = vpack.c.bf16 %v121_v62, %v114_v61 }
 0x19b   :  { %3509 = vmatpush1.bf16.msra.mxu0 %v6879_v5  ;;  %3638 = vmatpush1.bf16.msra.mxu1 %v6753_v6  ;;  %v128_v5 = vld [vmem:[#allocation2 + $0x10] sm:$0xff] }
 0x19c   :  { %3510 = vmatprep.subr.bf16.mxu0 %v6888_v7  ;;  %3639 = vmatprep.subr.bf16.mxu1 %v6762_v8  ;;  %v132_v6 = vld [vmem:[#allocation2 + $0x30] sm:$0xff]  ;;  %v6809_v7 = vcombine.low %v383_v30, %v387_v55  ;;  %v6935_v8 = vcombine.low %v510_v56, %v514_v57  ;;  %v439_v30 = vld [vmem:[#allocation2 + $0x9c8] sm:$0xff] }
 0x19d   :  { %v6556_v13 = vcombine.high %v128_v5, %v132_v6  ;;  %v6555_v28 = vcombine.low %v128_v5, %v132_v6  ;;  %v443_v55 = vld [vmem:[#allocation2 + $0x9e8] sm:$0xff] }
 0x19e   :  { %v451_v5 = vld [vmem:[#allocation2 + $0xa28] sm:$0xff] }
 0x19f   :  { %3511 = vmatpush1.bf16.msra.mxu0 %v6887_v14  ;;  %3640 = vmatpush1.bf16.msra.mxu1 %v6761_v15  ;;  %v6817_v14 = vcombine.low %v391_v2, %v395_v3  ;;  %v6826_v15 = vcombine.high %v399_v10, %v403_v11  ;;  %v172_v2 = vld [vmem:[#allocation2 + $0x170] sm:$0xff]  ;;  %v447_v3 = vld [vmem:[#allocation2 + $0xa08] sm:$0xff] }
 0x1a0   :  { %3512 = vmatprep.subr.bf16.mxu0 %v6896_v16  ;;  %3641 = vmatprep.subr.bf16.mxu1 %v6770_v17  ;;  %v407_v16 = vld [vmem:[#allocation2 + $0x8c8] sm:$0xff]  ;;  %v176_v10 = vld [vmem:[#allocation2 + $0x190] sm:$0xff] }
 0x1a1   :  { %v411_v17 = vld [vmem:[#allocation2 + $0x8e8] sm:$0xff]  ;;  %v180_v11 = vld [vmem:[#allocation2 + $0x1b0] sm:$0xff] }
 0x1a2   :  { %v6834_v21 = vcombine.high %v407_v16, %v411_v17  ;;  %v6833_v31 = vcombine.low %v407_v16, %v411_v17  ;;  %v6873_v16 = vcombine.low %v447_v3, %v451_v5  ;;  %v6604_v17 = vcombine.high %v176_v10, %v180_v11 }
 0x1a3   :  { %3513 = vmatpush1.bf16.msra.mxu0 %v6895_v22  ;;  %3642 = vmatpush1.bf16.msra.mxu1 %v6769_v23  ;;  %v136_v22 = vld [vmem:[#allocation2 + $0x50] sm:$0xff] }
 0x1a4   :  { %3514 = vmatprep.subr.bf16.mxu0 %v6904_v24  ;;  %3643 = vmatprep.subr.bf16.mxu1 %v6778_v25  ;;  %v140_v23 = vld [vmem:[#allocation2 + $0x70] sm:$0xff]  ;;  %v415_v24 = vld [vmem:[#allocation2 + $0x908] sm:$0xff] }
 0x1a5   :  { %v419_v25 = vld [vmem:[#allocation2 + $0x928] sm:$0xff]  ;;  %v6564_v32 = vcombine.high %v136_v22, %v140_v23  ;;  %v6563_v36 = vcombine.low %v136_v22, %v140_v23  ;;  %v6603_v23 = vcombine.low %v176_v10, %v180_v11 }
 0x1a6   :  { %v6841_v37 = vcombine.low %v415_v24, %v419_v25  ;;  %v467_v22 = vld [vmem:[#allocation2 + $0xaa8] sm:$0xff] }
 0x1a7   :  { %3515 = vmatpush1.bf16.msra.mxu0 %v6903_v33  ;;  %3644 = vmatpush1.bf16.msra.mxu1 %v6777_v34  ;;  %v6842_v33 = vcombine.high %v415_v24, %v419_v25  ;;  %v144_v34 = vld [vmem:[#allocation2 + $0x90] sm:$0xff]  ;;  %v6612_v25 = vcombine.high %v184_v19, %v188_v20  ;;  %v507_v10 = vld [vmem:[#allocation2 + $0xbe8] sm:$0xff] }
 0x1a8   :  { %3516 = vmatprep.subr.bf16.mxu0 %v6912_v38  ;;  %3645 = vmatprep.subr.bf16.mxu1 %v6786_v42  ;;  %v148_v38 = vld [vmem:[#allocation2 + $0xb0] sm:$0xff]  ;;  %v423_v42 = vld [vmem:[#allocation2 + $0x948] sm:$0xff] }
 0x1a9   :  { %v6572_v39 = vcombine.high %v144_v34, %v148_v38  ;;  %v6571_v48 = vcombine.low %v144_v34, %v148_v38  ;;  %v6849_v49 = vcombine.low %v423_v42, %v427_v44  ;;  %v475_v34 = vld [vmem:[#allocation2 + $0xae8] sm:$0xff]  ;;  %v6611_v38 = vcombine.low %v184_v19, %v188_v20 }
 0x1aa   :  { %v515_v19 = vld [vmem:[#allocation2 + $0xc28] sm:$0xff] }
 0x1ab   :  { %3517 = vmatpush1.bf16.msra.mxu0 %v6911_v40  ;;  %3646 = vmatpush1.bf16.msra.mxu1 %v6785_v41  ;;  %v6850_v40 = vcombine.high %v423_v42, %v427_v44  ;;  %v152_v41 = vld [vmem:[#allocation2 + $0xd0] sm:$0xff] }
 0x1ac   :  { %3518 = vmatprep.subr.bf16.mxu0 %v6920_v43  ;;  %3647 = vmatprep.subr.bf16.mxu1 %v6794_v45  ;;  %v156_v43 = vld [vmem:[#allocation2 + $0xf0] sm:$0xff]  ;;  %v431_v45 = vld [vmem:[#allocation2 + $0x988] sm:$0xff] }
 0x1ad   :  { %v6580_v50 = vcombine.high %v152_v41, %v156_v43 }
 0x1af   :  { %3519 = vmatpush1.bf16.msra.mxu0 %v6919_v52  ;;  %3648 = vmatpush1.bf16.msra.mxu1 %v6793_v53  ;;  %v6858_v52 = vcombine.high %v431_v45, %v435_v47  ;;  %v160_v53 = vld [vmem:[#allocation2 + $0x110] sm:$0xff] }
 0x1b0   :  { %3520 = vmatprep.subr.bf16.mxu0 %v6928_v54  ;;  %3649 = vmatprep.subr.bf16.mxu1 %v6802_v26  ;;  %v164_v26 = vld [vmem:[#allocation2 + $0x130] sm:$0xff] }
 0x1b1   :  { %v6588_v62 = vcombine.high %v160_v53, %v164_v26  ;;  %v6587_v6 = vcombine.low %v160_v53, %v164_v26  ;;  %v491_v53 = vld [vmem:[#allocation2 + $0xb68] sm:$0xff] }
 0x1b3   :  { %3521 = vmatpush1.bf16.msra.mxu0 %v6927_v58  ;;  %3650 = vmatpush1.bf16.msra.mxu1 %v6801_v59  ;;  %v6579_v58 = vcombine.low %v152_v41, %v156_v43  ;;  %v6857_v59 = vcombine.low %v431_v45, %v435_v47  ;;  %v483_v41 = vld [vmem:[#allocation2 + $0xb28] sm:$0xff] }
 0x1b4   :  { %3662 = vmatprep.subr.bf16.mxu1 %v6810_v63  ;;  %3533 = vmatprep.subr.bf16.mxu0 %v6936_v1  ;;  %v6866_v63 = vcombine.high %v439_v30, %v443_v55  ;;  %v168_v1 = vld [vmem:[#allocation2 + $0x150] sm:$0xff] }
 0x1b6   :  { %3523 = vmatmul.mubr.bf16.vlgmr.msra.gmra.mrb[4].mxu0 %v8318_v4  ;;  %3652 = vmatmul.mubr.bf16.vlgmr.msra.gmra.mrb[4].mxu1 %v8298_v51 }
 0x1b7   :  { %3663 = vmatpush1.bf16.msra.mxu1 %v6809_v7  ;;  %3534 = vmatpush1.bf16.msra.mxu0 %v6935_v8  ;;  %v6865_v7 = vcombine.low %v439_v30, %v443_v55  ;;  %v6596_v8 = vcombine.high %v168_v1, %v172_v2 }
 0x1b8   :  { %3664 = vmatprep.subr.bf16.mxu1 %v6818_v9  ;;  %3565 = vmatprep.mubr.bf16.mxu0 %v8068_v0  ;;  %v6874_v9 = vcombine.high %v447_v3, %v451_v5 }
 0x1b9   :  { %3748 = vmatprep.subr.bf16.mxu0 %v6556_v13  ;;  %3694 = vmatprep.mubr.bf16.mxu1 %v8306_v60  ;;  %v455_v13 = vld [vmem:[#allocation2 + $0xa48] sm:$0xff] }
 0x1bb   :  { %3665 = vmatpush1.bf16.msra.mxu1 %v6817_v14  ;;  %v459_v14 = vld [vmem:[#allocation2 + $0xa68] sm:$0xff] }
 0x1bc   :  { %3666 = vmatprep.subr.bf16.mxu1 %v6826_v15  ;;  %v6595_v15 = vcombine.low %v168_v1, %v172_v2  ;;  %v6881_v24 = vcombine.low %v455_v13, %v459_v14  ;;  %v499_v1 = vld [vmem:[#allocation2 + $0xba8] sm:$0xff] }
 0x1bf   :  { %3667 = vmatpush1.bf16.msra.mxu1 %v6825_v18  ;;  %v6882_v18 = vcombine.high %v455_v13, %v459_v14 }
 0x1c0   :  { %3668 = vmatprep.subr.bf16.mxu1 %v6834_v21  ;;  %v463_v21 = vld [vmem:[#allocation2 + $0xa88] sm:$0xff] }
 0x1c1   :  { %v6889_v42 = vcombine.low %v463_v21, %v467_v22 }
 0x1c2   :  { %6943 = vmatmul.mubr.msk.bf16.vlgmr.msra.gmra.mrb[4].mxu0 %vm3400_vm3, %v8330_v27 }
 0x1c3   :  { %3749 = vmatpush1.bf16.msra.mxu0 %v6555_v28  ;;  %3669 = vmatpush1.bf16.msra.mxu1 %v6833_v31  ;;  %v6890_v28 = vcombine.high %v463_v21, %v467_v22  ;;  %v192_v31 = vld [vmem:[#allocation2 + $0x210] sm:$0xff] }
 0x1c4   :  { %3750 = vmatprep.subr.bf16.mxu0 %v6564_v32  ;;  %3670 = vmatprep.subr.bf16.mxu1 %v6842_v33  ;;  %v196_v32 = vld [vmem:[#allocation2 + $0x230] sm:$0xff]  ;;  %v471_v33 = vld [vmem:[#allocation2 + $0xac8] sm:$0xff] }
 0x1c5   :  { %3780 = vmatprep.mubr.bf16.mxu0 %v8250_v29  ;;  %v6620_v44 = vcombine.high %v192_v31, %v196_v32  ;;  %v6619_v43 = vcombine.low %v192_v31, %v196_v32  ;;  %v6897_v45 = vcombine.low %v471_v33, %v475_v34  ;;  %v133_v31 = vld [vmem:[#allocation2 + $0x38] sm:$0xff] }
 0x1c7   :  { %3751 = vmatpush1.bf16.msra.mxu0 %v6563_v36  ;;  %3671 = vmatpush1.bf16.msra.mxu1 %v6841_v37  ;;  %v6898_v36 = vcombine.high %v471_v33, %v475_v34  ;;  %v200_v37 = vld [vmem:[#allocation2 + $0x250] sm:$0xff] }
 0x1c8   :  { %3752 = vmatprep.subr.bf16.mxu0 %v6572_v39  ;;  %3672 = vmatprep.subr.bf16.mxu1 %v6850_v40  ;;  %v204_v39 = vld [vmem:[#allocation2 + $0x270] sm:$0xff]  ;;  %v479_v40 = vld [vmem:[#allocation2 + $0xb08] sm:$0xff] }
 0x1c9   :  { %v8335_v54 = vpop.f32.mrb[0].mxu1  ;;  %v6628_v47 = vcombine.high %v200_v37, %v204_v39  ;;  %v6627_v26 = vcombine.low %v200_v37, %v204_v39  ;;  %v6905_v30 = vcombine.low %v479_v40, %v483_v41  ;;  %v256_v39 = vld [vmem:[#allocation2 + $0x410] sm:$0xff] }
 0x1ca   :  { %v8337_v56 = vpop.f32.mrb[1].mxu1 }
 0x1cb   :  { %3753 = vmatpush1.bf16.msra.mxu0 %v6571_v48  ;;  %3673 = vmatpush1.bf16.msra.mxu1 %v6849_v49  ;;  %v8339_v57 = vpop.f32.mrb[2].mxu1  ;;  %v6906_v48 = vcombine.high %v479_v40, %v483_v41  ;;  %v208_v49 = vld [vmem:[#allocation2 + $0x290] sm:$0xff] }
 0x1cc   :  { %v8341_v61 = vpop.f32.mrb[3].mxu1  ;;  %3754 = vmatprep.subr.bf16.mxu0 %v6580_v50  ;;  %3674 = vmatprep.subr.bf16.mxu1 %v6858_v52  ;;  %v212_v50 = vld [vmem:[#allocation2 + $0x2b0] sm:$0xff]  ;;  %v487_v52 = vld [vmem:[#allocation2 + $0xb48] sm:$0xff] }
 0x1cd   :  { %v6636_v55 = vcombine.high %v208_v49, %v212_v50  ;;  %v6635_v2 = vcombine.low %v208_v49, %v212_v50  ;;  %v6913_v3 = vcombine.low %v487_v52, %v491_v53  ;;  %v260_v40 = vld [vmem:[#allocation2 + $0x430] sm:$0xff]  ;;  %v141_v49 = vld [vmem:[#allocation2 + $0x78] sm:$0xff] }
 0x1ce   :  { %v6683_v50 = vcombine.low %v256_v39, %v260_v40 }
 0x1cf   :  { %3755 = vmatpush1.bf16.msra.mxu0 %v6579_v58  ;;  %3675 = vmatpush1.bf16.msra.mxu1 %v6857_v59  ;;  %v6914_v58 = vcombine.high %v487_v52, %v491_v53  ;;  %v216_v59 = vld [vmem:[#allocation2 + $0x2d0] sm:$0xff] }
 0x1d0   :  { %3756 = vmatprep.subr.bf16.mxu0 %v6588_v62  ;;  %3676 = vmatprep.subr.bf16.mxu1 %v6866_v63  ;;  %v220_v62 = vld [vmem:[#allocation2 + $0x2f0] sm:$0xff]  ;;  %v495_v63 = vld [vmem:[#allocation2 + $0xb88] sm:$0xff] }
 0x1d1   :  { %v6644_v5 = vcombine.high %v216_v59, %v220_v62  ;;  %v6643_v11 = vcombine.low %v216_v59, %v220_v62  ;;  %v6921_v13 = vcombine.low %v495_v63, %v499_v1  ;;  %v149_v59 = vld [vmem:[#allocation2 + $0xb8] sm:$0xff] }
 0x1d3   :  { %3757 = vmatpush1.bf16.msra.mxu0 %v6587_v6  ;;  %3677 = vmatpush1.bf16.msra.mxu1 %v6865_v7  ;;  %v6922_v6 = vcombine.high %v495_v63, %v499_v1  ;;  %v224_v7 = vld [vmem:[#allocation2 + $0x310] sm:$0xff] }
 0x1d4   :  { %3758 = vmatprep.subr.bf16.mxu0 %v6596_v8  ;;  %3678 = vmatprep.subr.bf16.mxu1 %v6874_v9  ;;  %v228_v8 = vld [vmem:[#allocation2 + $0x330] sm:$0xff]  ;;  %v503_v9 = vld [vmem:[#allocation2 + $0xbc8] sm:$0xff] }
 0x1d5   :  { %v6652_v14 = vcombine.high %v224_v7, %v228_v8  ;;  %v6651_v20 = vcombine.low %v224_v7, %v228_v8  ;;  %v6929_v21 = vcombine.low %v503_v9, %v507_v10  ;;  %v157_v7 = vld [vmem:[#allocation2 + $0xf8] sm:$0xff] }
 0x1d7   :  { %3759 = vmatpush1.bf16.msra.mxu0 %v6595_v15  ;;  %3679 = vmatpush1.bf16.msra.mxu1 %v6873_v16  ;;  %v6930_v15 = vcombine.high %v503_v9, %v507_v10  ;;  %v232_v16 = vld [vmem:[#allocation2 + $0x350] sm:$0xff] }
 0x1d8   :  { %3760 = vmatprep.subr.bf16.mxu0 %v6604_v17  ;;  %3680 = vmatprep.subr.bf16.mxu1 %v6882_v18  ;;  %v236_v17 = vld [vmem:[#allocation2 + $0x370] sm:$0xff]  ;;  %v511_v18 = vld [vmem:[#allocation2 + $0xc08] sm:$0xff] }
 0x1d9   :  { %v6660_v22 = vcombine.high %v232_v16, %v236_v17  ;;  %v6659_v32 = vcombine.low %v232_v16, %v236_v17  ;;  %v6937_v33 = vcombine.low %v511_v18, %v515_v19  ;;  %v165_v16 = vld [vmem:[#allocation2 + $0x138] sm:$0xff] }
 0x1db   :  { %3761 = vmatpush1.bf16.msra.mxu0 %v6603_v23  ;;  %3681 = vmatpush1.bf16.msra.mxu1 %v6881_v24  ;;  %v6938_v23 = vcombine.high %v511_v18, %v515_v19  ;;  %v240_v24 = vld [vmem:[#allocation2 + $0x390] sm:$0xff] }
 0x1dc   :  { %3762 = vmatprep.subr.bf16.mxu0 %v6612_v25  ;;  %3682 = vmatprep.subr.bf16.mxu1 %v6890_v28  ;;  %v244_v25 = vld [vmem:[#allocation2 + $0x3b0] sm:$0xff]  ;;  %v129_v28 = vld [vmem:[#allocation2 + $0x18] sm:$0xff] }
 0x1dd   :  { %v6668_v34 = vcombine.high %v240_v24, %v244_v25  ;;  %v6557_v52 = vcombine.low %v129_v28, %v133_v31 }
 0x1df   :  { %3763 = vmatpush1.bf16.msra.mxu0 %v6611_v38  ;;  %3683 = vmatpush1.bf16.msra.mxu1 %v6889_v42  ;;  %v248_v38 = vld [vmem:[#allocation2 + $0x3d0] sm:$0xff] }
 0x1e0   :  { %3764 = vmatprep.subr.bf16.mxu0 %v6620_v44  ;;  %3684 = vmatprep.subr.bf16.mxu1 %v6898_v36  ;;  %v252_v42 = vld [vmem:[#allocation2 + $0x3f0] sm:$0xff]  ;;  %v6558_v44 = vcombine.high %v129_v28, %v133_v31  ;;  %v6667_v36 = vcombine.low %v240_v24, %v244_v25 }
 0x1e1   :  { %v6676_v37 = vcombine.high %v248_v38, %v252_v42  ;;  %v6675_v41 = vcombine.low %v248_v38, %v252_v42  ;;  %v181_v38 = vld [vmem:[#allocation2 + $0x1b8] sm:$0xff] }
 0x1e3   :  { %3765 = vmatpush1.bf16.msra.mxu0 %v6619_v43  ;;  %3685 = vmatpush1.bf16.msra.mxu1 %v6897_v45  ;;  %v6684_v43 = vcombine.high %v256_v39, %v260_v40  ;;  %v264_v45 = vld [vmem:[#allocation2 + $0x450] sm:$0xff]  ;;  %v8350_v40 = vld [vmem:[#allocation10] sm:$0xff] }
 0x1e4   :  { %3766 = vmatprep.subr.bf16.mxu0 %v6628_v47  ;;  %3686 = vmatprep.subr.bf16.mxu1 %v6906_v48  ;;  %v268_v47 = vld [vmem:[#allocation2 + $0x470] sm:$0xff]  ;;  %v137_v48 = vld [vmem:[#allocation2 + $0x58] sm:$0xff] }
 0x1e5   :  { %v6692_v53 = vcombine.high %v264_v45, %v268_v47  ;;  %v6691_v62 = vcombine.low %v264_v45, %v268_v47  ;;  %v6565_v63 = vcombine.low %v137_v48, %v141_v49  ;;  %v312_v39 = vld [vmem:[#allocation2 + $0x5d0] sm:$0xff]  ;;  %v189_v45 = vld [vmem:[#allocation2 + $0x1f8] sm:$0xff]  ;;  %6456 = vperm.xlu1 %7403, %v8350_v40  }
 0x1e7   :  { %3767 = vmatpush1.bf16.msra.mxu0 %v6627_v26  ;;  %3687 = vmatpush1.bf16.msra.mxu1 %v6905_v30  ;;  %v6566_v26 = vcombine.high %v137_v48, %v141_v49  ;;  %v272_v30 = vld [vmem:[#allocation2 + $0x490] sm:$0xff] }
 0x1e8   :  { %3768 = vmatprep.subr.bf16.mxu0 %v6636_v55  ;;  %3688 = vmatprep.subr.bf16.mxu1 %v6914_v58  ;;  %v276_v55 = vld [vmem:[#allocation2 + $0x4b0] sm:$0xff]  ;;  %v145_v58 = vld [vmem:[#allocation2 + $0x98] sm:$0xff] }
 0x1e9   :  { %v6700_v1 = vcombine.high %v272_v30, %v276_v55  ;;  %v6699_v8 = vcombine.low %v272_v30, %v276_v55  ;;  %v6573_v9 = vcombine.low %v145_v58, %v149_v59  ;;  %v197_v30 = vld [vmem:[#allocation2 + $0x238] sm:$0xff] }
 0x1eb   :  { %3769 = vmatpush1.bf16.msra.mxu0 %v6635_v2  ;;  %3689 = vmatpush1.bf16.msra.mxu1 %v6913_v3  ;;  %v6574_v2 = vcombine.high %v145_v58, %v149_v59  ;;  %v280_v3 = vld [vmem:[#allocation2 + $0x4d0] sm:$0xff] }
 0x1ec   :  { %3770 = vmatprep.subr.bf16.mxu0 %v6644_v5  ;;  %3690 = vmatprep.subr.bf16.mxu1 %v6922_v6  ;;  %v284_v5 = vld [vmem:[#allocation2 + $0x4f0] sm:$0xff]  ;;  %v153_v6 = vld [vmem:[#allocation2 + $0xd8] sm:$0xff] }
 0x1ed   :  { %v6708_v10 = vcombine.high %v280_v3, %v284_v5  ;;  %v6707_v17 = vcombine.low %v280_v3, %v284_v5  ;;  %v6581_v18 = vcombine.low %v153_v6, %v157_v7  ;;  %v205_v3 = vld [vmem:[#allocation2 + $0x278] sm:$0xff] }
 0x1ef   :  { %3771 = vmatpush1.bf16.msra.mxu0 %v6643_v11  ;;  %3691 = vmatpush1.bf16.msra.mxu1 %v6921_v13  ;;  %v6582_v11 = vcombine.high %v153_v6, %v157_v7  ;;  %v288_v13 = vld [vmem:[#allocation2 + $0x510] sm:$0xff] }
 0x1f0   :  { %3772 = vmatprep.subr.bf16.mxu0 %v6652_v14  ;;  %3692 = vmatprep.subr.bf16.mxu1 %v6930_v15  ;;  %v292_v14 = vld [vmem:[#allocation2 + $0x530] sm:$0xff]  ;;  %v161_v15 = vld [vmem:[#allocation2 + $0x118] sm:$0xff] }
 0x1f1   :  { %v6716_v19 = vcombine.high %v288_v13, %v292_v14  ;;  %v6715_v24 = vcombine.low %v288_v13, %v292_v14  ;;  %v6589_v25 = vcombine.low %v161_v15, %v165_v16  ;;  %v213_v13 = vld [vmem:[#allocation2 + $0x2b8] sm:$0xff] }
 0x1f3   :  { %3773 = vmatpush1.bf16.msra.mxu0 %v6651_v20  ;;  %3693 = vmatpush1.bf16.msra.mxu1 %v6929_v21  ;;  %v296_v20 = vld [vmem:[#allocation2 + $0x550] sm:$0xff] }
 0x1f4   :  { %3774 = vmatprep.subr.bf16.mxu0 %v6660_v22  ;;  %3705 = vmatprep.subr.bf16.mxu1 %v6938_v23  ;;  %v300_v21 = vld [vmem:[#allocation2 + $0x570] sm:$0xff]  ;;  %v169_v22 = vld [vmem:[#allocation2 + $0x158] sm:$0xff] }
 0x1f5   :  { %v173_v23 = vld [vmem:[#allocation2 + $0x178] sm:$0xff]  ;;  %v6724_v28 = vcombine.high %v296_v20, %v300_v21  ;;  %v6723_v42 = vcombine.low %v296_v20, %v300_v21 }
 0x1f6   :  { %3695 = vmatmul.mubr.bf16.vlgmr.msra.gmra.mrb[4].mxu1 %v8318_v4  ;;  %v6598_v31 = vcombine.high %v169_v22, %v173_v23  ;;  %v221_v20 = vld [vmem:[#allocation2 + $0x2f8] sm:$0xff] }
 0x1f7   :  { %3775 = vmatpush1.bf16.msra.mxu0 %v6659_v32  ;;  %3706 = vmatpush1.bf16.msra.mxu1 %v6937_v33  ;;  %v304_v32 = vld [vmem:[#allocation2 + $0x590] sm:$0xff] }
 0x1f8   :  { %3776 = vmatprep.subr.bf16.mxu0 %v6668_v34  ;;  %3737 = vmatprep.mubr.bf16.mxu1 %v8068_v0  ;;  %v308_v33 = vld [vmem:[#allocation2 + $0x5b0] sm:$0xff]  ;;  %v177_v34 = vld [vmem:[#allocation2 + $0x198] sm:$0xff] }
 0x1f9   :  { %3920 = vmatprep.subr.bf16.mxu1 %v6558_v44  ;;  %v6597_v44 = vcombine.low %v169_v22, %v173_v23  ;;  %v6731_v47 = vcombine.low %v304_v32, %v308_v33  ;;  %v6605_v48 = vcombine.low %v177_v34, %v181_v38 }
 0x1fb   :  { %3777 = vmatpush1.bf16.msra.mxu0 %v6667_v36  ;;  %v6732_v36 = vcombine.high %v304_v32, %v308_v33  ;;  %v229_v32 = vld [vmem:[#allocation2 + $0x338] sm:$0xff] }
 0x1fc   :  { %3778 = vmatprep.subr.bf16.mxu0 %v6676_v37  ;;  %v6606_v37 = vcombine.high %v177_v34, %v181_v38 }
 0x1ff   :  { %3779 = vmatpush1.bf16.msra.mxu0 %v6675_v41  ;;  %v316_v41 = vld [vmem:[#allocation2 + $0x5f0] sm:$0xff] }
 0x200   :  { %3791 = vmatprep.subr.bf16.mxu0 %v6684_v43  ;;  %v185_v43 = vld [vmem:[#allocation2 + $0x1d8] sm:$0xff]  ;;  %v6740_v49 = vcombine.high %v312_v39, %v316_v41  ;;  %v6739_v55 = vcombine.low %v312_v39, %v316_v41 }
 0x201   :  { %v6613_v58 = vcombine.low %v185_v43, %v189_v45  ;;  %v237_v39 = vld [vmem:[#allocation2 + $0x378] sm:$0xff] }
 0x202   :  { %6944 = vmatmul.mubr.msk.bf16.vlgmr.msra.gmra.mrb[4].mxu1 %vm3400_vm3, %v8330_v27  ;;  %3781 = vmatmul.mubr.bf16.vlgmr.msra.gmra.mrb[0].mxu0 %v8276_v35 }
 0x203   :  { %3792 = vmatpush1.bf16.msra.mxu0 %v6683_v50  ;;  %3921 = vmatpush1.bf16.msra.mxu1 %v6557_v52  ;;  %v6614_v50 = vcombine.high %v185_v43, %v189_v45  ;;  %v320_v52 = vld [vmem:[#allocation2 + $0x610] sm:$0xff] }
 0x204   :  { %3793 = vmatprep.subr.bf16.mxu0 %v6692_v53  ;;  %3922 = vmatprep.subr.bf16.mxu1 %v6566_v26  ;;  %v324_v53 = vld [vmem:[#allocation2 + $0x630] sm:$0xff]  ;;  %v193_v26 = vld [vmem:[#allocation2 + $0x218] sm:$0xff] }
 0x205   :  { %3823 = vmatprep.mubr.bf16.mxu0 %v8284_v46  ;;  %3952 = vmatprep.mubr.bf16.mxu1 %v8250_v29  ;;  %v6590_v29 = vcombine.high %v161_v15, %v165_v16  ;;  %v6748_v59 = vcombine.high %v320_v52, %v324_v53  ;;  %v6747_v5 = vcombine.low %v320_v52, %v324_v53  ;;  %v245_v52 = vld [vmem:[#allocation2 + $0x3b8] sm:$0xff] }
 0x206   :  { %v6621_v6 = vcombine.low %v193_v26, %v197_v30 }
 0x207   :  { %3794 = vmatpush1.bf16.msra.mxu0 %v6691_v62  ;;  %3923 = vmatpush1.bf16.msra.mxu1 %v6565_v63  ;;  %v6622_v62 = vcombine.high %v193_v26, %v197_v30  ;;  %v328_v63 = vld [vmem:[#allocation2 + $0x650] sm:$0xff] }
 0x208   :  { %3795 = vmatprep.subr.bf16.mxu0 %v6700_v1  ;;  %3924 = vmatprep.subr.bf16.mxu1 %v6574_v2  ;;  %v332_v1 = vld [vmem:[#allocation2 + $0x670] sm:$0xff]  ;;  %v201_v2 = vld [vmem:[#allocation2 + $0x258] sm:$0xff] }
 0x209   :  { %v6756_v7 = vcombine.high %v328_v63, %v332_v1  ;;  %v6755_v14 = vcombine.low %v328_v63, %v332_v1  ;;  %v6629_v15 = vcombine.low %v201_v2, %v205_v3  ;;  %v253_v63 = vld [vmem:[#allocation2 + $0x3f8] sm:$0xff] }
 0x20b   :  { %3796 = vmatpush1.bf16.msra.mxu0 %v6699_v8  ;;  %3925 = vmatpush1.bf16.msra.mxu1 %v6573_v9  ;;  %v6630_v8 = vcombine.high %v201_v2, %v205_v3  ;;  %v336_v9 = vld [vmem:[#allocation2 + $0x690] sm:$0xff] }
 0x20c   :  { %3797 = vmatprep.subr.bf16.mxu0 %v6708_v10  ;;  %3926 = vmatprep.subr.bf16.mxu1 %v6582_v11  ;;  %v340_v10 = vld [vmem:[#allocation2 + $0x6b0] sm:$0xff]  ;;  %v209_v11 = vld [vmem:[#allocation2 + $0x298] sm:$0xff] }
 0x20d   :  { %v6764_v16 = vcombine.high %v336_v9, %v340_v10  ;;  %v6763_v21 = vcombine.low %v336_v9, %v340_v10  ;;  %v6637_v22 = vcombine.low %v209_v11, %v213_v13  ;;  %v261_v9 = vld [vmem:[#allocation2 + $0x438] sm:$0xff] }
 0x20f   :  { %3798 = vmatpush1.bf16.msra.mxu0 %v6707_v17  ;;  %3927 = vmatpush1.bf16.msra.mxu1 %v6581_v18  ;;  %v6638_v17 = vcombine.high %v209_v11, %v213_v13  ;;  %v344_v18 = vld [vmem:[#allocation2 + $0x6d0] sm:$0xff] }
 0x210   :  { %3799 = vmatprep.subr.bf16.mxu0 %v6716_v19  ;;  %3928 = vmatprep.subr.bf16.mxu1 %v6590_v29  ;;  %v348_v19 = vld [vmem:[#allocation2 + $0x6f0] sm:$0xff]  ;;  %v217_v29 = vld [vmem:[#allocation2 + $0x2d8] sm:$0xff] }
 0x211   :  { %v6772_v23 = vcombine.high %v344_v18, %v348_v19  ;;  %v6771_v33 = vcombine.low %v344_v18, %v348_v19  ;;  %v6645_v34 = vcombine.low %v217_v29, %v221_v20  ;;  %v269_v18 = vld [vmem:[#allocation2 + $0x478] sm:$0xff] }
 0x213   :  { %3800 = vmatpush1.bf16.msra.mxu0 %v6715_v24  ;;  %3929 = vmatpush1.bf16.msra.mxu1 %v6589_v25  ;;  %v6646_v24 = vcombine.high %v217_v29, %v221_v20  ;;  %v352_v25 = vld [vmem:[#allocation2 + $0x710] sm:$0xff] }
 0x214   :  { %3801 = vmatprep.subr.bf16.mxu0 %v6724_v28  ;;  %3930 = vmatprep.subr.bf16.mxu1 %v6598_v31  ;;  %v356_v28 = vld [vmem:[#allocation2 + $0x730] sm:$0xff]  ;;  %v225_v31 = vld [vmem:[#allocation2 + $0x318] sm:$0xff] }
 0x215   :  { %v6780_v38 = vcombine.high %v352_v25, %v356_v28  ;;  %v6779_v41 = vcombine.low %v352_v25, %v356_v28  ;;  %v6653_v43 = vcombine.low %v225_v31, %v229_v32  ;;  %v277_v25 = vld [vmem:[#allocation2 + $0x4b8] sm:$0xff] }
 0x217   :  { %3802 = vmatpush1.bf16.msra.mxu0 %v6723_v42  ;;  %3931 = vmatpush1.bf16.msra.mxu1 %v6597_v44  ;;  %v6654_v42 = vcombine.high %v225_v31, %v229_v32  ;;  %v360_v44 = vld [vmem:[#allocation2 + $0x750] sm:$0xff] }
 0x218   :  { %3803 = vmatprep.subr.bf16.mxu0 %v6732_v36  ;;  %3932 = vmatprep.subr.bf16.mxu1 %v6606_v37  ;;  %v364_v36 = vld [vmem:[#allocation2 + $0x770] sm:$0xff]  ;;  %v233_v37 = vld [vmem:[#allocation2 + $0x358] sm:$0xff] }
 0x219   :  { %v6788_v45 = vcombine.high %v360_v44, %v364_v36  ;;  %v6787_v53 = vcombine.low %v360_v44, %v364_v36  ;;  %v6661_v26 = vcombine.low %v233_v37, %v237_v39  ;;  %v285_v44 = vld [vmem:[#allocation2 + $0x4f8] sm:$0xff] }
 0x21b   :  { %3804 = vmatpush1.bf16.msra.mxu0 %v6731_v47  ;;  %3933 = vmatpush1.bf16.msra.mxu1 %v6605_v48  ;;  %v6662_v47 = vcombine.high %v233_v37, %v237_v39  ;;  %v368_v48 = vld [vmem:[#allocation2 + $0x790] sm:$0xff] }
 0x21c   :  { %3805 = vmatprep.subr.bf16.mxu0 %v6740_v49  ;;  %3934 = vmatprep.subr.bf16.mxu1 %v6614_v50  ;;  %v372_v49 = vld [vmem:[#allocation2 + $0x7b0] sm:$0xff]  ;;  %v241_v50 = vld [vmem:[#allocation2 + $0x398] sm:$0xff] }
 0x21d   :  { %v6796_v30 = vcombine.high %v368_v48, %v372_v49  ;;  %v6795_v1 = vcombine.low %v368_v48, %v372_v49  ;;  %v6669_v2 = vcombine.low %v241_v50, %v245_v52 }
 0x21f   :  { %3806 = vmatpush1.bf16.msra.mxu0 %v6739_v55  ;;  %3935 = vmatpush1.bf16.msra.mxu1 %v6613_v58  ;;  %v6670_v55 = vcombine.high %v241_v50, %v245_v52  ;;  %v376_v58 = vld [vmem:[#allocation2 + $0x7d0] sm:$0xff] }
 0x220   :  { %3807 = vmatprep.subr.bf16.mxu0 %v6748_v59  ;;  %3936 = vmatprep.subr.bf16.mxu1 %v6622_v62  ;;  %v380_v59 = vld [vmem:[#allocation2 + $0x7f0] sm:$0xff]  ;;  %v249_v62 = vld [vmem:[#allocation2 + $0x3d8] sm:$0xff] }
 0x221   :  { %v6804_v3 = vcombine.high %v376_v58, %v380_v59  ;;  %v6803_v10 = vcombine.low %v376_v58, %v380_v59  ;;  %v6677_v11 = vcombine.low %v249_v62, %v253_v63  ;;  %v424_v52 = vld [vmem:[#allocation2 + $0x950] sm:$0xff] }
 0x223   :  { %3808 = vmatpush1.bf16.msra.mxu0 %v6747_v5  ;;  %3937 = vmatpush1.bf16.msra.mxu1 %v6621_v6  ;;  %v6678_v5 = vcombine.high %v249_v62, %v253_v63  ;;  %v384_v6 = vld [vmem:[#allocation2 + $0x810] sm:$0xff] }
 0x224   :  { %3809 = vmatprep.subr.bf16.mxu0 %v6756_v7  ;;  %3938 = vmatprep.subr.bf16.mxu1 %v6630_v8  ;;  %v388_v7 = vld [vmem:[#allocation2 + $0x830] sm:$0xff]  ;;  %v257_v8 = vld [vmem:[#allocation2 + $0x418] sm:$0xff] }
 0x225   :  { %v6812_v13 = vcombine.high %v384_v6, %v388_v7  ;;  %v6811_v19 = vcombine.low %v384_v6, %v388_v7  ;;  %v6685_v29 = vcombine.low %v257_v8, %v261_v9  ;;  %v432_v63 = vld [vmem:[#allocation2 + $0x990] sm:$0xff] }
 0x227   :  { %3810 = vmatpush1.bf16.msra.mxu0 %v6755_v14  ;;  %3939 = vmatpush1.bf16.msra.mxu1 %v6629_v15  ;;  %v6686_v14 = vcombine.high %v257_v8, %v261_v9  ;;  %v392_v15 = vld [vmem:[#allocation2 + $0x850] sm:$0xff] }
 0x228   :  { %3811 = vmatprep.subr.bf16.mxu0 %v6764_v16  ;;  %3940 = vmatprep.subr.bf16.mxu1 %v6638_v17  ;;  %v396_v16 = vld [vmem:[#allocation2 + $0x870] sm:$0xff]  ;;  %v265_v17 = vld [vmem:[#allocation2 + $0x458] sm:$0xff] }
 0x229   :  { %v6820_v20 = vcombine.high %v392_v15, %v396_v16  ;;  %v6819_v28 = vcombine.low %v392_v15, %v396_v16  ;;  %v6693_v31 = vcombine.low %v265_v17, %v269_v18  ;;  %v440_v9 = vld [vmem:[#allocation2 + $0x9d0] sm:$0xff] }
 0x22b   :  { %3812 = vmatpush1.bf16.msra.mxu0 %v6763_v21  ;;  %3941 = vmatpush1.bf16.msra.mxu1 %v6637_v22  ;;  %v6694_v21 = vcombine.high %v265_v17, %v269_v18  ;;  %v400_v22 = vld [vmem:[#allocation2 + $0x890] sm:$0xff] }
 0x22c   :  { %3813 = vmatprep.subr.bf16.mxu0 %v6772_v23  ;;  %3942 = vmatprep.subr.bf16.mxu1 %v6646_v24  ;;  %v404_v23 = vld [vmem:[#allocation2 + $0x8b0] sm:$0xff]  ;;  %v273_v24 = vld [vmem:[#allocation2 + $0x498] sm:$0xff] }
 0x22d   :  { %v6828_v32 = vcombine.high %v400_v22, %v404_v23  ;;  %v6827_v36 = vcombine.low %v400_v22, %v404_v23  ;;  %v448_v18 = vld [vmem:[#allocation2 + $0xa10] sm:$0xff] }
 0x22f   :  { %3814 = vmatpush1.bf16.msra.mxu0 %v6771_v33  ;;  %3943 = vmatpush1.bf16.msra.mxu1 %v6645_v34  ;;  %v6702_v33 = vcombine.high %v273_v24, %v277_v25  ;;  %v408_v34 = vld [vmem:[#allocation2 + $0x8d0] sm:$0xff] }
 0x230   :  { %3815 = vmatprep.subr.bf16.mxu0 %v6780_v38  ;;  %3944 = vmatprep.subr.bf16.mxu1 %v6654_v42  ;;  %v412_v38 = vld [vmem:[#allocation2 + $0x8f0] sm:$0xff]  ;;  %v281_v42 = vld [vmem:[#allocation2 + $0x4d8] sm:$0xff] }
 0x231   :  { %v6836_v37 = vcombine.high %v408_v34, %v412_v38  ;;  %v6710_v39 = vcombine.high %v281_v42, %v285_v44  ;;  %v6835_v48 = vcombine.low %v408_v34, %v412_v38  ;;  %v6709_v49 = vcombine.low %v281_v42, %v285_v44  ;;  %v464_v44 = vld [vmem:[#allocation2 + $0xa90] sm:$0xff] }
 0x233   :  { %3816 = vmatpush1.bf16.msra.mxu0 %v6779_v41  ;;  %3945 = vmatpush1.bf16.msra.mxu1 %v6653_v43  ;;  %v416_v41 = vld [vmem:[#allocation2 + $0x910] sm:$0xff] }
 0x234   :  { %3817 = vmatprep.subr.bf16.mxu0 %v6788_v45  ;;  %3946 = vmatprep.subr.bf16.mxu1 %v6662_v47  ;;  %v420_v43 = vld [vmem:[#allocation2 + $0x930] sm:$0xff]  ;;  %v289_v45 = vld [vmem:[#allocation2 + $0x518] sm:$0xff] }
 0x235   :  { %v293_v47 = vld [vmem:[#allocation2 + $0x538] sm:$0xff]  ;;  %v6844_v50 = vcombine.high %v416_v41, %v420_v43 }
 0x236   :  { %v6717_v58 = vcombine.low %v289_v45, %v293_v47 }
 0x237   :  { %3818 = vmatpush1.bf16.msra.mxu0 %v6787_v53  ;;  %3947 = vmatpush1.bf16.msra.mxu1 %v6661_v26  ;;  %v428_v53 = vld [vmem:[#allocation2 + $0x970] sm:$0xff]  ;;  %v297_v26 = vld [vmem:[#allocation2 + $0x558] sm:$0xff] }
 0x238   :  { %3819 = vmatprep.subr.bf16.mxu0 %v6796_v30  ;;  %3948 = vmatprep.subr.bf16.mxu1 %v6670_v55  ;;  %v301_v30 = vld [vmem:[#allocation2 + $0x578] sm:$0xff]  ;;  %v6843_v55 = vcombine.low %v416_v41, %v420_v43  ;;  %v6852_v59 = vcombine.high %v424_v52, %v428_v53 }
 0x239   :  { %v6726_v62 = vcombine.high %v297_v26, %v301_v30  ;;  %v6725_v6 = vcombine.low %v297_v26, %v301_v30  ;;  %v480_v30 = vld [vmem:[#allocation2 + $0xb10] sm:$0xff] }
 0x23b   :  { %3820 = vmatpush1.bf16.msra.mxu0 %v6795_v1  ;;  %3949 = vmatpush1.bf16.msra.mxu1 %v6669_v2  ;;  %v436_v1 = vld [vmem:[#allocation2 + $0x9b0] sm:$0xff]  ;;  %v305_v2 = vld [vmem:[#allocation2 + $0x598] sm:$0xff] }
 0x23c   :  { %3821 = vmatprep.subr.bf16.mxu0 %v6804_v3  ;;  %3950 = vmatprep.subr.bf16.mxu1 %v6678_v5  ;;  %v309_v3 = vld [vmem:[#allocation2 + $0x5b8] sm:$0xff]  ;;  %v6851_v5 = vcombine.low %v424_v52, %v428_v53  ;;  %v6860_v7 = vcombine.high %v432_v63, %v436_v1 }
 0x23d   :  { %v6734_v8 = vcombine.high %v305_v2, %v309_v3  ;;  %v6733_v15 = vcombine.low %v305_v2, %v309_v3  ;;  %v488_v3 = vld [vmem:[#allocation2 + $0xb50] sm:$0xff] }
 0x23f   :  { %3822 = vmatpush1.bf16.msra.mxu0 %v6803_v10  ;;  %3951 = vmatpush1.bf16.msra.mxu1 %v6677_v11  ;;  %v444_v10 = vld [vmem:[#allocation2 + $0x9f0] sm:$0xff]  ;;  %v313_v11 = vld [vmem:[#allocation2 + $0x5d8] sm:$0xff] }
 0x240   :  { %3834 = vmatprep.subr.bf16.mxu0 %v6812_v13  ;;  %3963 = vmatprep.subr.bf16.mxu1 %v6686_v14  ;;  %v317_v13 = vld [vmem:[#allocation2 + $0x5f8] sm:$0xff]  ;;  %v6859_v14 = vcombine.low %v432_v63, %v436_v1  ;;  %v6868_v16 = vcombine.high %v440_v9, %v444_v10 }
 0x241   :  { %v6742_v17 = vcombine.high %v313_v11, %v317_v13  ;;  %v6741_v22 = vcombine.low %v313_v11, %v317_v13  ;;  %v496_v13 = vld [vmem:[#allocation2 + $0xb90] sm:$0xff] }
 0x242   :  { %3824 = vmatmul.mubr.bf16.vlgmr.msra.gmra.mrb[0].mxu0 %v8298_v51  ;;  %3953 = vmatmul.mubr.bf16.vlgmr.msra.gmra.mrb[8].mxu1 %v8276_v35  ;;  %v6701_v35 = vcombine.low %v273_v24, %v277_v25  ;;  %v456_v25 = vld [vmem:[#allocation2 + $0xa50] sm:$0xff] }
 0x243   :  { %3835 = vmatpush1.bf16.msra.mxu0 %v6811_v19  ;;  %3964 = vmatpush1.bf16.msra.mxu1 %v6685_v29  ;;  %v452_v19 = vld [vmem:[#allocation2 + $0xa30] sm:$0xff]  ;;  %v321_v29 = vld [vmem:[#allocation2 + $0x618] sm:$0xff] }
 0x244   :  { %3836 = vmatprep.subr.bf16.mxu0 %v6820_v20  ;;  %3965 = vmatprep.subr.bf16.mxu1 %v6694_v21  ;;  %v325_v20 = vld [vmem:[#allocation2 + $0x638] sm:$0xff]  ;;  %v6867_v21 = vcombine.low %v440_v9, %v444_v10  ;;  %v6876_v23 = vcombine.high %v448_v18, %v452_v19 }
 0x245   :  { %3866 = vmatprep.mubr.bf16.mxu0 %v8306_v60  ;;  %3995 = vmatprep.mubr.bf16.mxu1 %v8284_v46  ;;  %v6718_v46 = vcombine.high %v289_v45, %v293_v47  ;;  %v6750_v24 = vcombine.high %v321_v29, %v325_v20  ;;  %v6749_v34 = vcombine.low %v321_v29, %v325_v20  ;;  %v472_v47 = vld [vmem:[#allocation2 + $0xad0] sm:$0xff] }
 0x246   :  { %v504_v20 = vld [vmem:[#allocation2 + $0xbd0] sm:$0xff] }
 0x247   :  { %3837 = vmatpush1.bf16.msra.mxu0 %v6819_v28  ;;  %3966 = vmatpush1.bf16.msra.mxu1 %v6693_v31  ;;  %v460_v28 = vld [vmem:[#allocation2 + $0xa70] sm:$0xff]  ;;  %v329_v31 = vld [vmem:[#allocation2 + $0x658] sm:$0xff] }
 0x248   :  { %3838 = vmatprep.subr.bf16.mxu0 %v6828_v32  ;;  %3967 = vmatprep.subr.bf16.mxu1 %v6702_v33  ;;  %v333_v32 = vld [vmem:[#allocation2 + $0x678] sm:$0xff]  ;;  %v6875_v33 = vcombine.low %v448_v18, %v452_v19  ;;  %v6884_v38 = vcombine.high %v456_v25, %v460_v28 }
 0x249   :  { %v6758_v42 = vcombine.high %v329_v31, %v333_v32  ;;  %v6757_v41 = vcombine.low %v329_v31, %v333_v32  ;;  %v385_v32 = vld [vmem:[#allocation2 + $0x818] sm:$0xff] }
 0x24b   :  { %3839 = vmatpush1.bf16.msra.mxu0 %v6827_v36  ;;  %3968 = vmatpush1.bf16.msra.mxu1 %v6701_v35  ;;  %v468_v36 = vld [vmem:[#allocation2 + $0xab0] sm:$0xff]  ;;  %v337_v35 = vld [vmem:[#allocation2 + $0x698] sm:$0xff] }
 0x24c   :  { %3840 = vmatprep.subr.bf16.mxu0 %v6836_v37  ;;  %3969 = vmatprep.subr.bf16.mxu1 %v6710_v39  ;;  %v341_v37 = vld [vmem:[#allocation2 + $0x6b8] sm:$0xff]  ;;  %v6883_v39 = vcombine.low %v456_v25, %v460_v28  ;;  %v6892_v43 = vcombine.high %v464_v44, %v468_v36 }
 0x24d   :  { %v6766_v45 = vcombine.high %v337_v35, %v341_v37  ;;  %v6765_v52 = vcombine.low %v337_v35, %v341_v37  ;;  %v393_v37 = vld [vmem:[#allocation2 + $0x858] sm:$0xff] }
 0x24f   :  { %3841 = vmatpush1.bf16.msra.mxu0 %v6835_v48  ;;  %3970 = vmatpush1.bf16.msra.mxu1 %v6709_v49  ;;  %v476_v48 = vld [vmem:[#allocation2 + $0xaf0] sm:$0xff]  ;;  %v345_v49 = vld [vmem:[#allocation2 + $0x6d8] sm:$0xff] }
 0x250   :  { %3842 = vmatprep.subr.bf16.mxu0 %v6844_v50  ;;  %3971 = vmatprep.subr.bf16.mxu1 %v6718_v46  ;;  %v349_v50 = vld [vmem:[#allocation2 + $0x6f8] sm:$0xff]  ;;  %v6891_v46 = vcombine.low %v464_v44, %v468_v36  ;;  %v6900_v53 = vcombine.high %v472_v47, %v476_v48 }
 0x251   :  { %v6774_v26 = vcombine.high %v345_v49, %v349_v50  ;;  %v6773_v63 = vcombine.low %v345_v49, %v349_v50  ;;  %v7406_v49 = vld [vmem:[#allocation6 + $0x4] ss:$16 sps:$4 sm:$0xff]  }
 0x253   :  { %3843 = vmatpush1.bf16.msra.mxu0 %v6843_v55  ;;  %3972 = vmatpush1.bf16.msra.mxu1 %v6717_v58  ;;  %v484_v55 = vld [vmem:[#allocation2 + $0xb30] sm:$0xff]  ;;  %v353_v58 = vld [vmem:[#allocation2 + $0x718] sm:$0xff] }
 0x254   :  { %3844 = vmatprep.subr.bf16.mxu0 %v6852_v59  ;;  %3973 = vmatprep.subr.bf16.mxu1 %v6726_v62  ;;  %v357_v59 = vld [vmem:[#allocation2 + $0x738] sm:$0xff]  ;;  %v6899_v62 = vcombine.low %v472_v47, %v476_v48  ;;  %v6908_v1 = vcombine.high %v480_v30, %v484_v55 }
 0x255   :  { %v6782_v2 = vcombine.high %v353_v58, %v357_v59  ;;  %v6781_v9 = vcombine.low %v353_v58, %v357_v59  ;;  %v401_v47 = vld [vmem:[#allocation2 + $0x898] sm:$0xff] }
 0x256   :  { %v405_v48 = vld [vmem:[#allocation2 + $0x8b8] sm:$0xff] }
 0x257   :  { %3845 = vmatpush1.bf16.msra.mxu0 %v6851_v5  ;;  %3974 = vmatpush1.bf16.msra.mxu1 %v6725_v6  ;;  %v492_v5 = vld [vmem:[#allocation2 + $0xb70] sm:$0xff]  ;;  %v361_v6 = vld [vmem:[#allocation2 + $0x758] sm:$0xff] }
 0x258   :  { %3846 = vmatprep.subr.bf16.mxu0 %v6860_v7  ;;  %3975 = vmatprep.subr.bf16.mxu1 %v6734_v8  ;;  %v365_v7 = vld [vmem:[#allocation2 + $0x778] sm:$0xff]  ;;  %v6907_v8 = vcombine.low %v480_v30, %v484_v55  ;;  %v6916_v10 = vcombine.high %v488_v3, %v492_v5 }
 0x259   :  { %v6790_v11 = vcombine.high %v361_v6, %v365_v7  ;;  %v6789_v18 = vcombine.low %v361_v6, %v365_v7  ;;  %v417_v55 = vld [vmem:[#allocation2 + $0x918] sm:$0xff]  ;;  %v7412_v7 = vld [vmem:[#allocation6 + $0x44] ss:$16 sps:$4 sm:$0xff]  }
 0x25a   :  { %v421_v58 = vld [vmem:[#allocation2 + $0x938] sm:$0xff] }
 0x25b   :  { %3847 = vmatpush1.bf16.msra.mxu0 %v6859_v14  ;;  %3976 = vmatpush1.bf16.msra.mxu1 %v6733_v15  ;;  %v500_v14 = vld [vmem:[#allocation2 + $0xbb0] sm:$0xff]  ;;  %v369_v15 = vld [vmem:[#allocation2 + $0x798] sm:$0xff] }
 0x25c   :  { %3848 = vmatprep.subr.bf16.mxu0 %v6868_v16  ;;  %3977 = vmatprep.subr.bf16.mxu1 %v6742_v17  ;;  %v373_v16 = vld [vmem:[#allocation2 + $0x7b8] sm:$0xff]  ;;  %v6915_v17 = vcombine.low %v488_v3, %v492_v5  ;;  %v6924_v19 = vcombine.high %v496_v13, %v500_v14  ;;  %v6845_v5 = vcombine.low %v417_v55, %v421_v58 }
 0x25d   :  { %v6798_v29 = vcombine.high %v369_v15, %v373_v16  ;;  %v6797_v25 = vcombine.low %v369_v15, %v373_v16  ;;  %v429_v3 = vld [vmem:[#allocation2 + $0x978] sm:$0xff]  ;;  %v7415_v15 = vld [vmem:[#allocation6 + $0x64] ss:$16 sps:$4 sm:$0xff]  }
 0x25f   :  { %3849 = vmatpush1.bf16.msra.mxu0 %v6867_v21  ;;  %3978 = vmatpush1.bf16.msra.mxu1 %v6741_v22  ;;  %v508_v21 = vld [vmem:[#allocation2 + $0xbf0] sm:$0xff]  ;;  %v377_v22 = vld [vmem:[#allocation2 + $0x7d8] sm:$0xff] }
 0x260   :  { %3850 = vmatprep.subr.bf16.mxu0 %v6876_v23  ;;  %3979 = vmatprep.subr.bf16.mxu1 %v6750_v24  ;;  %v381_v23 = vld [vmem:[#allocation2 + $0x7f8] sm:$0xff]  ;;  %v6923_v24 = vcombine.low %v496_v13, %v500_v14  ;;  %v6932_v28 = vcombine.high %v504_v20, %v508_v21 }
 0x261   :  { %v6806_v31 = vcombine.high %v377_v22, %v381_v23  ;;  %v6805_v44 = vcombine.low %v377_v22, %v381_v23 }
 0x263   :  { %3851 = vmatpush1.bf16.msra.mxu0 %v6875_v33  ;;  %3980 = vmatpush1.bf16.msra.mxu1 %v6749_v34  ;;  %v389_v33 = vld [vmem:[#allocation2 + $0x838] sm:$0xff]  ;;  %v512_v34 = vld [vmem:[#allocation2 + $0xc10] sm:$0xff] }
 0x264   :  { %3852 = vmatprep.subr.bf16.mxu0 %v6884_v38  ;;  %3981 = vmatprep.subr.bf16.mxu1 %v6758_v42  ;;  %v516_v38 = vld [vmem:[#allocation2 + $0xc30] sm:$0xff]  ;;  %v6931_v42 = vcombine.low %v504_v20, %v508_v21  ;;  %v6814_v36 = vcombine.high %v385_v32, %v389_v33 }
 0x265   :  { %v6940_v35 = vcombine.high %v512_v34, %v516_v38 }
 0x267   :  { %3853 = vmatpush1.bf16.msra.mxu0 %v6883_v39  ;;  %3982 = vmatpush1.bf16.msra.mxu1 %v6757_v41  ;;  %v397_v39 = vld [vmem:[#allocation2 + $0x878] sm:$0xff]  ;;  %v6813_v41 = vcombine.low %v385_v32, %v389_v33  ;;  %v7418_v32 = vld [vmem:[#allocation6 + $0x84] ss:$16 sps:$4 sm:$0xff]  }
 0x268   :  { %3854 = vmatprep.subr.bf16.mxu0 %v6892_v43  ;;  %3983 = vmatprep.subr.bf16.mxu1 %v6766_v45  ;;  %v6939_v43 = vcombine.low %v512_v34, %v516_v38  ;;  %v6822_v45 = vcombine.high %v393_v37, %v397_v39  ;;  %v6821_v50 = vcombine.low %v393_v37, %v397_v39  ;;  %v7416_v37 = vld [vmem:[#allocation6 + $0x80] ss:$16 sps:$4 sm:$0xff]  }
 0x26b   :  { %3855 = vmatpush1.bf16.msra.mxu0 %v6891_v46  ;;  %3984 = vmatpush1.bf16.msra.mxu1 %v6765_v52  ;;  %v6830_v46 = vcombine.high %v401_v47, %v405_v48  ;;  %v409_v52 = vld [vmem:[#allocation2 + $0x8d8] sm:$0xff] }
 0x26c   :  { %3856 = vmatprep.subr.bf16.mxu0 %v6900_v53  ;;  %3985 = vmatprep.subr.bf16.mxu1 %v6774_v26  ;;  %v413_v53 = vld [vmem:[#allocation2 + $0x8f8] sm:$0xff]  ;;  %v6829_v26 = vcombine.low %v401_v47, %v405_v48 }
 0x26d   :  { %v6838_v30 = vcombine.high %v409_v52, %v413_v53  ;;  %v6837_v59 = vcombine.low %v409_v52, %v413_v53  ;;  %v461_v47 = vld [vmem:[#allocation2 + $0xa78] sm:$0xff] }
 0x26f   :  { %3857 = vmatpush1.bf16.msra.mxu0 %v6899_v62  ;;  %3986 = vmatpush1.bf16.msra.mxu1 %v6773_v63  ;;  %v8362_v62 = vshrl.u32 %v933_v12, 7  ;;  %v7409_v63 = vld [vmem:[#allocation6 + $0x24] ss:$16 sps:$4 sm:$0xff]  }
 0x270   :  { %3858 = vmatprep.subr.bf16.mxu0 %v6908_v1  ;;  %3987 = vmatprep.subr.bf16.mxu1 %v6782_v2  ;;  %v6846_v1 = vcombine.high %v417_v55, %v421_v58  ;;  %v425_v2 = vld [vmem:[#allocation2 + $0x958] sm:$0xff]  ;;  %v7424_v55 = vld [vmem:[#allocation6 + $0xc4] ss:$16 sps:$4 sm:$0xff]  }
 0x271   :  { %v8367_v6 = vsub.s32 0, %v8362_v62  ;;  %v6854_v12 = vcombine.high %v425_v2, %v429_v3  ;;  %v6853_v13 = vcombine.low %v425_v2, %v429_v3  ;;  %v7427_v2 = vld [vmem:[#allocation6 + $0xe4] ss:$16 sps:$4 sm:$0xff]  }
 0x273   :  { %3859 = vmatpush1.bf16.msra.mxu0 %v6907_v8  ;;  %3988 = vmatpush1.bf16.msra.mxu1 %v6781_v9  ;;  %v433_v8 = vld [vmem:[#allocation2 + $0x998] sm:$0xff]  ;;  %v4095_v14 = vrot.slane %v8350_v40, %v8367_v6 }
 0x274   :  { %3860 = vmatprep.subr.bf16.mxu0 %v6916_v10  ;;  %3989 = vmatprep.subr.bf16.mxu1 %v6790_v11  ;;  %v437_v9 = vld [vmem:[#allocation2 + $0x9b8] sm:$0xff]  ;;  %v919_v10 = vld [vmem:[#allocation10 + $0x8] sm:$0xff]  ;;  %v7410_v11 = vld [vmem:[#allocation6 + $0x40] ss:$16 sps:$4 sm:$0xff]  }
 0x275   :  { %v6862_v16 = vcombine.high %v433_v8, %v437_v9 }
 0x277   :  { %3861 = vmatpush1.bf16.msra.mxu0 %v6915_v17  ;;  %3990 = vmatpush1.bf16.msra.mxu1 %v6789_v18  ;;  %v4099_v18 = vrot.slane %v919_v10, %v8367_v6  ;;  %v481_v10 = vld [vmem:[#allocation2 + $0xb18] sm:$0xff] }
 0x278   :  { %3862 = vmatprep.subr.bf16.mxu0 %v6924_v19  ;;  %3991 = vmatprep.subr.bf16.mxu1 %v6798_v29  ;;  %v441_v19 = vld [vmem:[#allocation2 + $0x9d8] sm:$0xff] }
 0x279   :  { %v445_v29 = vld [vmem:[#allocation2 + $0x9f8] sm:$0xff] }
 0x27a   :  { %v6870_v33 = vcombine.high %v441_v19, %v445_v29  ;;  %v6869_v39 = vcombine.low %v441_v19, %v445_v29  ;;  %v7431_v19 = vld [vmem:[#allocation6 + $0x120] ss:$16 sps:$4 sm:$0xff]  }
 0x27b   :  { %3863 = vmatpush1.bf16.msra.mxu0 %v6923_v24  ;;  %3992 = vmatpush1.bf16.msra.mxu1 %v6797_v25  ;;  %v7413_v24 = vld [vmem:[#allocation6 + $0x60] ss:$16 sps:$4 sm:$0xff]   ;;  %v6861_v25 = vcombine.low %v433_v8, %v437_v9  ;;  %v7430_v8 = vld [vmem:[#allocation6 + $0x104] ss:$16 sps:$4 sm:$0xff]  }
 0x27c   :  { %3864 = vmatprep.subr.bf16.mxu0 %v6932_v28  ;;  %3993 = vmatprep.subr.bf16.mxu1 %v6806_v31 }
 0x27f   :  { %3865 = vmatpush1.bf16.msra.mxu0 %v6931_v42  ;;  %3994 = vmatpush1.bf16.msra.mxu1 %v6805_v44  ;;  %v453_v42 = vld [vmem:[#allocation2 + $0xa38] sm:$0xff] }
 0x280   :  { %4006 = vmatprep.subr.bf16.mxu1 %v6814_v36  ;;  %3877 = vmatprep.subr.bf16.mxu0 %v6940_v35 }
 0x282   :  { %3867 = vmatmul.mubr.bf16.vlgmr.msra.gmra.mrb[0].mxu0 %v8318_v4  ;;  %3996 = vmatmul.mubr.bf16.vlgmr.msra.gmra.mrb[8].mxu1 %v8298_v51  ;;  %v7404_v51 = vld [vmem:[#allocation6] ss:$16 sps:$4 sm:$0xff]  }
 0x283   :  { %4007 = vmatpush1.bf16.msra.mxu1 %v6813_v41  ;;  %3878 = vmatpush1.bf16.msra.mxu0 %v6939_v43  ;;  %v7421_v41 = vld [vmem:[#allocation6 + $0xa4] ss:$16 sps:$4 sm:$0xff]  }
 0x284   :  { %4008 = vmatprep.subr.bf16.mxu1 %v6822_v45  ;;  %3909 = vmatprep.mubr.bf16.mxu0 %v8068_v0  ;;  %v457_v45 = vld [vmem:[#allocation2 + $0xa58] sm:$0xff] }
 0x285   :  { %5492 = vmatprep.subr.bf16.mxu0 %v7406_v49  ;;  %4038 = vmatprep.mubr.bf16.mxu1 %v8306_v60  ;;  %v7407_v60 = vld [vmem:[#allocation6 + $0x20] ss:$16 sps:$4 sm:$0xff]   ;;  %v6886_v58 = vcombine.high %v457_v45, %v461_v47 }
 0x287   :  { %4009 = vmatpush1.bf16.msra.mxu1 %v6821_v50 }
 0x288   :  { %4010 = vmatprep.subr.bf16.mxu1 %v6830_v46  ;;  %v7419_v46 = vld [vmem:[#allocation6 + $0xa0] ss:$16 sps:$4 sm:$0xff]  }
 0x28b   :  { %4011 = vmatpush1.bf16.msra.mxu1 %v6829_v26 }
 0x28c   :  { %4012 = vmatprep.subr.bf16.mxu1 %v6838_v30 }
 0x28e   :  { %6945 = vmatmul.mubr.msk.bf16.vlgmr.msra.gmra.mrb[0].mxu0 %vm3400_vm3, %v8330_v27 }
 0x28f   :  { %5493 = vmatpush1.bf16.msra.mxu0 %v7404_v51  ;;  %4013 = vmatpush1.bf16.msra.mxu1 %v6837_v59  ;;  %v465_v51 = vld [vmem:[#allocation2 + $0xa98] sm:$0xff] }
 0x290   :  { %5494 = vmatprep.subr.bf16.mxu0 %v7409_v63  ;;  %4014 = vmatprep.subr.bf16.mxu1 %v6846_v1  ;;  %v469_v59 = vld [vmem:[#allocation2 + $0xab8] sm:$0xff]  ;;  %v7422_v63 = vld [vmem:[#allocation6 + $0xc0] ss:$16 sps:$4 sm:$0xff]   ;;  %v6885_v1 = vcombine.low %v457_v45, %v461_v47  ;;  %v7451_v45 = vld [vmem:[#allocation6 + $0x1e4] ss:$16 sps:$4 sm:$0xff]  }
 0x291   :  { %v6894_v3 = vcombine.high %v465_v51, %v469_v59  ;;  %v7449_v47 = vld [vmem:[#allocation6 + $0x1e0] ss:$16 sps:$4 sm:$0xff]  }
 0x293   :  { %5495 = vmatpush1.bf16.msra.mxu0 %v7407_v60  ;;  %4015 = vmatpush1.bf16.msra.mxu1 %v6845_v5  ;;  %v473_v60 = vld [vmem:[#allocation2 + $0xad8] sm:$0xff] }
 0x294   :  { %5496 = vmatprep.subr.bf16.mxu0 %v7412_v7  ;;  %4016 = vmatprep.subr.bf16.mxu1 %v6854_v12  ;;  %v477_v5 = vld [vmem:[#allocation2 + $0xaf8] sm:$0xff]  ;;  %v7425_v7 = vld [vmem:[#allocation6 + $0xe0] ss:$16 sps:$4 sm:$0xff]   ;;  %v6893_v12 = vcombine.low %v465_v51, %v469_v59 }
 0x295   :  { %v3567_v17 = vpop.f32.mrb[4].mxu0  ;;  %v6902_v9 = vcombine.high %v473_v60, %v477_v5  ;;  %v921_v51 = vld [vmem:[#allocation10 + $0x18] sm:$0xff] }
 0x296   :  { %v7284_v20 = vadd.f32 %v3567_v17, %v8335_v54  ;;  %v3569_v21 = vpop.f32.mrb[5].mxu0  ;;  %v449_v54 = vld [vmem:[#allocation2 + $0xa18] sm:$0xff] }
 0x297   :  { %5497 = vmatpush1.bf16.msra.mxu0 %v7410_v11  ;;  %v7285_v22 = vadd.f32 %v3569_v21, %v8337_v56  ;;  %4017 = vmatpush1.bf16.msra.mxu1 %v6853_v13  ;;  %v3571_v23 = vpop.f32.mrb[6].mxu0  ;;  %v6878_v43 = vcombine.high %v449_v54, %v453_v42  ;;  %v6877_v50 = vcombine.low %v449_v54, %v453_v42  ;;  %v485_v11 = vld [vmem:[#allocation2 + $0xb38] sm:$0xff]  ;;  %v7428_v13 = vld [vmem:[#allocation6 + $0x100] ss:$16 sps:$4 sm:$0xff]  }
 0x298   :  { %v4124_v28 = vadd.f32 %v7284_v20, %v4095_v14  ;;  %v7286_v40 = vadd.f32 %v3571_v23, %v8339_v57  ;;  %v3573_v31 = vpop.f32.mrb[7].mxu0  ;;  %5498 = vmatprep.subr.bf16.mxu0 %v7415_v15  ;;  %4018 = vmatprep.subr.bf16.mxu1 %v6862_v16  ;;  %v7433_v15 = vld [vmem:[#allocation6 + $0x124] ss:$16 sps:$4 sm:$0xff]   ;;  %v6910_v16 = vcombine.high %v481_v10, %v485_v11  ;;  %v489_v17 = vld [vmem:[#allocation2 + $0xb58] sm:$0xff] }
 0x299   :  { %v4125_v34 = vadd.f32 %v7285_v22, %v4099_v18  ;;  %v7287_v38 = vadd.f32 %v3573_v31, %v8341_v61  ;;  %v6909_v29 = vcombine.low %v481_v10, %v485_v11  ;;  %v7436_v20 = vld [vmem:[#allocation6 + $0x144] ss:$16 sps:$4 sm:$0xff]   ;;  %v497_v22 = vld [vmem:[#allocation2 + $0xb98] sm:$0xff] }
 0x29a   :  { %v4156_v44 = vmul.f32 0.2, %v4124_v28  ;;  %v4132_v36 = vadd.f32 %v7286_v40, %v4095_v14  ;;  %vm4140_vm4 = vcmp.ge.f32.partialorder %v4124_v28, 0.0  ;;  %v6901_v14 = vcombine.low %v473_v60, %v477_v5  ;;  %v501_v23 = vld [vmem:[#allocation2 + $0xbb8] sm:$0xff]  ;;  %v7478_v10 = vld [vmem:[#allocation6 + $0x284] ss:$16 sps:$4 sm:$0xff]  }
 0x29b   :  { %v4157_v56 = vmul.f32 0.2, %v4125_v34  ;;  %v4133_v35 = vadd.f32 %v7287_v38, %v4099_v18  ;;  %5499 = vmatpush1.bf16.msra.mxu0 %v7413_v24  ;;  %4019 = vmatpush1.bf16.msra.mxu1 %v6861_v25  ;;  %vm4141_vm5 = vcmp.ge.f32.partialorder %v4125_v34, 0.0  ;;  %v493_v18 = vld [vmem:[#allocation2 + $0xb78] sm:$0xff]  ;;  %v7434_v24 = vld [vmem:[#allocation6 + $0x140] ss:$16 sps:$4 sm:$0xff]   ;;  %v6926_v40 = vcombine.high %v497_v22, %v501_v23 }
 0x29c   :  { %vm4148_vm6 = vcmp.ge.f32.partialorder %v4132_v36, 0.0  ;;  %v4164_v57 = vmul.f32 0.2, %v4132_v36  ;;  %5500 = vmatprep.subr.bf16.mxu0 %v7418_v32  ;;  %4020 = vmatprep.subr.bf16.mxu1 %v6870_v33  ;;  %v4172_v48 = vsel %vm4140_vm4, %v4124_v28, %v4156_v44  ;;  %v6918_v21 = vcombine.high %v489_v17, %v493_v18  ;;  %v7439_v28 = vld [vmem:[#allocation6 + $0x164] ss:$16 sps:$4 sm:$0xff]   ;;  %v505_v31 = vld [vmem:[#allocation2 + $0xbd8] sm:$0xff] }
 0x29d   :  { %vm4149_vm7 = vcmp.ge.f32.partialorder %v4133_v35, 0.0  ;;  %v4165_v61 = vmul.f32 0.2, %v4133_v35  ;;  %v4173_v52 = vsel %vm4141_vm5, %v4125_v34, %v4157_v56  ;;  %v6917_v25 = vcombine.low %v489_v17, %v493_v18  ;;  %v509_v32 = vld [vmem:[#allocation2 + $0xbf8] sm:$0xff]  ;;  %v7437_v33 = vld [vmem:[#allocation6 + $0x160] ss:$16 sps:$4 sm:$0xff]  }
 0x29e   :  { %v4180_v49 = vsel %vm4148_vm6, %v4132_v36, %v4164_v57  ;;  %v6925_v34 = vcombine.low %v497_v22, %v501_v23  ;;  %v7442_v38 = vld [vmem:[#allocation6 + $0x184] ss:$16 sps:$4 sm:$0xff]   ;;  %v6934_v54 = vcombine.high %v505_v31, %v509_v32  ;;  %v513_v42 = vld [vmem:[#allocation2 + $0xc18] sm:$0xff]  ;;  %v7440_v36 = vld [vmem:[#allocation6 + $0x180] ss:$16 sps:$4 sm:$0xff]   ;;  %v6933_v56 = vcombine.low %v505_v31, %v509_v32 }
 0x29f   :  { %5501 = vmatpush1.bf16.msra.mxu0 %v7416_v37  ;;  %4021 = vmatpush1.bf16.msra.mxu1 %v6869_v39  ;;  %v4181_v53 = vsel %vm4149_vm7, %v4133_v35, %v4165_v61  ;;  %v8378_v26 = vpack.c.bf16 %v4180_v49, %v4172_v48  ;;  %v517_v44 = vld [vmem:[#allocation2 + $0xc38] sm:$0xff]  ;;  %v7445_v35 = vld [vmem:[#allocation6 + $0x1a4] ss:$16 sps:$4 sm:$0xff]   ;;  %v7443_v39 = vld [vmem:[#allocation6 + $0x1a0] ss:$16 sps:$4 sm:$0xff]  }
 0x2a0   :  { %5502 = vmatprep.subr.bf16.mxu0 %v7421_v41  ;;  %4022 = vmatprep.subr.bf16.mxu1 %v6878_v43  ;;  %v8380_v30 = vpack.c.bf16 %v4181_v53, %v4173_v52  ;;  %v6942_v37 = vcombine.high %v513_v42, %v517_v44  ;;  %v6941_v57 = vcombine.low %v513_v42, %v517_v44  ;;  %v7448_v41 = vld [vmem:[#allocation6 + $0x1c4] ss:$16 sps:$4 sm:$0xff]   ;;  %v7457_v43 = vld [vmem:[#allocation6 + $0xc] ss:$16 sps:$4 sm:$0xff]   ;;  %v7446_v61 = vld [vmem:[#allocation6 + $0x1c0] ss:$16 sps:$4 sm:$0xff]  }
 0x2a1   :  { %v7454_v48 = vld [vmem:[#allocation6 + $0x204] ss:$16 sps:$4 sm:$0xff]   ;;  %v7452_v49 = vld [vmem:[#allocation6 + $0x200] ss:$16 sps:$4 sm:$0xff]   ;;  %v7463_v52 = vld [vmem:[#allocation6 + $0x2c] ss:$16 sps:$4 sm:$0xff]  }
 0x2a2   :  { %5524 = vmatprep.mubr.bf16.mxu0 %v8380_v30  ;;  %v920_v53 = vld [vmem:[#allocation10 + $0x10] sm:$0xff]  ;;  %v7491_v42 = vld [vmem:[#allocation6 + $0xc8] ss:$16 sps:$4 sm:$0xff]  }
 0x2a3   :  { %5503 = vmatpush1.bf16.msra.mxu0 %v7419_v46  ;;  %4023 = vmatpush1.bf16.msra.mxu1 %v6877_v50  ;;  %v7455_v50 = vld [vmem:[#allocation6 + $0x8] ss:$16 sps:$4 sm:$0xff]   ;;  %v7460_v46 = vld [vmem:[#allocation6 + $0x224] ss:$16 sps:$4 sm:$0xff]   ;;  %v4103_v59 = vrot.slane %v920_v53, %v8367_v6  ;;  %v7482_v32 = vld [vmem:[#allocation6 + $0x2a0] ss:$16 sps:$4 sm:$0xff]  }
 0x2a4   :  { %5504 = vmatprep.subr.bf16.mxu0 %v7424_v55  ;;  %4024 = vmatprep.subr.bf16.mxu1 %v6886_v58  ;;  %v7466_v55 = vld [vmem:[#allocation6 + $0x244] ss:$16 sps:$4 sm:$0xff]   ;;  %v7469_v58 = vld [vmem:[#allocation6 + $0x4c] ss:$16 sps:$4 sm:$0xff]   ;;  %v7521_v53 = vld [vmem:[#allocation6 + $0x168] ss:$16 sps:$4 sm:$0xff]  }
 0x2a5   :  { %v7484_v23 = vld [vmem:[#allocation6 + $0x2a4] ss:$16 sps:$4 sm:$0xff]  }
 0x2a6   :  { %v7496_v44 = vld [vmem:[#allocation6 + $0x2e4] ss:$16 sps:$4 sm:$0xff]  }
 0x2a7   :  { %5505 = vmatpush1.bf16.msra.mxu0 %v7422_v63  ;;  %4025 = vmatpush1.bf16.msra.mxu1 %v6885_v1  ;;  %v7464_v63 = vld [vmem:[#allocation6 + $0x240] ss:$16 sps:$4 sm:$0xff]   ;;  %v7467_v1 = vld [vmem:[#allocation6 + $0x48] ss:$16 sps:$4 sm:$0xff]  }
 0x2a8   :  { %5506 = vmatprep.subr.bf16.mxu0 %v7427_v2  ;;  %4026 = vmatprep.subr.bf16.mxu1 %v6894_v3  ;;  %v7472_v2 = vld [vmem:[#allocation6 + $0x264] ss:$16 sps:$4 sm:$0xff]   ;;  %v7475_v3 = vld [vmem:[#allocation6 + $0x6c] ss:$16 sps:$4 sm:$0xff]  }
 0x2ab   :  { %5507 = vmatpush1.bf16.msra.mxu0 %v7425_v7  ;;  %4027 = vmatpush1.bf16.msra.mxu1 %v6893_v12  ;;  %v7470_v7 = vld [vmem:[#allocation6 + $0x260] ss:$16 sps:$4 sm:$0xff]  }
 0x2ac   :  { %5508 = vmatprep.subr.bf16.mxu0 %v7430_v8  ;;  %4028 = vmatprep.subr.bf16.mxu1 %v6902_v9  ;;  %v7473_v9 = vld [vmem:[#allocation6 + $0x68] ss:$16 sps:$4 sm:$0xff]  }
 0x2af   :  { %5509 = vmatpush1.bf16.msra.mxu0 %v7428_v13  ;;  %4029 = vmatpush1.bf16.msra.mxu1 %v6901_v14 }
 0x2b0   :  { %5510 = vmatprep.subr.bf16.mxu0 %v7433_v15  ;;  %4030 = vmatprep.subr.bf16.mxu1 %v6910_v16  ;;  %v7481_v15 = vld [vmem:[#allocation6 + $0x8c] ss:$16 sps:$4 sm:$0xff]  }
 0x2b3   :  { %5511 = vmatpush1.bf16.msra.mxu0 %v7431_v19  ;;  %4031 = vmatpush1.bf16.msra.mxu1 %v6909_v29  ;;  %v7476_v19 = vld [vmem:[#allocation6 + $0x280] ss:$16 sps:$4 sm:$0xff]  }
 0x2b4   :  { %5512 = vmatprep.subr.bf16.mxu0 %v7436_v20  ;;  %4032 = vmatprep.subr.bf16.mxu1 %v6918_v21  ;;  %v7479_v20 = vld [vmem:[#allocation6 + $0x88] ss:$16 sps:$4 sm:$0xff]  }
 0x2b7   :  { %5513 = vmatpush1.bf16.msra.mxu0 %v7434_v24  ;;  %4033 = vmatpush1.bf16.msra.mxu1 %v6917_v25 }
 0x2b8   :  { %5514 = vmatprep.subr.bf16.mxu0 %v7439_v28  ;;  %4034 = vmatprep.subr.bf16.mxu1 %v6926_v40  ;;  %v7487_v40 = vld [vmem:[#allocation6 + $0xac] ss:$16 sps:$4 sm:$0xff]  }
 0x2bb   :  { %5515 = vmatpush1.bf16.msra.mxu0 %v7437_v33  ;;  %4035 = vmatpush1.bf16.msra.mxu1 %v6925_v34  ;;  %v7485_v33 = vld [vmem:[#allocation6 + $0xa8] ss:$16 sps:$4 sm:$0xff]   ;;  %v7490_v34 = vld [vmem:[#allocation6 + $0x2c4] ss:$16 sps:$4 sm:$0xff]  }
 0x2bc   :  { %5516 = vmatprep.subr.bf16.mxu0 %v7442_v38  ;;  %4036 = vmatprep.subr.bf16.mxu1 %v6934_v54  ;;  %v7493_v38 = vld [vmem:[#allocation6 + $0xcc] ss:$16 sps:$4 sm:$0xff]   ;;  %v7488_v54 = vld [vmem:[#allocation6 + $0x2c0] ss:$16 sps:$4 sm:$0xff]  }
 0x2bf   :  { %5517 = vmatpush1.bf16.msra.mxu0 %v7440_v36  ;;  %4037 = vmatpush1.bf16.msra.mxu1 %v6933_v56  ;;  %v7499_v36 = vld [vmem:[#allocation6 + $0xec] ss:$16 sps:$4 sm:$0xff]   ;;  %v7494_v56 = vld [vmem:[#allocation6 + $0x2e0] ss:$16 sps:$4 sm:$0xff]  }
 0x2c0   :  { %5518 = vmatprep.subr.bf16.mxu0 %v7445_v35  ;;  %4049 = vmatprep.subr.bf16.mxu1 %v6942_v37  ;;  %v7497_v35 = vld [vmem:[#allocation6 + $0xe8] ss:$16 sps:$4 sm:$0xff]   ;;  %v7502_v37 = vld [vmem:[#allocation6 + $0x304] ss:$16 sps:$4 sm:$0xff]  }
 0x2c2   :  { %4039 = vmatmul.mubr.bf16.vlgmr.msra.gmra.mrb[8].mxu1 %v8318_v4  ;;  %v7458_v4 = vld [vmem:[#allocation6 + $0x220] ss:$16 sps:$4 sm:$0xff]  }
 0x2c3   :  { %5519 = vmatpush1.bf16.msra.mxu0 %v7443_v39  ;;  %4050 = vmatpush1.bf16.msra.mxu1 %v6941_v57  ;;  %v7505_v39 = vld [vmem:[#allocation6 + $0x10c] ss:$16 sps:$4 sm:$0xff]   ;;  %v7500_v57 = vld [vmem:[#allocation6 + $0x300] ss:$16 sps:$4 sm:$0xff]  }
 0x2c4   :  { %5520 = vmatprep.subr.bf16.mxu0 %v7448_v41  ;;  %4081 = vmatprep.mubr.bf16.mxu1 %v8068_v0  ;;  %v7461_v0 = vld [vmem:[#allocation6 + $0x28] ss:$16 sps:$4 sm:$0xff]  }
 0x2c5   :  { %5664 = vmatprep.subr.bf16.mxu1 %v7457_v43  ;;  %v7503_v41 = vld [vmem:[#allocation6 + $0x108] ss:$16 sps:$4 sm:$0xff]   ;;  %v7508_v43 = vld [vmem:[#allocation6 + $0x324] ss:$16 sps:$4 sm:$0xff]  }
 0x2c7   :  { %5521 = vmatpush1.bf16.msra.mxu0 %v7446_v61  ;;  %v7511_v61 = vld [vmem:[#allocation6 + $0x12c] ss:$16 sps:$4 sm:$0xff]  }
 0x2c8   :  { %5522 = vmatprep.subr.bf16.mxu0 %v7451_v45  ;;  %v7506_v45 = vld [vmem:[#allocation6 + $0x320] ss:$16 sps:$4 sm:$0xff]  }
 0x2cb   :  { %5523 = vmatpush1.bf16.msra.mxu0 %v7449_v47  ;;  %v7509_v47 = vld [vmem:[#allocation6 + $0x128] ss:$16 sps:$4 sm:$0xff]  }
 0x2cc   :  { %5535 = vmatprep.subr.bf16.mxu0 %v7454_v48  ;;  %v7514_v48 = vld [vmem:[#allocation6 + $0x344] ss:$16 sps:$4 sm:$0xff]  }
 0x2ce   :  { %5525 = vmatmul.mubr.bf16.vlgmr.msra.gmra.mrb[8].mxu0 %v8378_v26  ;;  %6946 = vmatmul.mubr.msk.bf16.vlgmr.msra.gmra.mrb[8].mxu1 %vm3400_vm3, %v8330_v27  ;;  %v4107_v27 = vrot.slane %v921_v51, %v8367_v6  ;;  %v7524_v51 = vld [vmem:[#allocation6 + $0x380] ss:$16 sps:$4 sm:$0xff]  }
 0x2cf   :  { %5536 = vmatpush1.bf16.msra.mxu0 %v7452_v49  ;;  %5665 = vmatpush1.bf16.msra.mxu1 %v7455_v50  ;;  %v7517_v49 = vld [vmem:[#allocation6 + $0x14c] ss:$16 sps:$4 sm:$0xff]   ;;  %v7512_v50 = vld [vmem:[#allocation6 + $0x340] ss:$16 sps:$4 sm:$0xff]  }
 0x2d0   :  { %5696 = vmatprep.mubr.bf16.mxu1 %v8380_v30  ;;  %5537 = vmatprep.subr.bf16.mxu0 %v7460_v46  ;;  %v7515_v46 = vld [vmem:[#allocation6 + $0x148] ss:$16 sps:$4 sm:$0xff]  }
 0x2d1   :  { %5666 = vmatprep.subr.bf16.mxu1 %v7463_v52  ;;  %v7520_v52 = vld [vmem:[#allocation6 + $0x364] ss:$16 sps:$4 sm:$0xff]  }
 0x2d3   :  { %5538 = vmatpush1.bf16.msra.mxu0 %v7458_v4  ;;  %5667 = vmatpush1.bf16.msra.mxu1 %v7461_v0  ;;  %v7523_v4 = vld [vmem:[#allocation6 + $0x16c] ss:$16 sps:$4 sm:$0xff]   ;;  %v7518_v0 = vld [vmem:[#allocation6 + $0x360] ss:$16 sps:$4 sm:$0xff]  }
 0x2d4   :  { %5539 = vmatprep.subr.bf16.mxu0 %v7466_v55  ;;  %5668 = vmatprep.subr.bf16.mxu1 %v7469_v58  ;;  %v7526_v55 = vld [vmem:[#allocation6 + $0x384] ss:$16 sps:$4 sm:$0xff]   ;;  %v7529_v58 = vld [vmem:[#allocation6 + $0x18c] ss:$16 sps:$4 sm:$0xff]  }
 0x2d5   :  { %v3739_v60 = vpop.f32.mrb[4].mxu1 }
 0x2d6   :  { %v4126_v5 = vadd.f32 %v4103_v59, %v3739_v60  ;;  %v3741_v30 = vpop.f32.mrb[5].mxu1  ;;  %v7541_v60 = vld [vmem:[#allocation6 + $0x1cc] ss:$16 sps:$4 sm:$0xff]  }
 0x2d7   :  { %5540 = vmatpush1.bf16.msra.mxu0 %v7464_v63  ;;  %5669 = vmatpush1.bf16.msra.mxu1 %v7467_v1  ;;  %v4127_v12 = vadd.f32 %v4107_v27, %v3741_v30  ;;  %v3743_v8 = vpop.f32.mrb[6].mxu1  ;;  %v7532_v63 = vld [vmem:[#allocation6 + $0x3a4] ss:$16 sps:$4 sm:$0xff]   ;;  %v7535_v1 = vld [vmem:[#allocation6 + $0x1ac] ss:$16 sps:$4 sm:$0xff]  }
 0x2d8   :  { %v4158_v11 = vmul.f32 0.2, %v4126_v5  ;;  %v4134_v13 = vadd.f32 %v4103_v59, %v3743_v8  ;;  %v3745_v14 = vpop.f32.mrb[7].mxu1  ;;  %5541 = vmatprep.subr.bf16.mxu0 %v7472_v2  ;;  %5670 = vmatprep.subr.bf16.mxu1 %v7475_v3  ;;  %vm4142_vm8 = vcmp.ge.f32.partialorder %v4126_v5, 0.0  ;;  %v7527_v59 = vld [vmem:[#allocation6 + $0x188] ss:$16 sps:$4 sm:$0xff]  }
 0x2d9   :  { %v4159_v16 = vmul.f32 0.2, %v4127_v12  ;;  %v4135_v17 = vadd.f32 %v4107_v27, %v3745_v14  ;;  %vm4143_vm9 = vcmp.ge.f32.partialorder %v4127_v12, 0.0  ;;  %v7530_v27 = vld [vmem:[#allocation6 + $0x3a0] ss:$16 sps:$4 sm:$0xff]  }
 0x2da   :  { %vm4150_vm10 = vcmp.ge.f32.partialorder %v4134_v13, 0.0  ;;  %v4166_v18 = vmul.f32 0.2, %v4134_v13  ;;  %v4174_v21 = vsel %vm4142_vm8, %v4126_v5, %v4158_v11  ;;  %v7533_v2 = vld [vmem:[#allocation6 + $0x1a8] ss:$16 sps:$4 sm:$0xff]  }
 0x2db   :  { %vm4151_vm11 = vcmp.ge.f32.partialorder %v4135_v17, 0.0  ;;  %v4167_v29 = vmul.f32 0.2, %v4135_v17  ;;  %5542 = vmatpush1.bf16.msra.mxu0 %v7470_v7  ;;  %5671 = vmatpush1.bf16.msra.mxu1 %v7473_v9  ;;  %v4175_v25 = vsel %vm4143_vm9, %v4127_v12, %v4159_v16  ;;  %v7538_v3 = vld [vmem:[#allocation6 + $0x3c4] ss:$16 sps:$4 sm:$0xff]  }
 0x2dc   :  { %v4182_v22 = vsel %vm4150_vm10, %v4134_v13, %v4166_v18  ;;  %5543 = vmatprep.subr.bf16.mxu0 %v7478_v10  ;;  %5672 = vmatprep.subr.bf16.mxu1 %v7481_v15  ;;  %v7536_v5 = vld [vmem:[#allocation6 + $0x3c0] ss:$16 sps:$4 sm:$0xff]   ;;  %v7539_v30 = vld [vmem:[#allocation6 + $0x1c8] ss:$16 sps:$4 sm:$0xff]   ;;  %v7544_v7 = vld [vmem:[#allocation6 + $0x3e4] ss:$16 sps:$4 sm:$0xff]  }
 0x2dd   :  { %v8391_v24 = vpack.c.bf16 %v4182_v22, %v4174_v21  ;;  %v4183_v28 = vsel %vm4151_vm11, %v4135_v17, %v4167_v29  ;;  %v7547_v12 = vld [vmem:[#allocation6 + $0x1ec] ss:$16 sps:$4 sm:$0xff]   ;;  %v7542_v8 = vld [vmem:[#allocation6 + $0x3e0] ss:$16 sps:$4 sm:$0xff]   ;;  %v7545_v9 = vld [vmem:[#allocation6 + $0x1e8] ss:$16 sps:$4 sm:$0xff]  }
 0x2de   :  { %v8393_v31 = vpack.c.bf16 %v4183_v28, %v4175_v25  ;;  %v7550_v10 = vld [vmem:[#allocation6 + $0x20c] ss:$16 sps:$4 sm:$0xff]   ;;  %v7574_v11 = vld [vmem:[#allocation6 + $0x404] ss:$16 sps:$4 sm:$0xff]   ;;  %v7548_v13 = vld [vmem:[#allocation6 + $0x208] ss:$16 sps:$4 sm:$0xff]  }
 0x2df   :  { %5544 = vmatpush1.bf16.msra.mxu0 %v7476_v19  ;;  %5673 = vmatpush1.bf16.msra.mxu1 %v7479_v20  ;;  %v7553_v14 = vld [vmem:[#allocation6 + $0x22c] ss:$16 sps:$4 sm:$0xff]   ;;  %v7572_v15 = vld [vmem:[#allocation6 + $0x400] ss:$16 sps:$4 sm:$0xff]   ;;  %v7580_v16 = vld [vmem:[#allocation6 + $0x424] ss:$16 sps:$4 sm:$0xff]  }
 0x2e0   :  { %5545 = vmatprep.subr.bf16.mxu0 %v7484_v23  ;;  %5567 = vmatprep.mubr.bf16.mxu0 %v8393_v31  ;;  %v7551_v17 = vld [vmem:[#allocation6 + $0x228] ss:$16 sps:$4 sm:$0xff]   ;;  %v7556_v18 = vld [vmem:[#allocation6 + $0x24c] ss:$16 sps:$4 sm:$0xff]   ;;  %v7578_v19 = vld [vmem:[#allocation6 + $0x420] ss:$16 sps:$4 sm:$0xff]  }
 0x2e1   :  { %5674 = vmatprep.subr.bf16.mxu1 %v7487_v40  ;;  %v7586_v29 = vld [vmem:[#allocation6 + $0x444] ss:$16 sps:$4 sm:$0xff]   ;;  %v7554_v20 = vld [vmem:[#allocation6 + $0x248] ss:$16 sps:$4 sm:$0xff]   ;;  %v7559_v21 = vld [vmem:[#allocation6 + $0x26c] ss:$16 sps:$4 sm:$0xff]  }
 0x2e2   :  { %v7584_v22 = vld [vmem:[#allocation6 + $0x440] ss:$16 sps:$4 sm:$0xff]   ;;  %v7592_v23 = vld [vmem:[#allocation6 + $0x464] ss:$16 sps:$4 sm:$0xff]   ;;  %v7562_v25 = vld [vmem:[#allocation6 + $0x28c] ss:$16 sps:$4 sm:$0xff]  }
 0x2e3   :  { %5546 = vmatpush1.bf16.msra.mxu0 %v7482_v32  ;;  %5675 = vmatpush1.bf16.msra.mxu1 %v7485_v33  ;;  %v7590_v28 = vld [vmem:[#allocation6 + $0x460] ss:$16 sps:$4 sm:$0xff]   ;;  %v7598_v40 = vld [vmem:[#allocation6 + $0x484] ss:$16 sps:$4 sm:$0xff]   ;;  %v7565_v32 = vld [vmem:[#allocation6 + $0x2ac] ss:$16 sps:$4 sm:$0xff]  }
 0x2e4   :  { %5547 = vmatprep.subr.bf16.mxu0 %v7490_v34  ;;  %5676 = vmatprep.subr.bf16.mxu1 %v7493_v38  ;;  %v7596_v33 = vld [vmem:[#allocation6 + $0x480] ss:$16 sps:$4 sm:$0xff]   ;;  %v7604_v34 = vld [vmem:[#allocation6 + $0x4a4] ss:$16 sps:$4 sm:$0xff]   ;;  %v7563_v38 = vld [vmem:[#allocation6 + $0x2a8] ss:$16 sps:$4 sm:$0xff]  }
 0x2e7   :  { %5548 = vmatpush1.bf16.msra.mxu0 %v7488_v54  ;;  %5677 = vmatpush1.bf16.msra.mxu1 %v7491_v42  ;;  %v7568_v54 = vld [vmem:[#allocation6 + $0x2cc] ss:$16 sps:$4 sm:$0xff]   ;;  %v7602_v42 = vld [vmem:[#allocation6 + $0x4a0] ss:$16 sps:$4 sm:$0xff]  }
 0x2e8   :  { %5549 = vmatprep.subr.bf16.mxu0 %v7496_v44  ;;  %5678 = vmatprep.subr.bf16.mxu1 %v7499_v36  ;;  %v7610_v44 = vld [vmem:[#allocation6 + $0x4c4] ss:$16 sps:$4 sm:$0xff]   ;;  %v7566_v36 = vld [vmem:[#allocation6 + $0x2c8] ss:$16 sps:$4 sm:$0xff]  }
 0x2eb   :  { %5550 = vmatpush1.bf16.msra.mxu0 %v7494_v56  ;;  %5679 = vmatpush1.bf16.msra.mxu1 %v7497_v35  ;;  %v7571_v56 = vld [vmem:[#allocation6 + $0x2ec] ss:$16 sps:$4 sm:$0xff]   ;;  %v7608_v35 = vld [vmem:[#allocation6 + $0x4c0] ss:$16 sps:$4 sm:$0xff]  }
 0x2ec   :  { %5551 = vmatprep.subr.bf16.mxu0 %v7502_v37  ;;  %5680 = vmatprep.subr.bf16.mxu1 %v7505_v39  ;;  %v7616_v37 = vld [vmem:[#allocation6 + $0x4e4] ss:$16 sps:$4 sm:$0xff]   ;;  %v7569_v39 = vld [vmem:[#allocation6 + $0x2e8] ss:$16 sps:$4 sm:$0xff]  }
 0x2ef   :  { %5552 = vmatpush1.bf16.msra.mxu0 %v7500_v57  ;;  %5681 = vmatpush1.bf16.msra.mxu1 %v7503_v41  ;;  %v7577_v57 = vld [vmem:[#allocation6 + $0x30c] ss:$16 sps:$4 sm:$0xff]   ;;  %v7614_v41 = vld [vmem:[#allocation6 + $0x4e0] ss:$16 sps:$4 sm:$0xff]  }
 0x2f0   :  { %5553 = vmatprep.subr.bf16.mxu0 %v7508_v43  ;;  %5682 = vmatprep.subr.bf16.mxu1 %v7511_v61  ;;  %v7622_v43 = vld [vmem:[#allocation6 + $0x504] ss:$16 sps:$4 sm:$0xff]   ;;  %v7575_v61 = vld [vmem:[#allocation6 + $0x308] ss:$16 sps:$4 sm:$0xff]  }
 0x2f3   :  { %5554 = vmatpush1.bf16.msra.mxu0 %v7506_v45  ;;  %5683 = vmatpush1.bf16.msra.mxu1 %v7509_v47  ;;  %v7583_v45 = vld [vmem:[#allocation6 + $0x32c] ss:$16 sps:$4 sm:$0xff]   ;;  %v7620_v47 = vld [vmem:[#allocation6 + $0x500] ss:$16 sps:$4 sm:$0xff]  }
 0x2f4   :  { %5555 = vmatprep.subr.bf16.mxu0 %v7514_v48  ;;  %5684 = vmatprep.subr.bf16.mxu1 %v7517_v49  ;;  %v7628_v48 = vld [vmem:[#allocation6 + $0x524] ss:$16 sps:$4 sm:$0xff]   ;;  %v7581_v49 = vld [vmem:[#allocation6 + $0x328] ss:$16 sps:$4 sm:$0xff]  }
 0x2f7   :  { %5556 = vmatpush1.bf16.msra.mxu0 %v7512_v50  ;;  %5685 = vmatpush1.bf16.msra.mxu1 %v7515_v46  ;;  %v7589_v50 = vld [vmem:[#allocation6 + $0x34c] ss:$16 sps:$4 sm:$0xff]   ;;  %v7626_v46 = vld [vmem:[#allocation6 + $0x520] ss:$16 sps:$4 sm:$0xff]  }
 0x2f8   :  { %5557 = vmatprep.subr.bf16.mxu0 %v7520_v52  ;;  %5686 = vmatprep.subr.bf16.mxu1 %v7523_v4  ;;  %v7634_v52 = vld [vmem:[#allocation6 + $0x544] ss:$16 sps:$4 sm:$0xff]   ;;  %v7587_v4 = vld [vmem:[#allocation6 + $0x348] ss:$16 sps:$4 sm:$0xff]  }
 0x2fb   :  { %5558 = vmatpush1.bf16.msra.mxu0 %v7518_v0  ;;  %5687 = vmatpush1.bf16.msra.mxu1 %v7521_v53  ;;  %v7595_v0 = vld [vmem:[#allocation6 + $0x36c] ss:$16 sps:$4 sm:$0xff]   ;;  %v7632_v53 = vld [vmem:[#allocation6 + $0x540] ss:$16 sps:$4 sm:$0xff]  }
 0x2fc   :  { %5559 = vmatprep.subr.bf16.mxu0 %v7526_v55  ;;  %5688 = vmatprep.subr.bf16.mxu1 %v7529_v58  ;;  %v7640_v55 = vld [vmem:[#allocation6 + $0x564] ss:$16 sps:$4 sm:$0xff]   ;;  %v7593_v58 = vld [vmem:[#allocation6 + $0x368] ss:$16 sps:$4 sm:$0xff]  }
 0x2ff   :  { %5560 = vmatpush1.bf16.msra.mxu0 %v7524_v51  ;;  %5689 = vmatpush1.bf16.msra.mxu1 %v7527_v59  ;;  %v7601_v51 = vld [vmem:[#allocation6 + $0x38c] ss:$16 sps:$4 sm:$0xff]   ;;  %v7638_v59 = vld [vmem:[#allocation6 + $0x560] ss:$16 sps:$4 sm:$0xff]  }
 0x300   :  { %5561 = vmatprep.subr.bf16.mxu0 %v7532_v63  ;;  %5690 = vmatprep.subr.bf16.mxu1 %v7535_v1  ;;  %v7646_v63 = vld [vmem:[#allocation6 + $0x584] ss:$16 sps:$4 sm:$0xff]   ;;  %v7599_v1 = vld [vmem:[#allocation6 + $0x388] ss:$16 sps:$4 sm:$0xff]  }
 0x303   :  { %5562 = vmatpush1.bf16.msra.mxu0 %v7530_v27  ;;  %5691 = vmatpush1.bf16.msra.mxu1 %v7533_v2  ;;  %v7607_v27 = vld [vmem:[#allocation6 + $0x3ac] ss:$16 sps:$4 sm:$0xff]   ;;  %v7644_v2 = vld [vmem:[#allocation6 + $0x580] ss:$16 sps:$4 sm:$0xff]  }
 0x304   :  { %5563 = vmatprep.subr.bf16.mxu0 %v7538_v3  ;;  %5692 = vmatprep.subr.bf16.mxu1 %v7541_v60  ;;  %v7652_v3 = vld [vmem:[#allocation6 + $0x5a4] ss:$16 sps:$4 sm:$0xff]   ;;  %v7605_v60 = vld [vmem:[#allocation6 + $0x3a8] ss:$16 sps:$4 sm:$0xff]  }
 0x307   :  { %5564 = vmatpush1.bf16.msra.mxu0 %v7536_v5  ;;  %5693 = vmatpush1.bf16.msra.mxu1 %v7539_v30  ;;  %v7613_v5 = vld [vmem:[#allocation6 + $0x3cc] ss:$16 sps:$4 sm:$0xff]   ;;  %v7650_v30 = vld [vmem:[#allocation6 + $0x5a0] ss:$16 sps:$4 sm:$0xff]  }
 0x308   :  { %5565 = vmatprep.subr.bf16.mxu0 %v7544_v7  ;;  %5694 = vmatprep.subr.bf16.mxu1 %v7547_v12  ;;  %v7658_v7 = vld [vmem:[#allocation6 + $0x5c4] ss:$16 sps:$4 sm:$0xff]   ;;  %v7611_v12 = vld [vmem:[#allocation6 + $0x3c8] ss:$16 sps:$4 sm:$0xff]  }
 0x30b   :  { %5566 = vmatpush1.bf16.msra.mxu0 %v7542_v8  ;;  %5695 = vmatpush1.bf16.msra.mxu1 %v7545_v9  ;;  %v7619_v8 = vld [vmem:[#allocation6 + $0x3ec] ss:$16 sps:$4 sm:$0xff]   ;;  %v7656_v9 = vld [vmem:[#allocation6 + $0x5c0] ss:$16 sps:$4 sm:$0xff]  }
 0x30c   :  { %5707 = vmatprep.subr.bf16.mxu1 %v7550_v10  ;;  %5578 = vmatprep.subr.bf16.mxu0 %v7574_v11  ;;  %v7664_v10 = vld [vmem:[#allocation6 + $0x5e4] ss:$16 sps:$4 sm:$0xff]   ;;  %v7617_v11 = vld [vmem:[#allocation6 + $0x3e8] ss:$16 sps:$4 sm:$0xff]  }
 0x30e   :  { %5568 = vmatmul.mubr.bf16.vlgmr.msra.gmra.mrb[8].mxu0 %v8391_v24  ;;  %5697 = vmatmul.mubr.bf16.vlgmr.msra.gmra.mrb[12].mxu1 %v8378_v26  ;;  %v7557_v26 = vld [vmem:[#allocation6 + $0x268] ss:$16 sps:$4 sm:$0xff]  }
 0x30f   :  { %5708 = vmatpush1.bf16.msra.mxu1 %v7548_v13  ;;  %5739 = vmatprep.mubr.bf16.mxu1 %v8393_v31  ;;  %v7560_v31 = vld [vmem:[#allocation6 + $0x288] ss:$16 sps:$4 sm:$0xff]   ;;  %v7625_v13 = vld [vmem:[#allocation6 + $0x40c] ss:$16 sps:$4 sm:$0xff]  }
 0x310   :  { %5709 = vmatprep.subr.bf16.mxu1 %v7553_v14  ;;  %5579 = vmatpush1.bf16.msra.mxu0 %v7572_v15  ;;  %v7662_v14 = vld [vmem:[#allocation6 + $0x5e0] ss:$16 sps:$4 sm:$0xff]   ;;  %v7670_v15 = vld [vmem:[#allocation6 + $0x604] ss:$16 sps:$4 sm:$0xff]  }
 0x311   :  { %5580 = vmatprep.subr.bf16.mxu0 %v7580_v16  ;;  %v7623_v16 = vld [vmem:[#allocation6 + $0x408] ss:$16 sps:$4 sm:$0xff]  }
 0x313   :  { %5710 = vmatpush1.bf16.msra.mxu1 %v7551_v17  ;;  %v7631_v17 = vld [vmem:[#allocation6 + $0x42c] ss:$16 sps:$4 sm:$0xff]  }
 0x314   :  { %5711 = vmatprep.subr.bf16.mxu1 %v7556_v18  ;;  %5581 = vmatpush1.bf16.msra.mxu0 %v7578_v19  ;;  %v7629_v18 = vld [vmem:[#allocation6 + $0x428] ss:$16 sps:$4 sm:$0xff]   ;;  %v7637_v19 = vld [vmem:[#allocation6 + $0x44c] ss:$16 sps:$4 sm:$0xff]  }
 0x315   :  { %5582 = vmatprep.subr.bf16.mxu0 %v7586_v29  ;;  %v7635_v29 = vld [vmem:[#allocation6 + $0x448] ss:$16 sps:$4 sm:$0xff]  }
 0x317   :  { %5712 = vmatpush1.bf16.msra.mxu1 %v7554_v20  ;;  %v7643_v20 = vld [vmem:[#allocation6 + $0x46c] ss:$16 sps:$4 sm:$0xff]  }
 0x318   :  { %5713 = vmatprep.subr.bf16.mxu1 %v7559_v21  ;;  %5583 = vmatpush1.bf16.msra.mxu0 %v7584_v22  ;;  %v7641_v21 = vld [vmem:[#allocation6 + $0x468] ss:$16 sps:$4 sm:$0xff]   ;;  %v7649_v22 = vld [vmem:[#allocation6 + $0x48c] ss:$16 sps:$4 sm:$0xff]  }
 0x319   :  { %5584 = vmatprep.subr.bf16.mxu0 %v7592_v23  ;;  %v7647_v23 = vld [vmem:[#allocation6 + $0x488] ss:$16 sps:$4 sm:$0xff]  }
 0x31b   :  { %5714 = vmatpush1.bf16.msra.mxu1 %v7557_v26  ;;  %v922_v26 = vld [vmem:[#allocation10 + $0x20] sm:$0xff] }
 0x31c   :  { %5715 = vmatprep.subr.bf16.mxu1 %v7562_v25  ;;  %5585 = vmatpush1.bf16.msra.mxu0 %v7590_v28  ;;  %v7655_v25 = vld [vmem:[#allocation6 + $0x4ac] ss:$16 sps:$4 sm:$0xff]  }
 0x31d   :  { %5586 = vmatprep.subr.bf16.mxu0 %v7598_v40  ;;  %v923_v28 = vld [vmem:[#allocation10 + $0x28] sm:$0xff] }
 0x31e   :  { %v7653_v40 = vld [vmem:[#allocation6 + $0x4a8] ss:$16 sps:$4 sm:$0xff]  }
 0x31f   :  { %5716 = vmatpush1.bf16.msra.mxu1 %v7560_v31  ;;  %v4115_v31 = vrot.slane %v923_v28, %v8367_v6  ;;  %v7727_v28 = vld [vmem:[#allocation6 + $0x62c] ss:$16 sps:$4 sm:$0xff]  }
 0x320   :  { %5717 = vmatprep.subr.bf16.mxu1 %v7565_v32  ;;  %5587 = vmatpush1.bf16.msra.mxu0 %v7596_v33  ;;  %v7661_v32 = vld [vmem:[#allocation6 + $0x4cc] ss:$16 sps:$4 sm:$0xff]  }
 0x321   :  { %5588 = vmatprep.subr.bf16.mxu0 %v7604_v34 }
 0x323   :  { %5718 = vmatpush1.bf16.msra.mxu1 %v7563_v38 }
 0x324   :  { %5719 = vmatprep.subr.bf16.mxu1 %v7568_v54  ;;  %5589 = vmatpush1.bf16.msra.mxu0 %v7602_v42 }
 0x325   :  { %5590 = vmatprep.subr.bf16.mxu0 %v7610_v44  ;;  %v7659_v44 = vld [vmem:[#allocation6 + $0x4c8] ss:$16 sps:$4 sm:$0xff]  }
 0x327   :  { %5720 = vmatpush1.bf16.msra.mxu1 %v7566_v36 }
 0x328   :  { %5721 = vmatprep.subr.bf16.mxu1 %v7571_v56  ;;  %5591 = vmatpush1.bf16.msra.mxu0 %v7608_v35 }
 0x329   :  { %5592 = vmatprep.subr.bf16.mxu0 %v7616_v37  ;;  %v7667_v37 = vld [vmem:[#allocation6 + $0x4ec] ss:$16 sps:$4 sm:$0xff]  }
 0x32b   :  { %5722 = vmatpush1.bf16.msra.mxu1 %v7569_v39 }
 0x32c   :  { %5723 = vmatprep.subr.bf16.mxu1 %v7577_v57  ;;  %5593 = vmatpush1.bf16.msra.mxu0 %v7614_v41 }
 0x32d   :  { %5594 = vmatprep.subr.bf16.mxu0 %v7622_v43 }
 0x32f   :  { %5724 = vmatpush1.bf16.msra.mxu1 %v7575_v61  ;;  %v7665_v61 = vld [vmem:[#allocation6 + $0x4e8] ss:$16 sps:$4 sm:$0xff]  }
 0x330   :  { %5725 = vmatprep.subr.bf16.mxu1 %v7583_v45  ;;  %5595 = vmatpush1.bf16.msra.mxu0 %v7620_v47 }
 0x331   :  { %5596 = vmatprep.subr.bf16.mxu0 %v7628_v48 }
 0x333   :  { %5726 = vmatpush1.bf16.msra.mxu1 %v7581_v49 }
 0x334   :  { %5727 = vmatprep.subr.bf16.mxu1 %v7589_v50  ;;  %5597 = vmatpush1.bf16.msra.mxu0 %v7626_v46  ;;  %v7673_v46 = vld [vmem:[#allocation6 + $0x50c] ss:$16 sps:$4 sm:$0xff]  }
 0x335   :  { %5598 = vmatprep.subr.bf16.mxu0 %v7634_v52 }
 0x337   :  { %5728 = vmatpush1.bf16.msra.mxu1 %v7587_v4  ;;  %v7668_v4 = vld [vmem:[#allocation6 + $0x600] ss:$16 sps:$4 sm:$0xff]  }
 0x338   :  { %5729 = vmatprep.subr.bf16.mxu1 %v7595_v0  ;;  %5599 = vmatpush1.bf16.msra.mxu0 %v7632_v53  ;;  %v7671_v0 = vld [vmem:[#allocation6 + $0x508] ss:$16 sps:$4 sm:$0xff]   ;;  %v7676_v53 = vld [vmem:[#allocation6 + $0x624] ss:$16 sps:$4 sm:$0xff]  }
 0x339   :  { %5600 = vmatprep.subr.bf16.mxu0 %v7640_v55  ;;  %v7679_v55 = vld [vmem:[#allocation6 + $0x52c] ss:$16 sps:$4 sm:$0xff]  }
 0x33b   :  { %5730 = vmatpush1.bf16.msra.mxu1 %v7593_v58  ;;  %v7674_v58 = vld [vmem:[#allocation6 + $0x620] ss:$16 sps:$4 sm:$0xff]  }
 0x33c   :  { %5731 = vmatprep.subr.bf16.mxu1 %v7601_v51  ;;  %5601 = vmatpush1.bf16.msra.mxu0 %v7638_v59  ;;  %v7677_v51 = vld [vmem:[#allocation6 + $0x528] ss:$16 sps:$4 sm:$0xff]   ;;  %v7682_v59 = vld [vmem:[#allocation6 + $0x644] ss:$16 sps:$4 sm:$0xff]  }
 0x33d   :  { %5602 = vmatprep.subr.bf16.mxu0 %v7646_v63  ;;  %v7685_v63 = vld [vmem:[#allocation6 + $0x54c] ss:$16 sps:$4 sm:$0xff]  }
 0x33f   :  { %5732 = vmatpush1.bf16.msra.mxu1 %v7599_v1  ;;  %v7680_v1 = vld [vmem:[#allocation6 + $0x640] ss:$16 sps:$4 sm:$0xff]  }
 0x340   :  { %5733 = vmatprep.subr.bf16.mxu1 %v7607_v27  ;;  %5603 = vmatpush1.bf16.msra.mxu0 %v7644_v2  ;;  %v7683_v27 = vld [vmem:[#allocation6 + $0x548] ss:$16 sps:$4 sm:$0xff]   ;;  %v7688_v2 = vld [vmem:[#allocation6 + $0x664] ss:$16 sps:$4 sm:$0xff]  }
 0x341   :  { %5604 = vmatprep.subr.bf16.mxu0 %v7652_v3  ;;  %v7691_v3 = vld [vmem:[#allocation6 + $0x56c] ss:$16 sps:$4 sm:$0xff]  }
 0x343   :  { %5734 = vmatpush1.bf16.msra.mxu1 %v7605_v60  ;;  %v7686_v60 = vld [vmem:[#allocation6 + $0x660] ss:$16 sps:$4 sm:$0xff]  }
 0x344   :  { %5735 = vmatprep.subr.bf16.mxu1 %v7613_v5  ;;  %5605 = vmatpush1.bf16.msra.mxu0 %v7650_v30  ;;  %v7689_v5 = vld [vmem:[#allocation6 + $0x568] ss:$16 sps:$4 sm:$0xff]   ;;  %v7694_v30 = vld [vmem:[#allocation6 + $0x684] ss:$16 sps:$4 sm:$0xff]  }
 0x345   :  { %5606 = vmatprep.subr.bf16.mxu0 %v7658_v7  ;;  %v7697_v7 = vld [vmem:[#allocation6 + $0x58c] ss:$16 sps:$4 sm:$0xff]  }
 0x347   :  { %5736 = vmatpush1.bf16.msra.mxu1 %v7611_v12  ;;  %v7692_v12 = vld [vmem:[#allocation6 + $0x680] ss:$16 sps:$4 sm:$0xff]  }
 0x348   :  { %5737 = vmatprep.subr.bf16.mxu1 %v7619_v8  ;;  %5607 = vmatpush1.bf16.msra.mxu0 %v7656_v9  ;;  %v7695_v8 = vld [vmem:[#allocation6 + $0x588] ss:$16 sps:$4 sm:$0xff]   ;;  %v7700_v9 = vld [vmem:[#allocation6 + $0x6a4] ss:$16 sps:$4 sm:$0xff]  }
 0x349   :  { %5608 = vmatprep.subr.bf16.mxu0 %v7664_v10  ;;  %v7703_v10 = vld [vmem:[#allocation6 + $0x5ac] ss:$16 sps:$4 sm:$0xff]  }
 0x34b   :  { %5738 = vmatpush1.bf16.msra.mxu1 %v7617_v11  ;;  %v7698_v11 = vld [vmem:[#allocation6 + $0x6a0] ss:$16 sps:$4 sm:$0xff]  }
 0x34c   :  { %5750 = vmatprep.subr.bf16.mxu1 %v7625_v13  ;;  %5609 = vmatpush1.bf16.msra.mxu0 %v7662_v14  ;;  %v7701_v13 = vld [vmem:[#allocation6 + $0x5a8] ss:$16 sps:$4 sm:$0xff]   ;;  %v7706_v14 = vld [vmem:[#allocation6 + $0x6c4] ss:$16 sps:$4 sm:$0xff]  }
 0x34d   :  { %5621 = vmatprep.subr.bf16.mxu0 %v7670_v15  ;;  %v7709_v15 = vld [vmem:[#allocation6 + $0x5cc] ss:$16 sps:$4 sm:$0xff]  }
 0x34e   :  { %5740 = vmatmul.mubr.bf16.vlgmr.msra.gmra.mrb[12].mxu1 %v8391_v24  ;;  %v4111_v24 = vrot.slane %v922_v26, %v8367_v6  ;;  %v7719_v26 = vld [vmem:[#allocation6 + $0x608] ss:$16 sps:$4 sm:$0xff]  }
 0x34f   :  { %5751 = vmatpush1.bf16.msra.mxu1 %v7623_v16  ;;  %v7704_v16 = vld [vmem:[#allocation6 + $0x6c0] ss:$16 sps:$4 sm:$0xff]  }
 0x350   :  { %5752 = vmatprep.subr.bf16.mxu1 %v7631_v17  ;;  %v7707_v17 = vld [vmem:[#allocation6 + $0x5c8] ss:$16 sps:$4 sm:$0xff]  }
 0x353   :  { %5753 = vmatpush1.bf16.msra.mxu1 %v7629_v18  ;;  %v7712_v18 = vld [vmem:[#allocation6 + $0x6e4] ss:$16 sps:$4 sm:$0xff]  }
 0x354   :  { %5754 = vmatprep.subr.bf16.mxu1 %v7637_v19  ;;  %v7715_v19 = vld [vmem:[#allocation6 + $0x5ec] ss:$16 sps:$4 sm:$0xff]  }
 0x357   :  { %5755 = vmatpush1.bf16.msra.mxu1 %v7635_v29  ;;  %v7710_v29 = vld [vmem:[#allocation6 + $0x6e0] ss:$16 sps:$4 sm:$0xff]  }
 0x358   :  { %5756 = vmatprep.subr.bf16.mxu1 %v7643_v20  ;;  %v7713_v20 = vld [vmem:[#allocation6 + $0x5e8] ss:$16 sps:$4 sm:$0xff]  }
 0x35b   :  { %5757 = vmatpush1.bf16.msra.mxu1 %v7641_v21  ;;  %v7718_v21 = vld [vmem:[#allocation6 + $0x704] ss:$16 sps:$4 sm:$0xff]  }
 0x35c   :  { %5758 = vmatprep.subr.bf16.mxu1 %v7649_v22  ;;  %v7721_v22 = vld [vmem:[#allocation6 + $0x60c] ss:$16 sps:$4 sm:$0xff]  }
 0x35f   :  { %5759 = vmatpush1.bf16.msra.mxu1 %v7647_v23  ;;  %v7716_v23 = vld [vmem:[#allocation6 + $0x700] ss:$16 sps:$4 sm:$0xff]  }
 0x360   :  { %5760 = vmatprep.subr.bf16.mxu1 %v7655_v25  ;;  %v7724_v25 = vld [vmem:[#allocation6 + $0x724] ss:$16 sps:$4 sm:$0xff]  }
 0x361   :  { %v3911_v33 = vpop.f32.mrb[0].mxu0 }
 0x362   :  { %v4128_v34 = vadd.f32 %v4111_v24, %v3911_v33  ;;  %v3913_v38 = vpop.f32.mrb[1].mxu0  ;;  %v7728_v33 = vld [vmem:[#allocation6 + $0x740] ss:$16 sps:$4 sm:$0xff]  }
 0x363   :  { %v4129_v54 = vadd.f32 %v4115_v31, %v3913_v38  ;;  %5761 = vmatpush1.bf16.msra.mxu1 %v7653_v40  ;;  %v3915_v42 = vpop.f32.mrb[2].mxu0  ;;  %v7725_v40 = vld [vmem:[#allocation6 + $0x628] ss:$16 sps:$4 sm:$0xff]   ;;  %v7736_v38 = vld [vmem:[#allocation6 + $0x764] ss:$16 sps:$4 sm:$0xff]  }
 0x364   :  { %v4160_v36 = vmul.f32 0.2, %v4128_v34  ;;  %v4136_v56 = vadd.f32 %v4111_v24, %v3915_v42  ;;  %v3917_v35 = vpop.f32.mrb[3].mxu0  ;;  %5762 = vmatprep.subr.bf16.mxu1 %v7661_v32  ;;  %vm4144_vm12 = vcmp.ge.f32.partialorder %v4128_v34, 0.0  ;;  %v7722_v24 = vld [vmem:[#allocation6 + $0x720] ss:$16 sps:$4 sm:$0xff]  }
 0x365   :  { %v4161_v39 = vmul.f32 0.2, %v4129_v54  ;;  %v4137_v57 = vadd.f32 %v4115_v31, %v3917_v35  ;;  %vm4145_vm13 = vcmp.ge.f32.partialorder %v4129_v54, 0.0  ;;  %v7730_v31 = vld [vmem:[#allocation6 + $0x744] ss:$16 sps:$4 sm:$0xff]  }
 0x366   :  { %vm4152_vm14 = vcmp.ge.f32.partialorder %v4136_v56, 0.0  ;;  %v4168_v41 = vmul.f32 0.2, %v4136_v56  ;;  %v4176_v45 = vsel %vm4144_vm12, %v4128_v34, %v4160_v36  ;;  %v7733_v32 = vld [vmem:[#allocation6 + $0x64c] ss:$16 sps:$4 sm:$0xff]  }
 0x367   :  { %vm4153_vm15 = vcmp.ge.f32.partialorder %v4137_v57, 0.0  ;;  %v4169_v43 = vmul.f32 0.2, %v4137_v57  ;;  %5763 = vmatpush1.bf16.msra.mxu1 %v7659_v44  ;;  %v4177_v49 = vsel %vm4145_vm13, %v4129_v54, %v4161_v39  ;;  %v7731_v34 = vld [vmem:[#allocation6 + $0x648] ss:$16 sps:$4 sm:$0xff]   ;;  %v924_v39 = vld [vmem:[#allocation10 + $0x30] sm:$0xff] }
 0x368   :  { %v4184_v47 = vsel %vm4152_vm14, %v4136_v56, %v4168_v41  ;;  %5764 = vmatprep.subr.bf16.mxu1 %v7667_v37  ;;  %v7739_v54 = vld [vmem:[#allocation6 + $0x66c] ss:$16 sps:$4 sm:$0xff]   ;;  %v7734_v42 = vld [vmem:[#allocation6 + $0x760] ss:$16 sps:$4 sm:$0xff]   ;;  %v7737_v44 = vld [vmem:[#allocation6 + $0x668] ss:$16 sps:$4 sm:$0xff]  }
 0x369   :  { %v8402_v48 = vpack.c.bf16 %v4184_v47, %v4176_v45  ;;  %v4185_v50 = vsel %vm4153_vm15, %v4137_v57, %v4169_v43  ;;  %v7742_v36 = vld [vmem:[#allocation6 + $0x784] ss:$16 sps:$4 sm:$0xff]   ;;  %v7745_v56 = vld [vmem:[#allocation6 + $0x68c] ss:$16 sps:$4 sm:$0xff]   ;;  %v7740_v35 = vld [vmem:[#allocation6 + $0x780] ss:$16 sps:$4 sm:$0xff]  }
 0x36a   :  { %v4193_v52 = vpack.c.bf16 %v4185_v50, %v4177_v49  ;;  %v7743_v37 = vld [vmem:[#allocation6 + $0x688] ss:$16 sps:$4 sm:$0xff]   ;;  %v7748_v57 = vld [vmem:[#allocation6 + $0x7a4] ss:$16 sps:$4 sm:$0xff]   ;;  %v7751_v41 = vld [vmem:[#allocation6 + $0x6ac] ss:$16 sps:$4 sm:$0xff]  }
 0x36b   :  { %5765 = vmatpush1.bf16.msra.mxu1 %v7665_v61  ;;  %v925_v43 = vld [vmem:[#allocation10 + $0x38] sm:$0xff]  ;;  %v4119_v61 = vrot.slane %v924_v39, %v8367_v6  ;;  %v7746_v45 = vld [vmem:[#allocation6 + $0x7a0] ss:$16 sps:$4 sm:$0xff]   ;;  %v7754_v49 = vld [vmem:[#allocation6 + $0x7c4] ss:$16 sps:$4 sm:$0xff]  }
 0x36c   :  { %5610 = vmatprep.mubr.bf16.mxu0 %v4193_v52  ;;  %5782 = vmatprep.mubr.bf16.mxu1 %v4193_v52  ;;  %v7749_v47 = vld [vmem:[#allocation6 + $0x6a8] ss:$16 sps:$4 sm:$0xff]   ;;  %v7757_v50 = vld [vmem:[#allocation6 + $0x6cc] ss:$16 sps:$4 sm:$0xff]  }
 0x36d   :  { %5611 = vmatmul.mubr.bf16.vlgmr.msra.gmra.mrb[8].mxu0 %v8402_v48  ;;  %5766 = vmatprep.subr.bf16.mxu1 %v7673_v46  ;;  %v7787_v39 = vld [vmem:[#allocation6 + $0x7ec] ss:$16 sps:$4 sm:$0xff]  }
 0x36e   :  { %5622 = vmatpush1.bf16.msra.mxu0 %v7668_v4 }
 0x36f   :  { %5767 = vmatpush1.bf16.msra.mxu1 %v7671_v0  ;;  %5623 = vmatprep.subr.bf16.mxu0 %v7676_v53  ;;  %v7752_v0 = vld [vmem:[#allocation6 + $0x7c0] ss:$16 sps:$4 sm:$0xff]  }
 0x370   :  { %5768 = vmatprep.subr.bf16.mxu1 %v7679_v55 }
 0x372   :  { %5624 = vmatpush1.bf16.msra.mxu0 %v7674_v58  ;;  %v7755_v58 = vld [vmem:[#allocation6 + $0x6c8] ss:$16 sps:$4 sm:$0xff]  }
 0x373   :  { %5769 = vmatpush1.bf16.msra.mxu1 %v7677_v51  ;;  %5625 = vmatprep.subr.bf16.mxu0 %v7682_v59  ;;  %v7760_v51 = vld [vmem:[#allocation6 + $0x7e4] ss:$16 sps:$4 sm:$0xff]  }
 0x374   :  { %5770 = vmatprep.subr.bf16.mxu1 %v7685_v63 }
 0x376   :  { %5626 = vmatpush1.bf16.msra.mxu0 %v7680_v1 }
 0x377   :  { %5771 = vmatpush1.bf16.msra.mxu1 %v7683_v27  ;;  %5627 = vmatprep.subr.bf16.mxu0 %v7688_v2  ;;  %v7763_v27 = vld [vmem:[#allocation6 + $0x6ec] ss:$16 sps:$4 sm:$0xff]  }
 0x378   :  { %5772 = vmatprep.subr.bf16.mxu1 %v7691_v3  ;;  %v7758_v3 = vld [vmem:[#allocation6 + $0x7e0] ss:$16 sps:$4 sm:$0xff]  }
 0x37a   :  { %5628 = vmatpush1.bf16.msra.mxu0 %v7686_v60 }
 0x37b   :  { %5773 = vmatpush1.bf16.msra.mxu1 %v7689_v5  ;;  %5629 = vmatprep.subr.bf16.mxu0 %v7694_v30  ;;  %v7761_v5 = vld [vmem:[#allocation6 + $0x6e8] ss:$16 sps:$4 sm:$0xff]  }
 0x37c   :  { %5774 = vmatprep.subr.bf16.mxu1 %v7697_v7  ;;  %v7790_v7 = vld [vmem:[#allocation7 + $0x4] ss:$8 sps:$4 sm:$0xff]  }
 0x37e   :  { %5630 = vmatpush1.bf16.msra.mxu0 %v7692_v12 }
 0x37f   :  { %5775 = vmatpush1.bf16.msra.mxu1 %v7695_v8  ;;  %5631 = vmatprep.subr.bf16.mxu0 %v7700_v9 }
 0x380   :  { %5776 = vmatprep.subr.bf16.mxu1 %v7703_v10 }
 0x382   :  { %5632 = vmatpush1.bf16.msra.mxu0 %v7698_v11 }
 0x383   :  { %5777 = vmatpush1.bf16.msra.mxu1 %v7701_v13  ;;  %5633 = vmatprep.subr.bf16.mxu0 %v7706_v14  ;;  %v7766_v13 = vld [vmem:[#allocation6 + $0x70c] ss:$16 sps:$4 sm:$0xff]  }
 0x384   :  { %5778 = vmatprep.subr.bf16.mxu1 %v7709_v15  ;;  %v7788_v15 = vld [vmem:[#allocation7] ss:$8 sps:$4 sm:$0xff]  }
 0x386   :  { %5634 = vmatpush1.bf16.msra.mxu0 %v7704_v16  ;;  %v7764_v16 = vld [vmem:[#allocation6 + $0x708] ss:$16 sps:$4 sm:$0xff]  }
 0x387   :  { %5779 = vmatpush1.bf16.msra.mxu1 %v7707_v17  ;;  %5635 = vmatprep.subr.bf16.mxu0 %v7712_v18  ;;  %v7793_v17 = vld [vmem:[#allocation7 + $0x14] ss:$8 sps:$4 sm:$0xff]  }
 0x388   :  { %5780 = vmatprep.subr.bf16.mxu1 %v7715_v19  ;;  %v7769_v18 = vld [vmem:[#allocation6 + $0x72c] ss:$16 sps:$4 sm:$0xff]   ;;  %v7791_v19 = vld [vmem:[#allocation7 + $0x10] ss:$8 sps:$4 sm:$0xff]  }
 0x38a   :  { %5636 = vmatpush1.bf16.msra.mxu0 %v7710_v29  ;;  %v7767_v29 = vld [vmem:[#allocation6 + $0x728] ss:$16 sps:$4 sm:$0xff]  }
 0x38b   :  { %5781 = vmatpush1.bf16.msra.mxu1 %v7713_v20  ;;  %5637 = vmatprep.subr.bf16.mxu0 %v7718_v21  ;;  %v7796_v20 = vld [vmem:[#allocation7 + $0x24] ss:$8 sps:$4 sm:$0xff]  }
 0x38c   :  { %5793 = vmatprep.subr.bf16.mxu1 %v7721_v22  ;;  %v7772_v21 = vld [vmem:[#allocation6 + $0x74c] ss:$16 sps:$4 sm:$0xff]   ;;  %v7794_v22 = vld [vmem:[#allocation7 + $0x20] ss:$8 sps:$4 sm:$0xff]  }
 0x38e   :  { %5783 = vmatmul.mubr.bf16.vlgmr.msra.gmra.mrb[12].mxu1 %v8402_v48  ;;  %5638 = vmatpush1.bf16.msra.mxu0 %v7716_v23  ;;  %v4123_v48 = vrot.slane %v925_v43, %v8367_v6  ;;  %v7770_v23 = vld [vmem:[#allocation6 + $0x748] ss:$16 sps:$4 sm:$0xff]   ;;  %v7814_v43 = vld [vmem:[#allocation7 + $0x84] ss:$8 sps:$4 sm:$0xff]  }
 0x38f   :  { %5794 = vmatpush1.bf16.msra.mxu1 %v7719_v26  ;;  %5639 = vmatprep.subr.bf16.mxu0 %v7724_v25  ;;  %v7799_v26 = vld [vmem:[#allocation7 + $0x34] ss:$8 sps:$4 sm:$0xff]  }
 0x390   :  { %5795 = vmatprep.subr.bf16.mxu1 %v7727_v28  ;;  %v7775_v25 = vld [vmem:[#allocation6 + $0x76c] ss:$16 sps:$4 sm:$0xff]   ;;  %v7797_v28 = vld [vmem:[#allocation7 + $0x30] ss:$8 sps:$4 sm:$0xff]  }
 0x392   :  { %5640 = vmatpush1.bf16.msra.mxu0 %v7722_v24  ;;  %v7773_v24 = vld [vmem:[#allocation6 + $0x768] ss:$16 sps:$4 sm:$0xff]  }
 0x393   :  { %5796 = vmatpush1.bf16.msra.mxu1 %v7725_v40  ;;  %5641 = vmatprep.subr.bf16.mxu0 %v7730_v31  ;;  %v7802_v40 = vld [vmem:[#allocation7 + $0x44] ss:$8 sps:$4 sm:$0xff]  }
 0x394   :  { %5797 = vmatprep.subr.bf16.mxu1 %v7733_v32  ;;  %v7778_v31 = vld [vmem:[#allocation6 + $0x78c] ss:$16 sps:$4 sm:$0xff]   ;;  %v7800_v32 = vld [vmem:[#allocation7 + $0x40] ss:$8 sps:$4 sm:$0xff]  }
 0x396   :  { %5642 = vmatpush1.bf16.msra.mxu0 %v7728_v33  ;;  %v7776_v33 = vld [vmem:[#allocation6 + $0x788] ss:$16 sps:$4 sm:$0xff]  }
 0x397   :  { %5798 = vmatpush1.bf16.msra.mxu1 %v7731_v34  ;;  %5643 = vmatprep.subr.bf16.mxu0 %v7736_v38  ;;  %v7805_v34 = vld [vmem:[#allocation7 + $0x54] ss:$8 sps:$4 sm:$0xff]  }
 0x398   :  { %5799 = vmatprep.subr.bf16.mxu1 %v7739_v54  ;;  %v7781_v38 = vld [vmem:[#allocation6 + $0x7ac] ss:$16 sps:$4 sm:$0xff]   ;;  %v7803_v54 = vld [vmem:[#allocation7 + $0x50] ss:$8 sps:$4 sm:$0xff]  }
 0x39a   :  { %5644 = vmatpush1.bf16.msra.mxu0 %v7734_v42  ;;  %v7779_v42 = vld [vmem:[#allocation6 + $0x7a8] ss:$16 sps:$4 sm:$0xff]  }
 0x39b   :  { %5800 = vmatpush1.bf16.msra.mxu1 %v7737_v44  ;;  %5645 = vmatprep.subr.bf16.mxu0 %v7742_v36  ;;  %v7808_v44 = vld [vmem:[#allocation7 + $0x64] ss:$8 sps:$4 sm:$0xff]  }
 0x39c   :  { %5801 = vmatprep.subr.bf16.mxu1 %v7745_v56  ;;  %v7784_v36 = vld [vmem:[#allocation6 + $0x7cc] ss:$16 sps:$4 sm:$0xff]   ;;  %v7806_v56 = vld [vmem:[#allocation7 + $0x60] ss:$8 sps:$4 sm:$0xff]  }
 0x39e   :  { %5646 = vmatpush1.bf16.msra.mxu0 %v7740_v35  ;;  %v7782_v35 = vld [vmem:[#allocation6 + $0x7c8] ss:$16 sps:$4 sm:$0xff]  }
 0x39f   :  { %5802 = vmatpush1.bf16.msra.mxu1 %v7743_v37  ;;  %5647 = vmatprep.subr.bf16.mxu0 %v7748_v57  ;;  %v7811_v37 = vld [vmem:[#allocation7 + $0x74] ss:$8 sps:$4 sm:$0xff]   ;;  %v7809_v57 = vld [vmem:[#allocation7 + $0x70] ss:$8 sps:$4 sm:$0xff]  }
 0x3a0   :  { %5803 = vmatprep.subr.bf16.mxu1 %v7751_v41  ;;  %v7785_v41 = vld [vmem:[#allocation6 + $0x7e8] ss:$16 sps:$4 sm:$0xff]  }
 0x3a1   :  { %v4083_v46 = vpop.f32.mrb[8].mxu1 }
 0x3a2   :  { %v4130_v52 = vadd.f32 %v4119_v61, %v4083_v46  ;;  %v4085_v4 = vpop.f32.mrb[9].mxu1  ;;  %5648 = vmatpush1.bf16.msra.mxu0 %v7746_v45  ;;  %v7817_v45 = vld [vmem:[#allocation7 + $0x94] ss:$8 sps:$4 sm:$0xff]   ;;  %v7821_v46 = vld [vmem:[#allocation7 + $0xb0] ss:$8 sps:$4 sm:$0xff]  }
 0x3a3   :  { %v4131_v53 = vadd.f32 %v4123_v48, %v4085_v4  ;;  %5804 = vmatpush1.bf16.msra.mxu1 %v7749_v47  ;;  %v4087_v55 = vpop.f32.mrb[10].mxu1  ;;  %5649 = vmatprep.subr.bf16.mxu0 %v7754_v49  ;;  %v7815_v47 = vld [vmem:[#allocation7 + $0x90] ss:$8 sps:$4 sm:$0xff]   ;;  %v7818_v49 = vld [vmem:[#allocation7 + $0xa0] ss:$8 sps:$4 sm:$0xff]  }
 0x3a4   :  { %v4162_v59 = vmul.f32 0.2, %v4130_v52  ;;  %v4138_v63 = vadd.f32 %v4119_v61, %v4087_v55  ;;  %v4089_v1 = vpop.f32.mrb[11].mxu1  ;;  %5805 = vmatprep.subr.bf16.mxu1 %v7757_v50  ;;  %vm4146_vm0 = vcmp.ge.f32.partialorder %v4130_v52, 0.0  ;;  %v7812_v61 = vld [vmem:[#allocation7 + $0x80] ss:$8 sps:$4 sm:$0xff]  }
 0x3a5   :  { %v4163_v6 = vmul.f32 0.2, %v4131_v53  ;;  %v4139_v2 = vadd.f32 %v4123_v48, %v4089_v1  ;;  %vm4147_vm1 = vcmp.ge.f32.partialorder %v4131_v53, 0.0  ;;  %v7820_v48 = vld [vmem:[#allocation7 + $0xa4] ss:$8 sps:$4 sm:$0xff]   ;;  %v4198_v1 = vsub.s32 1, %v8362_v62 }
 0x3a6   :  { %vm4154_vm2 = vcmp.ge.f32.partialorder %v4138_v63, 0.0  ;;  %v4170_v60 = vmul.f32 0.2, %v4138_v63  ;;  %5650 = vmatpush1.bf16.msra.mxu0 %v7752_v0  ;;  %v4178_v12 = vsel %vm4146_vm0, %v4130_v52, %v4162_v59  ;;  %v7823_v50 = vld [vmem:[#allocation7 + $0xb4] ss:$8 sps:$4 sm:$0xff]   ;;  %vm6467_vm0 = vcmask 122880  }
 0x3a7   :  { %vm4155_vm3 = vcmp.ge.f32.partialorder %v4139_v2, 0.0  ;;  %v4171_v30 = vmul.f32 0.2, %v4139_v2  ;;  %5806 = vmatpush1.bf16.msra.mxu1 %v7755_v58  ;;  %5651 = vmatprep.subr.bf16.mxu0 %v7760_v51  ;;  %v4179_v10 = vsel %vm4147_vm1, %v4131_v53, %v4163_v6  ;;  %v7826_v52 = vld [vmem:[#allocation7 + $0xc4] ss:$8 sps:$4 sm:$0xff]  }
 0x3a8   :  { %v4186_v8 = vsel %vm4154_vm2, %v4138_v63, %v4170_v60  ;;  %5807 = vmatprep.subr.bf16.mxu1 %v7763_v27  ;;  %v7824_v4 = vld [vmem:[#allocation7 + $0xc0] ss:$8 sps:$4 sm:$0xff]   ;;  %v7829_v0 = vld [vmem:[#allocation7 + $0xd4] ss:$8 sps:$4 sm:$0xff]   ;;  %v7827_v53 = vld [vmem:[#allocation7 + $0xd0] ss:$8 sps:$4 sm:$0xff]  }
 0x3a9   :  { %v8408_v9 = vpack.c.bf16 %v4186_v8, %v4178_v12  ;;  %v4187_v11 = vsel %vm4155_vm3, %v4139_v2, %v4171_v30  ;;  %v7832_v55 = vld [vmem:[#allocation7 + $0xe4] ss:$8 sps:$4 sm:$0xff]   ;;  %v7830_v58 = vld [vmem:[#allocation7 + $0xe0] ss:$8 sps:$4 sm:$0xff]   ;;  %v7835_v51 = vld [vmem:[#allocation7 + $0xf4] ss:$8 sps:$4 sm:$0xff]  }
 0x3aa   :  { %5652 = vmatpush1.bf16.msra.mxu0 %v7758_v3  ;;  %v4195_v14 = vpack.c.bf16 %v4187_v11, %v4179_v10  ;;  %v7833_v59 = vld [vmem:[#allocation7 + $0xf0] ss:$8 sps:$4 sm:$0xff]   ;;  %v7838_v63 = vld [vmem:[#allocation7 + $0x104] ss:$8 sps:$4 sm:$0xff]  }
 0x3ab   :  { %5808 = vmatpush1.bf16.msra.mxu1 %v7761_v5  ;;  %6192 = vmatprep.subr.bf16.mxu0 %v7790_v7  ;;  %v8413_v27 = vld [vmem:[#allocation10] sm:$0xff]  ;;  %v8416_v2 = vld [vmem:[#allocation10 + $0x8] sm:$0xff] }
 0x3ac   :  { %5653 = vmatprep.mubr.bf16.mxu0 %v4195_v14  ;;  %5825 = vmatprep.mubr.bf16.mxu1 %v4195_v14  ;;  %v4199_v6 = vrot.slane %v8413_v27, %v4198_v1  ;;  %v4203_v3 = vrot.slane %v8416_v2, %v4198_v1 }
 0x3ad   :  { %5654 = vmatmul.mubr.bf16.vlgmr.msra.gmra.mrb[8].mxu0 %v8408_v9  ;;  %5809 = vmatprep.subr.bf16.mxu1 %v7766_v13 }
 0x3ae   :  { %6193 = vmatpush1.bf16.msra.mxu0 %v7788_v15 }
 0x3af   :  { %5810 = vmatpush1.bf16.msra.mxu1 %v7764_v16  ;;  %6194 = vmatprep.subr.bf16.mxu0 %v7793_v17 }
 0x3b0   :  { %5811 = vmatprep.subr.bf16.mxu1 %v7769_v18 }
 0x3b2   :  { %6195 = vmatpush1.bf16.msra.mxu0 %v7791_v19 }
 0x3b3   :  { %5812 = vmatpush1.bf16.msra.mxu1 %v7767_v29  ;;  %6196 = vmatprep.subr.bf16.mxu0 %v7796_v20 }
 0x3b4   :  { %5813 = vmatprep.subr.bf16.mxu1 %v7772_v21  ;;  %v7836_v21 = vld [vmem:[#allocation7 + $0x100] ss:$8 sps:$4 sm:$0xff]  }
 0x3b6   :  { %6197 = vmatpush1.bf16.msra.mxu0 %v7794_v22  ;;  %v7841_v22 = vld [vmem:[#allocation7 + $0x114] ss:$8 sps:$4 sm:$0xff]  }
 0x3b7   :  { %5814 = vmatpush1.bf16.msra.mxu1 %v7770_v23  ;;  %6198 = vmatprep.subr.bf16.mxu0 %v7799_v26  ;;  %v7839_v23 = vld [vmem:[#allocation7 + $0x110] ss:$8 sps:$4 sm:$0xff]   ;;  %v7844_v26 = vld [vmem:[#allocation7 + $0x124] ss:$8 sps:$4 sm:$0xff]  }
 0x3b8   :  { %5815 = vmatprep.subr.bf16.mxu1 %v7775_v25  ;;  %v7842_v25 = vld [vmem:[#allocation7 + $0x120] ss:$8 sps:$4 sm:$0xff]  }
 0x3ba   :  { %6199 = vmatpush1.bf16.msra.mxu0 %v7797_v28  ;;  %v7847_v28 = vld [vmem:[#allocation7 + $0x134] ss:$8 sps:$4 sm:$0xff]  }
 0x3bb   :  { %5816 = vmatpush1.bf16.msra.mxu1 %v7773_v24  ;;  %6200 = vmatprep.subr.bf16.mxu0 %v7802_v40  ;;  %v7845_v24 = vld [vmem:[#allocation7 + $0x130] ss:$8 sps:$4 sm:$0xff]   ;;  %v7850_v40 = vld [vmem:[#allocation7 + $0x144] ss:$8 sps:$4 sm:$0xff]  }
 0x3bc   :  { %5817 = vmatprep.subr.bf16.mxu1 %v7778_v31  ;;  %v7848_v31 = vld [vmem:[#allocation7 + $0x140] ss:$8 sps:$4 sm:$0xff]  }
 0x3be   :  { %6201 = vmatpush1.bf16.msra.mxu0 %v7800_v32  ;;  %v7853_v32 = vld [vmem:[#allocation7 + $0x154] ss:$8 sps:$4 sm:$0xff]  }
 0x3bf   :  { %5818 = vmatpush1.bf16.msra.mxu1 %v7776_v33  ;;  %6202 = vmatprep.subr.bf16.mxu0 %v7805_v34  ;;  %v7851_v33 = vld [vmem:[#allocation7 + $0x150] ss:$8 sps:$4 sm:$0xff]  }
 0x3c0   :  { %5819 = vmatprep.subr.bf16.mxu1 %v7781_v38  ;;  %v7914_v34 = vld [vmem:[#allocation10 + $0x10] sm:$0xff] }
 0x3c1   :  { %v4207_v38 = vrot.slane %v7914_v34, %v4198_v1  ;;  %v7884_v34 = vld [vmem:[#allocation9] ss:$8 sps:$4 sm:$0xff]  }
 0x3c2   :  { %6203 = vmatpush1.bf16.msra.mxu0 %v7803_v54  ;;  %v7856_v54 = vld [vmem:[#allocation7 + $0x164] ss:$8 sps:$4 sm:$0xff]  }
 0x3c3   :  { %5820 = vmatpush1.bf16.msra.mxu1 %v7779_v42  ;;  %6204 = vmatprep.subr.bf16.mxu0 %v7808_v44  ;;  %v7915_v42 = vld [vmem:[#allocation10 + $0x18] sm:$0xff] }
 0x3c4   :  { %5821 = vmatprep.subr.bf16.mxu1 %v7784_v36  ;;  %v4211_v44 = vrot.slane %v7915_v42, %v4198_v1  ;;  %v7863_v1 = vld [vmem:[#allocation7 + $0x190] ss:$8 sps:$4 sm:$0xff]   ;;  %v7890_v42 = vld [vmem:[#allocation9 + $0x24] ss:$8 sps:$4 sm:$0xff]  }
 0x3c6   :  { %6205 = vmatpush1.bf16.msra.mxu0 %v7806_v56  ;;  %v7854_v56 = vld [vmem:[#allocation7 + $0x160] ss:$8 sps:$4 sm:$0xff]  }
 0x3c7   :  { %5822 = vmatpush1.bf16.msra.mxu1 %v7782_v35  ;;  %6206 = vmatprep.subr.bf16.mxu0 %v7811_v37 }
 0x3c8   :  { %5823 = vmatprep.subr.bf16.mxu1 %v7787_v39  ;;  %v7859_v39 = vld [vmem:[#allocation7 + $0x174] ss:$8 sps:$4 sm:$0xff]  }
 0x3ca   :  { %6207 = vmatpush1.bf16.msra.mxu0 %v7809_v57 }
 0x3cb   :  { %5824 = vmatpush1.bf16.msra.mxu1 %v7785_v41  ;;  %6208 = vmatprep.subr.bf16.mxu0 %v7814_v43 }
 0x3ce   :  { %5826 = vmatmul.mubr.bf16.vlgmr.msra.gmra.mrb[12].mxu1 %v8408_v9  ;;  %6209 = vmatpush1.bf16.msra.mxu0 %v7812_v61 }
 0x3cf   :  { %6210 = vmatprep.subr.bf16.mxu0 %v7817_v45 }
 0x3d2   :  { %6211 = vmatpush1.bf16.msra.mxu0 %v7815_v47 }
 0x3d3   :  { %6212 = vmatprep.subr.bf16.mxu0 %v7820_v48 }
 0x3d6   :  { %6213 = vmatpush1.bf16.msra.mxu0 %v7818_v49  ;;  %v7857_v49 = vld [vmem:[#allocation7 + $0x170] ss:$8 sps:$4 sm:$0xff]  }
 0x3d7   :  { %6214 = vmatprep.subr.bf16.mxu0 %v7823_v50 }
 0x3da   :  { %6215 = vmatpush1.bf16.msra.mxu0 %v7821_v46  ;;  %v7862_v46 = vld [vmem:[#allocation7 + $0x184] ss:$8 sps:$4 sm:$0xff]  }
 0x3db   :  { %6216 = vmatprep.subr.bf16.mxu0 %v7826_v52 }
 0x3de   :  { %6217 = vmatpush1.bf16.msra.mxu0 %v7824_v4 }
 0x3df   :  { %6218 = vmatprep.subr.bf16.mxu0 %v7829_v0 }
 0x3e2   :  { %6219 = vmatpush1.bf16.msra.mxu0 %v7827_v53 }
 0x3e3   :  { %6220 = vmatprep.subr.bf16.mxu0 %v7832_v55  ;;  %v7860_v55 = vld [vmem:[#allocation7 + $0x180] ss:$8 sps:$4 sm:$0xff]  }
 0x3e6   :  { %6221 = vmatpush1.bf16.msra.mxu0 %v7830_v58 }
 0x3e7   :  { %6222 = vmatprep.subr.bf16.mxu0 %v7835_v51 }
 0x3ea   :  { %6223 = vmatpush1.bf16.msra.mxu0 %v7833_v59 }
 0x3eb   :  { %6235 = vmatprep.subr.bf16.mxu0 %v7838_v63  ;;  %v7865_v63 = vld [vmem:[#allocation7 + $0x194] ss:$8 sps:$4 sm:$0xff]  }
 0x480   :  { %v5655_v60 = vpop.f32.mrb[8].mxu0 }
 0x481   :  { %v7288_v5 = vadd.f32 %v5655_v60, %v4199_v6  ;;  %v5657_v30 = vpop.f32.mrb[9].mxu0  ;;  %v7871_v60 = vld [vmem:[#allocation7 + $0x1b4] ss:$8 sps:$4 sm:$0xff]  }
 0x482   :  { %v7289_v7 = vadd.f32 %v5657_v30, %v4203_v3  ;;  %v5659_v12 = vpop.f32.mrb[10].mxu0  ;;  %v7874_v30 = vld [vmem:[#allocation7 + $0x1c4] ss:$8 sps:$4 sm:$0xff]  }
 0x483   :  { %v5844_v8 = vmul.f32 0.2, %v7288_v5  ;;  %v7290_v9 = vadd.f32 %v5659_v12, %v4199_v6  ;;  %v5661_v10 = vpop.f32.mrb[11].mxu0  ;;  %vm5836_vm4 = vcmp.ge.f32.partialorder %v7288_v5, 0.0  ;;  %v7868_v6 = vld [vmem:[#allocation7 + $0x1a4] ss:$8 sps:$4 sm:$0xff]  }
 0x484   :  { %v5845_v11 = vmul.f32 0.2, %v7289_v7  ;;  %v7291_v13 = vadd.f32 %v5661_v10, %v4203_v3  ;;  %vm5837_vm5 = vcmp.ge.f32.partialorder %v7289_v7, 0.0  ;;  %v7866_v3 = vld [vmem:[#allocation7 + $0x1a0] ss:$8 sps:$4 sm:$0xff]  }
 0x485   :  { %vm5840_vm6 = vcmp.ge.f32.partialorder %v7290_v9, 0.0  ;;  %v5848_v14 = vmul.f32 0.2, %v7290_v9  ;;  %v5852_v16 = vsel %vm5836_vm4, %v7288_v5, %v5844_v8  ;;  %v7869_v5 = vld [vmem:[#allocation7 + $0x1b0] ss:$8 sps:$4 sm:$0xff]  }
 0x486   :  { %vm5841_vm7 = vcmp.ge.f32.partialorder %v7291_v13, 0.0  ;;  %v5849_v15 = vmul.f32 0.2, %v7291_v13  ;;  %v5853_v19 = vsel %vm5837_vm5, %v7289_v7, %v5845_v11  ;;  %v7872_v7 = vld [vmem:[#allocation7 + $0x1c0] ss:$8 sps:$4 sm:$0xff]  }
 0x487   :  { %v5856_v17 = vsel %vm5840_vm6, %v7290_v9, %v5848_v14  ;;  %v7877_v12 = vld [vmem:[#allocation7 + $0x1d4] ss:$8 sps:$4 sm:$0xff]   ;;  %v7875_v8 = vld [vmem:[#allocation7 + $0x1d0] ss:$8 sps:$4 sm:$0xff]   ;;  %v7880_v9 = vld [vmem:[#allocation7 + $0x1e4] ss:$8 sps:$4 sm:$0xff]  }
 0x488   :  { %v5860_v18 = vpack.c.bf16 %v5856_v17, %v5852_v16  ;;  %v5857_v29 = vsel %vm5841_vm7, %v7291_v13, %v5849_v15  ;;  %v7878_v10 = vld [vmem:[#allocation7 + $0x1e0] ss:$8 sps:$4 sm:$0xff]   ;;  %v7883_v11 = vld [vmem:[#allocation7 + $0x1f4] ss:$8 sps:$4 sm:$0xff]   ;;  %v7881_v13 = vld [vmem:[#allocation7 + $0x1f0] ss:$8 sps:$4 sm:$0xff]  }
 0x489   :  { %v5861_v20 = vpack.c.bf16 %v5857_v29, %v5853_v19  ;;  %v7886_v14 = vld [vmem:[#allocation9 + $0x4] ss:$8 sps:$4 sm:$0xff]   ;;  %v5866_v15 = vsub.s32 2, %v8362_v62 }
 0x48a   :  { %6404 = vmatprep.mubr.bf16.mxu1 %v7886_v14 }
 0x48b   :  { %6224 = vmatprep.mubr.bf16.mxu0 %v5861_v20  ;;  %v5867_v16 = vrot.slane %v8413_v27, %v5866_v15  ;;  %v5871_v17 = vrot.slane %v8416_v2, %v5866_v15 }
 0x48c   :  { %6225 = vmatmul.mubr.bf16.vlgmr.msra.gmra.mrb[12].mxu0 %v5860_v18 }
 0x48d   :  { %6236 = vmatpush1.bf16.msra.mxu0 %v7836_v21 }
 0x48e   :  { %6237 = vmatprep.subr.bf16.mxu0 %v7841_v22 }
 0x491   :  { %6238 = vmatpush1.bf16.msra.mxu0 %v7839_v23 }
 0x492   :  { %6239 = vmatprep.subr.bf16.mxu0 %v7844_v26 }
 0x495   :  { %6240 = vmatpush1.bf16.msra.mxu0 %v7842_v25 }
 0x496   :  { %6241 = vmatprep.subr.bf16.mxu0 %v7847_v28 }
 0x499   :  { %6242 = vmatpush1.bf16.msra.mxu0 %v7845_v24 }
 0x49a   :  { %6243 = vmatprep.subr.bf16.mxu0 %v7850_v40 }
 0x49d   :  { %6244 = vmatpush1.bf16.msra.mxu0 %v7848_v31 }
 0x49e   :  { %6245 = vmatprep.subr.bf16.mxu0 %v7853_v32 }
 0x4a1   :  { %v5827_v36 = vpop.f32.mrb[12].mxu1  ;;  %6246 = vmatpush1.bf16.msra.mxu0 %v7851_v33 }
 0x4a2   :  { %v7292_v35 = vadd.f32 %v5827_v36, %v4207_v38  ;;  %v5829_v37 = vpop.f32.mrb[13].mxu1  ;;  %6247 = vmatprep.subr.bf16.mxu0 %v7856_v54  ;;  %v7889_v54 = vld [vmem:[#allocation9 + $0x10] ss:$8 sps:$4 sm:$0xff]   ;;  %v7893_v36 = vld [vmem:[#allocation9 + $0x34] ss:$8 sps:$4 sm:$0xff]  }
 0x4a3   :  { %v7293_v57 = vadd.f32 %v5829_v37, %v4211_v44  ;;  %v5831_v41 = vpop.f32.mrb[14].mxu1  ;;  %v7898_v37 = vld [vmem:[#allocation9 + $0x40] ss:$8 sps:$4 sm:$0xff]  }
 0x4a4   :  { %v5846_v43 = vmul.f32 0.2, %v7292_v35  ;;  %v7294_v61 = vadd.f32 %v5831_v41, %v4207_v38  ;;  %v5833_v45 = vpop.f32.mrb[15].mxu1  ;;  %vm5838_vm8 = vcmp.ge.f32.partialorder %v7292_v35, 0.0  ;;  %v7887_v38 = vld [vmem:[#allocation9 + $0x14] ss:$8 sps:$4 sm:$0xff]  }
 0x4a5   :  { %v5847_v47 = vmul.f32 0.2, %v7293_v57  ;;  %v7295_v48 = vadd.f32 %v5833_v45, %v4211_v44  ;;  %6248 = vmatpush1.bf16.msra.mxu0 %v7854_v56  ;;  %vm5839_vm9 = vcmp.ge.f32.partialorder %v7293_v57, 0.0  ;;  %v7892_v44 = vld [vmem:[#allocation9 + $0x20] ss:$8 sps:$4 sm:$0xff]  }
 0x4a6   :  { %vm5842_vm10 = vcmp.ge.f32.partialorder %v7294_v61, 0.0  ;;  %v5850_v50 = vmul.f32 0.2, %v7294_v61  ;;  %6249 = vmatprep.subr.bf16.mxu0 %v7859_v39  ;;  %v5854_v4 = vsel %vm5838_vm8, %v7292_v35, %v5846_v43  ;;  %v7895_v56 = vld [vmem:[#allocation9 + $0x30] ss:$8 sps:$4 sm:$0xff]  }
 0x4a7   :  { %vm5843_vm11 = vcmp.ge.f32.partialorder %v7295_v48, 0.0  ;;  %v5851_v52 = vmul.f32 0.2, %v7295_v48  ;;  %v5855_v58 = vsel %vm5839_vm9, %v7293_v57, %v5847_v47  ;;  %v7896_v35 = vld [vmem:[#allocation9 + $0x44] ss:$8 sps:$4 sm:$0xff]   ;;  %v6457_v47 = vpop.permute.xlu1 %6456 }
 0x4a8   :  { %v5858_v0 = vsel %vm5842_vm10, %v7294_v61, %v5850_v50  ;;  %v7899_v39 = vld [vmem:[#allocation9 + $0x54] ss:$8 sps:$4 sm:$0xff]   ;;  %v7901_v57 = vld [vmem:[#allocation9 + $0x50] ss:$8 sps:$4 sm:$0xff]   ;;  %v7902_v41 = vld [vmem:[#allocation9 + $0x64] ss:$8 sps:$4 sm:$0xff]  }
 0x4a9   :  { %v5862_v53 = vpack.c.bf16 %v5858_v0, %v5854_v4  ;;  %6250 = vmatpush1.bf16.msra.mxu0 %v7857_v49  ;;  %v5859_v51 = vsel %vm5843_vm11, %v7295_v48, %v5851_v52  ;;  %v7904_v43 = vld [vmem:[#allocation9 + $0x60] ss:$8 sps:$4 sm:$0xff]   ;;  %v7905_v61 = vld [vmem:[#allocation9 + $0x74] ss:$8 sps:$4 sm:$0xff]   ;;  %v7907_v45 = vld [vmem:[#allocation9 + $0x70] ss:$8 sps:$4 sm:$0xff]  }
 0x4aa   :  { %6251 = vmatprep.subr.bf16.mxu0 %v7862_v46  ;;  %v5863_v59 = vpack.c.bf16 %v5859_v51, %v5855_v58  ;;  %v6458_v48 = vrot.slane %v6457_v47, 3 }
 0x4ac   :  { %6267 = vmatprep.mubr.bf16.mxu0 %v5863_v59 }
 0x4ad   :  { %6252 = vmatpush1.bf16.msra.mxu0 %v7860_v55 }
 0x4ae   :  { %6253 = vmatprep.subr.bf16.mxu0 %v7865_v63 }
 0x4b1   :  { %6254 = vmatpush1.bf16.msra.mxu0 %v7863_v1 }
 0x4b2   :  { %6255 = vmatprep.subr.bf16.mxu0 %v7868_v6 }
 0x4b5   :  { %6256 = vmatpush1.bf16.msra.mxu0 %v7866_v3 }
 0x4b6   :  { %6257 = vmatprep.subr.bf16.mxu0 %v7871_v60 }
 0x4b9   :  { %6258 = vmatpush1.bf16.msra.mxu0 %v7869_v5 }
 0x4ba   :  { %6259 = vmatprep.subr.bf16.mxu0 %v7874_v30 }
 0x4bd   :  { %6260 = vmatpush1.bf16.msra.mxu0 %v7872_v7 }
 0x4be   :  { %6261 = vmatprep.subr.bf16.mxu0 %v7877_v12 }
 0x4c1   :  { %6262 = vmatpush1.bf16.msra.mxu0 %v7875_v8 }
 0x4c2   :  { %6263 = vmatprep.subr.bf16.mxu0 %v7880_v9 }
 0x4c5   :  { %6264 = vmatpush1.bf16.msra.mxu0 %v7878_v10 }
 0x4c6   :  { %6265 = vmatprep.subr.bf16.mxu0 %v7883_v11 }
 0x4c9   :  { %6266 = vmatpush1.bf16.msra.mxu0 %v7881_v13 }
 0x4cc   :  { %6268 = vmatmul.mubr.bf16.vlgmr.msra.gmra.mrb[12].mxu0 %v5862_v53 }
 0x59f   :  { %v6269_v18 = vpop.f32.mrb[12].mxu0 }
 0x5a0   :  { %v7296_v19 = vadd.f32 %v6269_v18, %v5867_v16  ;;  %v6271_v29 = vpop.f32.mrb[13].mxu0 }
 0x5a1   :  { %v7297_v20 = vadd.f32 %v6271_v29, %v5871_v17  ;;  %v6273_v21 = vpop.f32.mrb[14].mxu0 }
 0x5a2   :  { %v6282_v22 = vmul.f32 0.2, %v7296_v19  ;;  %v7298_v23 = vadd.f32 %v6273_v21, %v5867_v16  ;;  %v6275_v26 = vpop.f32.mrb[15].mxu0  ;;  %vm6278_vm12 = vcmp.ge.f32.partialorder %v7296_v19, 0.0 }
 0x5a3   :  { %v6283_v25 = vmul.f32 0.2, %v7297_v20  ;;  %v7299_v28 = vadd.f32 %v6275_v26, %v5871_v17  ;;  %vm6279_vm13 = vcmp.ge.f32.partialorder %v7297_v20, 0.0 }
 0x5a4   :  { %vm6280_vm14 = vcmp.ge.f32.partialorder %v7298_v23, 0.0  ;;  %v6284_v24 = vmul.f32 0.2, %v7298_v23  ;;  %v6286_v40 = vsel %vm6278_vm12, %v7296_v19, %v6282_v22 }
 0x5a5   :  { %vm6281_vm15 = vcmp.ge.f32.partialorder %v7299_v28, 0.0  ;;  %v6285_v62 = vmul.f32 0.2, %v7299_v28  ;;  %v6287_v2 = vsel %vm6279_vm13, %v7297_v20, %v6283_v25 }
 0x5a6   :  { %v6288_v27 = vsel %vm6280_vm14, %v7298_v23, %v6284_v24 }
 0x5a7   :  { %v6290_v31 = vpack.c.bf16 %v6288_v27, %v6286_v40  ;;  %v6289_v32 = vsel %vm6281_vm15, %v7299_v28, %v6285_v62 }
 0x5a8   :  { %v6291_v33 = vpack.c.bf16 %v6289_v32, %v6287_v2 }
 0x5aa   :  { %6372 = vmatprep.subr.bf16.mxu1 %v6291_v33 }
 0x5ab   :  { %6373 = vmatpush1.bf16.xpose.msra.mxu1 %v6290_v31 }
 0x5b2   :  { %6405 = vmatmul.mubr.bf16.vlgmr.msra.gmra.mrb[16].mxu1 %v7884_v34 }
 0x5b3   :  { %6411 = vmatprep.mubr.bf16.mxu1 %v7887_v38 }
 0x5ba   :  { %6412 = vmatmul.mubr.bf16.gmra.mrb[20].mxu1 %v7889_v54 }
 0x5bb   :  { %6417 = vmatprep.mubr.bf16.mxu1 %v7890_v42 }
 0x5c2   :  { %6418 = vmatmul.mubr.bf16.gmra.mrb[24].mxu1 %v7892_v44 }
 0x5c3   :  { %6423 = vmatprep.mubr.bf16.mxu1 %v7893_v36 }
 0x5ca   :  { %6424 = vmatmul.mubr.bf16.gmra.mrb[28].mxu1 %v7895_v56 }
 0x5cb   :  { %6429 = vmatprep.mubr.bf16.mxu1 %v7896_v35 }
 0x5d2   :  { %6430 = vmatmul.mubr.bf16.gmra.mrb[32].mxu1 %v7898_v37 }
 0x5d3   :  { %6435 = vmatprep.mubr.bf16.mxu1 %v7899_v39 }
 0x5da   :  { %6436 = vmatmul.mubr.bf16.gmra.mrb[36].mxu1 %v7901_v57 }
 0x5db   :  { %6441 = vmatprep.mubr.bf16.mxu1 %v7902_v41 }
 0x5e2   :  { %6442 = vmatmul.mubr.bf16.gmra.mrb[40].mxu1 %v7904_v43 }
 0x5e3   :  { %6447 = vmatprep.mubr.bf16.mxu1 %v7905_v61 }
 0x5ea   :  { %6448 = vmatmul.mubr.bf16.gmra.mrb[44].mxu1 %v7907_v45 }
 0x685   :  { %v6406_v49 = vpop.f32.mrb[16].mxu1 }
 0x686   :  { %v6460_v50 = vadd.f32 %v6458_v48, %v6406_v49  ;;  %v6408_v46 = vpop.f32.mrb[17].mxu1 }
 0x687   :  { %v6409_v52 = vpop.f32.mrb[18].mxu1 }
 0x688   :  { %v7283_v4 = vmul.f32 -1.442695, %v6460_v50  ;;  %v6410_v0 = vpop.f32.mrb[19].mxu1 }
 0x68a   :  { %7908 = vpow2.f32 %v7283_v4 }
 0x68d   :  { %v6413_v53 = vpop.f32.mrb[20].mxu1 }
 0x68e   :  { %v6414_v55 = vpop.f32.mrb[21].mxu1 }
 0x68f   :  { %v6415_v58 = vpop.f32.mrb[22].mxu1 }
 0x690   :  { %v6416_v51 = vpop.f32.mrb[23].mxu1 }
 0x694   :  { %v7909_v59 = vpop.eup %7908 }
 0x695   :  { %v6464_v63 = vadd.f32 1.0, %v7909_v59  ;;  %v6419_v1 = vpop.f32.mrb[24].mxu1 }
 0x696   :  { %v6420_v6 = vpop.f32.mrb[25].mxu1 }
 0x697   :  { %7910 = vrcp.f32 %v6464_v63  ;;  %v6421_v3 = vpop.f32.mrb[26].mxu1 }
 0x698   :  { %v6422_v60 = vpop.f32.mrb[27].mxu1 }
 0x69d   :  { %v6425_v5 = vpop.f32.mrb[28].mxu1 }
 0x69e   :  { %v6426_v30 = vpop.f32.mrb[29].mxu1 }
 0x69f   :  { %v6427_v7 = vpop.f32.mrb[30].mxu1 }
 0x6a0   :  { %v6428_v12 = vpop.f32.mrb[31].mxu1 }
 0x6a1   :  { %v7911_v8 = vpop.eup %7910 }
 0x6a2   :  { %6468 = vst.msk [vmem:[%s8433_s8] sm:$0x1] %vm6467_vm0, %v7911_v8 }
 0x6a5   :  { %v6431_v9 = vpop.f32.mrb[32].mxu1 }
 0x6a6   :  { %v6432_v10 = vpop.f32.mrb[33].mxu1 }
 0x6a7   :  { %v6433_v11 = vpop.f32.mrb[34].mxu1 }
 0x6a8   :  { %v6434_v13 = vpop.f32.mrb[35].mxu1 }
 0x6ad   :  { %v6437_v14 = vpop.f32.mrb[36].mxu1 }
 0x6ae   :  { %v6438_v15 = vpop.f32.mrb[37].mxu1 }
 0x6af   :  { %v6439_v16 = vpop.f32.mrb[38].mxu1 }
 0x6b0   :  { %v6440_v17 = vpop.f32.mrb[39].mxu1 }
 0x6b5   :  { %v6443_v18 = vpop.f32.mrb[40].mxu1 }
 0x6b6   :  { %v6444_v19 = vpop.f32.mrb[41].mxu1 }
 0x6b7   :  { %v6445_v29 = vpop.f32.mrb[42].mxu1 }
 0x6b8   :  { %v6446_v20 = vpop.f32.mrb[43].mxu1 }
 0x6bd   :  { %v6449_v21 = vpop.f32.mrb[44].mxu1 }
 0x6be   :  { %v6450_v22 = vpop.f32.mrb[45].mxu1 }
 0x6bf   :  { %v6451_v23 = vpop.f32.mrb[46].mxu1 }
 0x6c0   :  { %v6452_v26 = vpop.f32.mrb[47].mxu1 }
 0x6c1   :  { %6473 = vsyncpa [#allocation3], 1 }
 0x6c2   :  { %6474 = vsyncpa [#allocation5], 1 }
 0x6c3   :  { %6475 = vsyncpa [#allocation8], 1 }
 0x6c4   :  { %6476 = vsyncpa [#allocation11], 1 }

</bundles_post_ra>
